<compile_context>
chip_gen: v7x
topology: tpu7x:2x2x1
jax: 0.10.0
libtpu: 0.0.40
codegen_flags: <defaults>
</compile_context>

<pallas_src>
import math
from functools import partial

import jax
import jax.numpy as jnp
from jax.experimental import pallas as pl
from jax.experimental.pallas import tpu as pltpu


# ----------------------------- in-kernel helpers -----------------------------

def _ln(x, g, b, eps):
    mu = jnp.mean(x, axis=-1, keepdims=True)
    xc = x - mu
    var = jnp.mean(xc * xc, axis=-1, keepdims=True)
    return xc * jax.lax.rsqrt(var + eps) * g + b


# ----------------------------- Pallas kernels -----------------------------

def _group_matmul_kernel(x_ref, w_ref, b_ref, o_ref):
    # x: (tm, K) any float dtype, w: (K, N) bf16, b: (1, N) f32
    y = jnp.dot(x_ref[0].astype(jnp.bfloat16), w_ref[0],
                preferred_element_type=jnp.float32)
    o_ref[0] = y + b_ref[0]


def grouped_matmul(x, w, b, *, block_m=512):
    """x: (G, M, K), w: (G, K, N) bf16, b: (G, 1, N) f32 -> (G, M, N) f32."""
    G, M, K = x.shape
    N = w.shape[-1]
    tm = min(block_m, M)
    return pl.pallas_call(
        _group_matmul_kernel,
        grid=(G, pl.cdiv(M, tm)),
        in_specs=[pl.BlockSpec((1, tm, K), lambda g, i: (g, i, 0)),
                  pl.BlockSpec((1, K, N), lambda g, i: (g, 0, 0)),
                  pl.BlockSpec((1, 1, N), lambda g, i: (g, 0, 0))],
        out_specs=pl.BlockSpec((1, tm, N), lambda g, i: (g, i, 0)),
        out_shape=jax.ShapeDtypeStruct((G, M, N), jnp.float32),
        compiler_params=pltpu.CompilerParams(
            dimension_semantics=("parallel", "parallel")),
    )(x, w, b)


def _elu_ln_kernel(x_ref, g_ref, b_ref, o_ref, *, eps):
    x = x_ref[0]                                        # (nb, D) f32, per-sample slab
    y = jnp.where(x > 0, x, jnp.exp(jnp.minimum(x, 0.0)) - 1.0)   # ELU(alpha=1)
    o_ref[0] = _ln(y, g_ref[0], b_ref[0], eps)          # LayerNorm over full [C, L] slab


def elu_ln(x, g, b, *, block_n=256, eps=1e-5):
    """x: (G, N, D) with D = L*C (lane-dense), per-row ELU + LayerNorm."""
    G, N, D = x.shape
    nb = min(block_n, N)
    return pl.pallas_call(
        partial(_elu_ln_kernel, eps=eps),
        grid=(G, pl.cdiv(N, nb)),
        in_specs=[pl.BlockSpec((1, nb, D), lambda g, i: (g, i, 0)),
                  pl.BlockSpec((1, 1, D), lambda g, i: (g, 0, 0)),
                  pl.BlockSpec((1, 1, D), lambda g, i: (g, 0, 0))],
        out_specs=pl.BlockSpec((1, nb, D), lambda g, i: (g, i, 0)),
        out_shape=jax.ShapeDtypeStruct((G, N, D), jnp.float32),
        compiler_params=pltpu.CompilerParams(
            dimension_semantics=("parallel", "parallel")),
    )(x, g, b)


def _fused_linear_kernel(*refs, has_pre, has_res, act, has_post, ln_eps):
    refs = list(refs)
    o_ref = refs.pop()
    idx = 0
    x = refs[idx][...]; idx += 1                        # (tm, K) f32
    if has_pre:
        g, b = refs[idx][...], refs[idx + 1][...]; idx += 2
        x = _ln(x, g, b, ln_eps)
    w = refs[idx][...]; bias = refs[idx + 1][...]; idx += 2
    y = jnp.dot(x.astype(jnp.bfloat16), w, preferred_element_type=jnp.float32) + bias
    if act == "relu":
        y = jnp.maximum(y, 0.0)
    if has_res:
        y = y + refs[idx][...]; idx += 1
    if has_post:
        g2, b2 = refs[idx][...], refs[idx + 1][...]; idx += 2
        y = _ln(y, g2, b2, ln_eps)
    o_ref[...] = y


def fused_linear(x, w, b, *, pre_ln=None, residual=None, act=None, post_ln=None,
                 block_m=256, ln_eps=1e-5):
    """y = [post_LN]( [residual +] act( [pre_LN](x) @ W + b ) ), one pallas_call."""
    M, K = x.shape
    N = w.shape[-1]
    tm = min(block_m, M)
    args = [x]
    in_specs = [pl.BlockSpec((tm, K), lambda i: (i, 0))]
    if pre_ln is not None:
        g, bb = pre_ln
        args += [g.reshape(1, K), bb.reshape(1, K)]
        in_specs += [pl.BlockSpec((1, K), lambda i: (0, 0))] * 2
    args += [w, b.reshape(1, N)]
    in_specs += [pl.BlockSpec((K, N), lambda i: (0, 0)),
                 pl.BlockSpec((1, N), lambda i: (0, 0))]
    if residual is not None:
        args.append(residual)
        in_specs.append(pl.BlockSpec((tm, N), lambda i: (i, 0)))
    if post_ln is not None:
        g2, bb2 = post_ln
        args += [g2.reshape(1, N), bb2.reshape(1, N)]
        in_specs += [pl.BlockSpec((1, N), lambda i: (0, 0))] * 2
    kernel = partial(_fused_linear_kernel, has_pre=pre_ln is not None,
                     has_res=residual is not None, act=act,
                     has_post=post_ln is not None, ln_eps=ln_eps)
    return pl.pallas_call(
        kernel,
        grid=(pl.cdiv(M, tm),),
        in_specs=in_specs,
        out_specs=pl.BlockSpec((tm, N), lambda i: (i, 0)),
        out_shape=jax.ShapeDtypeStruct((M, N), jnp.float32),
        compiler_params=pltpu.CompilerParams(dimension_semantics=("parallel",)),
    )(*args)


def _ffn_kernel(*refs, has_pre, has_post, ln_eps):
    refs = list(refs)
    o_ref = refs.pop()
    idx = 0
    x = refs[idx][...]; idx += 1                        # (tm, D) f32
    h = x
    if has_pre:
        g, b = refs[idx][...], refs[idx + 1][...]; idx += 2
        h = _ln(h, g, b, ln_eps)
    w1, b1 = refs[idx], refs[idx + 1]; idx += 2
    w2, b2 = refs[idx], refs[idx + 1]; idx += 2
    h = jnp.dot(h.astype(jnp.bfloat16), w1[...],
                preferred_element_type=jnp.float32) + b1[...]
    h = jnp.maximum(h, 0.0)
    y = x + jnp.dot(h.astype(jnp.bfloat16), w2[...],
                    preferred_element_type=jnp.float32) + b2[...]
    if has_post:
        g2, bb2 = refs[idx][...], refs[idx + 1][...]; idx += 2
        y = _ln(y, g2, bb2, ln_eps)
    o_ref[...] = y


def fused_ffn(x, w1, b1, w2, b2, *, pre_ln=None, post_ln=None,
              block_m=256, ln_eps=1e-5):
    """y = [post_LN]( x + relu([pre_LN](x) @ W1 + b1) @ W2 + b2 ), one pallas_call."""
    M, D = x.shape
    F = w1.shape[-1]
    tm = min(block_m, M)
    args = [x]
    in_specs = [pl.BlockSpec((tm, D), lambda i: (i, 0))]
    if pre_ln is not None:
        g, bb = pre_ln
        args += [g.reshape(1, D), bb.reshape(1, D)]
        in_specs += [pl.BlockSpec((1, D), lambda i: (0, 0))] * 2
    args += [w1, b1.reshape(1, F), w2, b2.reshape(1, D)]
    in_specs += [pl.BlockSpec((D, F), lambda i: (0, 0)),
                 pl.BlockSpec((1, F), lambda i: (0, 0)),
                 pl.BlockSpec((F, D), lambda i: (0, 0)),
                 pl.BlockSpec((1, D), lambda i: (0, 0))]
    if post_ln is not None:
        g2, bb2 = post_ln
        args += [g2.reshape(1, D), bb2.reshape(1, D)]
        in_specs += [pl.BlockSpec((1, D), lambda i: (0, 0))] * 2
    kernel = partial(_ffn_kernel, has_pre=pre_ln is not None,
                     has_post=post_ln is not None, ln_eps=ln_eps)
    return pl.pallas_call(
        kernel,
        grid=(pl.cdiv(M, tm),),
        in_specs=in_specs,
        out_specs=pl.BlockSpec((tm, D), lambda i: (i, 0)),
        out_shape=jax.ShapeDtypeStruct((M, D), jnp.float32),
        compiler_params=pltpu.CompilerParams(dimension_semantics=("parallel",)),
    )(*args)


def _attn_kernel(q_ref, k_ref, v_ref, o_ref, *, scale):
    q = q_ref[...].astype(jnp.bfloat16)                 # (bh, S, dh)
    k = k_ref[...].astype(jnp.bfloat16)
    s = jnp.einsum('bqd,bkd->bqk', q, k,
                   preferred_element_type=jnp.float32) * scale
    s = s - jnp.max(s, axis=-1, keepdims=True)
    p = jnp.exp(s)
    p = p * pl.reciprocal(jnp.sum(p, axis=-1, keepdims=True), approx=True)
    o_ref[...] = jnp.einsum('bqk,bkd->bqd', p.astype(jnp.bfloat16),
                            v_ref[...].astype(jnp.bfloat16),
                            preferred_element_type=jnp.float32)


def attention_core(q, k, v, *, block_bh=64):
    """q,k,v: (B*H, S, dh) -> softmax(q k^T / sqrt(dh)) v, batched over (batch, head)."""
    BH, S, dh = q.shape
    scale = 1.0 / math.sqrt(dh)
    bh_t = min(block_bh, BH)
    spec = pl.BlockSpec((bh_t, S, dh), lambda i: (i, 0, 0))
    return pl.pallas_call(
        partial(_attn_kernel, scale=scale),
        grid=(pl.cdiv(BH, bh_t),),
        in_specs=[spec, spec, spec],
        out_specs=spec,
        out_shape=jax.ShapeDtypeStruct((BH, S, dh), jnp.float32),
        compiler_params=pltpu.CompilerParams(dimension_semantics=("parallel",)),
    )(q, k, v)


# ----------------------------- model building blocks -----------------------------

def im2col(x_nlc):
    """x: (G, N, L, C) -> patches (G, N*L_out, C*5) for Conv1d(k=5, s=2, p=2)."""
    G, N, L, C = x_nlc.shape
    K, stride, pad = 5, 2, 2
    L_out = (L + 2 * pad - K) // stride + 1
    xp = jnp.pad(x_nlc, ((0, 0), (0, 0), (pad, pad), (0, 0)))
    idx = jnp.arange(L_out)[:, None] * stride + jnp.arange(K)[None, :]   # (L_out, K)
    pat = xp[:, :, idx, :]                               # (G, N, L_out, K, C)
    pat = pat.transpose(0, 1, 2, 4, 3)                   # (G, N, L_out, C, K)
    return pat.reshape(G, N * L_out, C * K), L_out


def tokenizer_forward(x, prep, *, input_size):
    """x: (b, 16, s) -> tokens (4, b*t, D); the 4 branches run as one grouped pass."""
    b, _, s = x.shape
    t = s // input_size
    N = b * t
    branches = []
    for lo, hi in ((0, 8), (8, 13), (13, 14), (14, 16)):
        xb = x[:, lo:hi, :]
        xb = jnp.pad(xb, ((0, 0), (0, 8 - (hi - lo)), (0, 0)))   # zero-pad C_in to 8
        branches.append(xb)
    xg = jnp.stack(branches, axis=0)                     # (4, b, 8, s)
    xg = xg.reshape(4, b, 8, t, input_size).transpose(0, 1, 3, 4, 2)
    h = xg.reshape(4, N, input_size, 8)                  # (G, N, L, C), channels last

    slab = None
    for blk in prep["blocks"]:
        pat, L_out = im2col(h)
        pat = pat.astype(jnp.bfloat16)
        y = grouped_matmul(pat, blk["w"], blk["b"])      # (4, N*L_out, C_out), BN folded
        c_out = blk["w"].shape[-1]
        slab = y.reshape(4, N, L_out * c_out)            # free reshape: per-sample slab
        slab = elu_ln(slab, blk["ln_w"], blk["ln_b"])    # fused ELU + LayerNorm([C, L])
        h = slab.reshape(4, N, L_out, c_out)

    # AdaptiveAvgPool1d(1) + Flatten + Linear fused into one grouped matmul
    tok = grouped_matmul(slab, prep["fc_w"], prep["fc_b"])   # (4, N, D)
    return tok


def mha(x, p, num_heads, pre_ln):
    B, S, D = x.shape
    dh = D // num_heads
    x2 = x.reshape(B * S, D)
    qkv = fused_linear(x2, p["in_w"], p["in_b"], pre_ln=pre_ln)     # (B*S, 3D)
    qkv = qkv.reshape(B, S, 3, num_heads, dh)

    def heads(i):
        return qkv[:, :, i].transpose(0, 2, 1, 3).reshape(B * num_heads, S, dh)

    o = attention_core(heads(0), heads(1), heads(2))                 # (B*H, S, dh)
    o = o.reshape(B, num_heads, S, dh).transpose(0, 2, 1, 3).reshape(B * S, D)
    return o, x2


def encoder_layer(x, p, num_heads, norm_first):
    """nn.TransformerEncoderLayer (eval, no mask, ReLU FFN)."""
    B, S, D = x.shape
    if norm_first:
        attn, x2 = mha(x, p, num_heads, pre_ln=(p["ln1_g"], p["ln1_b"]))
        y = fused_linear(attn, p["out_w"], p["out_b"], residual=x2)
        y = fused_ffn(y, p["ff1_w"], p["ff1_b"], p["ff2_w"], p["ff2_b"],
                      pre_ln=(p["ln2_g"], p["ln2_b"]))
    else:
        attn, x2 = mha(x, p, num_heads, pre_ln=None)
        y = fused_linear(attn, p["out_w"], p["out_b"], residual=x2,
                         post_ln=(p["ln1_g"], p["ln1_b"]))
        y = fused_ffn(y, p["ff1_w"], p["ff1_b"], p["ff2_w"], p["ff2_b"],
                      post_ln=(p["ln2_g"], p["ln2_b"]))
    return y.reshape(B, S, D)


def make_positional_encoding(max_seq_len, d_model):
    position = jnp.arange(max_seq_len, dtype=jnp.float32)[:, None]
    div_term = jnp.exp(jnp.arange(0, d_model, 2, dtype=jnp.float32)
                       * (-math.log(10000.0) / d_model))
    pe = jnp.zeros((1, max_seq_len, d_model), jnp.float32)
    pe = pe.at[0, :, 0::2].set(jnp.sin(position * div_term))
    pe = pe.at[0, :, 1::2].set(jnp.cos(position * div_term))
    return pe


def cl_forward(x, prep, *, input_size, output_size, num_heads):
    b = x.shape[0]
    t = x.shape[2] // input_size
    tok = tokenizer_forward(x, prep, input_size=input_size)     # (4, b*t, D)
    h = tok.reshape(4 * b, t, output_size) + prep["pe"]         # PositionalEncoding
    for lp in prep["encoder_layers"]:                           # shared pre-LN stack,
        h = encoder_layer(h, lp, num_heads, norm_first=True)    # all 4 branches at once
    pooled_seq = encoder_layer(h, prep["pool_layer"], num_heads, norm_first=False)
    pooled = jnp.mean(pooled_seq, axis=1)                       # AttentionPooling mean
    enc = h.reshape(4, b, t, output_size)
    embedding = jnp.concatenate([enc[0], enc[1], enc[2], enc[3]], axis=-1)
    pooled = pooled.reshape(4, b, output_size)
    return (pooled[0], pooled[1], pooled[2], pooled[3]), embedding, None


# ----------------------------- parameters -----------------------------

def init_conv_blocks(key, input_size):
    chans = [8, 4, 8, 16, 32, 64, 128]          # block-1 C_in padded to 8
    real_c0 = [8, 5, 1, 2]                      # bas, resp, ekg, emg real input channels
    keys = jax.random.split(key, 6)
    blocks, L = [], input_size
    for i in range(6):
        cin, cout = chans[i], chans[i + 1]
        L = L // 2
        kw, kb = jax.random.split(keys[i])
        w = 0.05 * jax.random.normal(kw, (4, cin * 5, cout), jnp.float32)
        if i == 0:
            row_c = jnp.arange(cin * 5) // 5
            mask = (row_c[None, :] < jnp.array(real_c0)[:, None]).astype(jnp.float32)
            w = w * mask[:, :, None]            # zero weights of padded input channels
        b = 0.05 * jax.random.normal(kb, (4, cout), jnp.float32)
        blocks.append({"w": w, "b": b,
                       "bn_g": jnp.ones((4, cout), jnp.float32),
                       "bn_b": jnp.zeros((4, cout), jnp.float32),
                       "bn_m": jnp.zeros((4, cout), jnp.float32),
                       "bn_v": jnp.ones((4, cout), jnp.float32),
                       "ln_g": jnp.ones((4, cout, L), jnp.float32),
                       "ln_b": jnp.zeros((4, cout, L), jnp.float32)})
    return blocks


def init_encoder_layer(key, d_model, d_ff):
    ks = jax.random.split(key, 4)

    def lin(k, fi, fo):
        kw, kb = jax.random.split(k)
        return (0.05 * jax.random.normal(kw, (fi, fo), jnp.float32),
                0.05 * jax.random.normal(kb, (fo,), jnp.float32))

    in_w, in_b = lin(ks[0], d_model, 3 * d_model)
    out_w, out_b = lin(ks[1], d_model, d_model)
    ff1_w, ff1_b = lin(ks[2], d_model, d_ff)
    ff2_w, ff2_b = lin(ks[3], d_ff, d_model)
    return {"in_w": in_w, "in_b": in_b, "out_w": out_w, "out_b": out_b,
            "ff1_w": ff1_w, "ff1_b": ff1_b, "ff2_w": ff2_w, "ff2_b": ff2_b,
            "ln1_g": jnp.ones((d_model,), jnp.float32),
            "ln1_b": jnp.zeros((d_model,), jnp.float32),
            "ln2_g": jnp.ones((d_model,), jnp.float32),
            "ln2_b": jnp.zeros((d_model,), jnp.float32)}


def prepare_params(params, *, input_size, bn_eps=1e-5):
    """Fold BatchNorm (eval) into conv weights, flatten LN affines to the slab layout,
    fuse AdaptiveAvgPool into the FC weight, and pre-cast matmul weights to bf16."""
    prep = {"blocks": []}
    for blk in params["conv_blocks"]:
        s = blk["bn_g"] / jnp.sqrt(blk["bn_v"] + bn_eps)             # (4, Cout)
        w = (blk["w"] * s[:, None, :]).astype(jnp.bfloat16)          # BN folded
        b = (blk["b"] - blk["bn_m"]) * s + blk["bn_b"]
        cout = blk["w"].shape[-1]
        L_out = blk["ln_g"].shape[-1]
        ln_w = blk["ln_g"].transpose(0, 2, 1).reshape(4, 1, L_out * cout)   # (l, c) order
        ln_b = blk["ln_b"].transpose(0, 2, 1).reshape(4, 1, L_out * cout)
        prep["blocks"].append({"w": w, "b": b.reshape(4, 1, cout),
                               "ln_w": ln_w, "ln_b": ln_b})
    L6 = input_size // 64
    prep["fc_w"] = (jnp.tile(params["fc_w"], (1, L6, 1)) / L6).astype(jnp.bfloat16)
    prep["fc_b"] = params["fc_b"].reshape(4, 1, -1)
    prep["pe"] = params["pe"]

    def prep_layer(lp):
        out = dict(lp)
        for k in ("in_w", "out_w", "ff1_w", "ff2_w"):
            out[k] = lp[k].astype(jnp.bfloat16)
        return out

    prep["encoder_layers"] = [prep_layer(lp) for lp in params["encoder_layers"]]
    prep["pool_layer"] = prep_layer(params["pool_layer"])
    return prep


# ----------------------------- demo -----------------------------

if __name__ == "__main__":
    INPUT_SIZE = 64      # small stand-in for 640 (must be divisible by 64)
    OUTPUT_SIZE = 32     # d_model (128 in the original)
    NUM_HEADS = 4
    NUM_LAYERS = 2       # encoder depth (6 in the original)
    D_FF = 64            # dim_feedforward (torch default 2048), scaled down
    B, T = 2, 4          # T == max_seq_len (PositionalEncoding adds pe directly)

    key = jax.random.PRNGKey(0)
    k_x, k_conv, k_fc, k_enc, k_pool = jax.random.split(key, 5)
    x = jax.random.normal(k_x, (B, 16, T * INPUT_SIZE), jnp.float32)

    params = {
        "conv_blocks": init_conv_blocks(k_conv, INPUT_SIZE),
        "fc_w": 0.05 * jax.random.normal(k_fc, (4, 128, OUTPUT_SIZE), jnp.float32),
        "fc_b": jnp.zeros((4, OUTPUT_SIZE), jnp.float32),
        "pe": make_positional_encoding(T, OUTPUT_SIZE),
        "encoder_layers": [init_encoder_layer(k, OUTPUT_SIZE, D_FF)
                           for k in jax.random.split(k_enc, NUM_LAYERS)],
        "pool_layer": init_encoder_layer(k_pool, OUTPUT_SIZE, D_FF),
    }
    prep = prepare_params(params, input_size=INPUT_SIZE)

    fwd = jax.jit(partial(cl_forward, input_size=INPUT_SIZE,
                          output_size=OUTPUT_SIZE, num_heads=NUM_HEADS))
    out, embedding, aux = fwd(x, prep)
    jax.block_until_ready((out, embedding))

    assert embedding.shape == (B, T, 4 * OUTPUT_SIZE)
    for p_ in out:
        assert p_.shape == (B, OUTPUT_SIZE)
    assert aux is None
    print("KERNEL_OK")
</pallas_src>

<mosaic_0001>
module attributes {stable_mosaic.version = 11 : i64} {
  func.func @_group_matmul_kernel(%arg0: i32, %arg1: i32, %arg2: memref<1x256x40xbf16, #tpu.memory_space<vmem>>, %arg3: memref<1x40x4xbf16, #tpu.memory_space<vmem>>, %arg4: memref<1x1x4xf32, #tpu.memory_space<vmem>>, %arg5: memref<1x256x4xf32, #tpu.memory_space<vmem>>) attributes {dimension_semantics = [#tpu.dimension_semantics<parallel>, #tpu.dimension_semantics<parallel>], iteration_bounds = array<i64: 4, 1>, scalar_prefetch = 0 : i64, scratch_operands = 0 : i64, tpu.core_type = #tpu.core_type<tc>, window_params = [{transform_indices = @transform_0, window_bounds = array<i64: 1, 256, 40>}, {transform_indices = @transform_1, window_bounds = array<i64: 1, 40, 4>}, {transform_indices = @transform_2, window_bounds = array<i64: 1, 1, 4>}, {transform_indices = @transform_3, window_bounds = array<i64: 1, 256, 4>}]} {
    %c0 = arith.constant 0 : index
    %c0_0 = arith.constant 0 : index
    %c0_1 = arith.constant 0 : index
    %0 = vector.load %arg2[%c0, %c0_0, %c0_1] : memref<1x256x40xbf16, #tpu.memory_space<vmem>>, vector<1x256x40xbf16>
    %1 = vector.shape_cast %0 : vector<1x256x40xbf16> to vector<256x40xbf16>
    %c0_2 = arith.constant 0 : index
    %c0_3 = arith.constant 0 : index
    %c0_4 = arith.constant 0 : index
    %2 = vector.load %arg3[%c0_2, %c0_3, %c0_4] : memref<1x40x4xbf16, #tpu.memory_space<vmem>>, vector<1x40x4xbf16>
    %3 = vector.shape_cast %2 : vector<1x40x4xbf16> to vector<40x4xbf16>
    %cst = arith.constant dense<0.000000e+00> : vector<256x4xf32>
    %4 = tpu.matmul %1, %3, %cst {dimension_numbers = #tpu.dot_dimension_numbers<[1], [0], [0], [1], [0, 0, 1, 1], [], []>} : vector<256x40xbf16>, vector<40x4xbf16>, vector<256x4xf32> -> vector<256x4xf32>
    %c0_5 = arith.constant 0 : index
    %c0_6 = arith.constant 0 : index
    %c0_7 = arith.constant 0 : index
    %5 = vector.load %arg4[%c0_5, %c0_6, %c0_7] : memref<1x1x4xf32, #tpu.memory_space<vmem>>, vector<1x1x4xf32>
    %6 = vector.shape_cast %5 : vector<1x1x4xf32> to vector<1x4xf32>
    %7 = vector.broadcast %6 : vector<1x4xf32> to vector<256x4xf32>
    %8 = arith.addf %4, %7 : vector<256x4xf32>
    %c0_8 = arith.constant 0 : index
    %c0_9 = arith.constant 0 : index
    %c0_10 = arith.constant 0 : index
    %9 = vector.load %arg5[%c0_8, %c0_9, %c0_10] : memref<1x256x4xf32, #tpu.memory_space<vmem>>, vector<1x256x4xf32>
    %10 = vector.shape_cast %9 : vector<1x256x4xf32> to vector<256x4xf32>
    %11 = vector.shape_cast %8 : vector<256x4xf32> to vector<1x256x4xf32>
    tpu.vector_store %arg5[%c0_8, %c0_9, %c0_10], %11 {strides = array<i32>} : memref<1x256x4xf32, #tpu.memory_space<vmem>>, vector<1x256x4xf32>,
    return
  }
  func.func @transform_0(%arg0: i32, %arg1: i32) -> (i32, i32, i32) {
    %c0_i32 = arith.constant 0 : i32
    %c0_i32_0 = arith.constant 0 : i32
    return %arg0, %arg1, %c0_i32 : i32, i32, i32
  }
  func.func @transform_1(%arg0: i32, %arg1: i32) -> (i32, i32, i32) {
    %c0_i32 = arith.constant 0 : i32
    %c0_i32_0 = arith.constant 0 : i32
    %c0_i32_1 = arith.constant 0 : i32
    return %arg0, %c0_i32, %c0_i32_0 : i32, i32, i32
  }
  func.func @transform_2(%arg0: i32, %arg1: i32) -> (i32, i32, i32) {
    %c0_i32 = arith.constant 0 : i32
    %c0_i32_0 = arith.constant 0 : i32
    %c0_i32_1 = arith.constant 0 : i32
    return %arg0, %c0_i32, %c0_i32_0 : i32, i32, i32
  }
  func.func @transform_3(%arg0: i32, %arg1: i32) -> (i32, i32, i32) {
    %c0_i32 = arith.constant 0 : i32
    %c0_i32_0 = arith.constant 0 : i32
    return %arg0, %arg1, %c0_i32 : i32, i32, i32
  }
}

module attributes {stable_mosaic.version = 11 : i64} {
  func.func @_elu_ln_kernel(%arg0: i32, %arg1: i32, %arg2: memref<1x8x128xf32, #tpu.memory_space<vmem>>, %arg3: memref<1x1x128xf32, #tpu.memory_space<vmem>>, %arg4: memref<1x1x128xf32, #tpu.memory_space<vmem>>, %arg5: memref<1x8x128xf32, #tpu.memory_space<vmem>>) attributes {dimension_semantics = [#tpu.dimension_semantics<parallel>, #tpu.dimension_semantics<parallel>], iteration_bounds = array<i64: 4, 1>, scalar_prefetch = 0 : i64, scratch_operands = 0 : i64, tpu.core_type = #tpu.core_type<tc>, window_params = [{transform_indices = @transform_0, window_bounds = array<i64: 1, 8, 128>}, {transform_indices = @transform_1, window_bounds = array<i64: 1, 1, 128>}, {transform_indices = @transform_2, window_bounds = array<i64: 1, 1, 128>}, {transform_indices = @transform_3, window_bounds = array<i64: 1, 8, 128>}]} {
    %c0 = arith.constant 0 : index
    %c0_0 = arith.constant 0 : index
    %c0_1 = arith.constant 0 : index
    %0 = vector.load %arg2[%c0, %c0_0, %c0_1] : memref<1x8x128xf32, #tpu.memory_space<vmem>>, vector<1x8x128xf32>
    %1 = vector.shape_cast %0 : vector<1x8x128xf32> to vector<8x128xf32>
    %cst = arith.constant 0.000000e+00 : f32
    %2 = vector.broadcast %cst : f32 to vector<8x128xf32>
    %3 = arith.cmpf ogt, %1, %2 : vector<8x128xf32>
    %cst_2 = arith.constant 0.000000e+00 : f32
    %4 = vector.broadcast %cst_2 : f32 to vector<8x128xf32>
    %5 = arith.minimumf %1, %4 : vector<8x128xf32>
    %6 = math.exp %5 : vector<8x128xf32>
    %cst_3 = arith.constant 1.000000e+00 : f32
    %7 = vector.broadcast %cst_3 : f32 to vector<8x128xf32>
    %8 = arith.subf %6, %7 : vector<8x128xf32>
    %9 = arith.select %3, %1, %8 : vector<8x128xi1>, vector<8x128xf32>
    %c0_4 = arith.constant 0 : index
    %c0_5 = arith.constant 0 : index
    %c0_6 = arith.constant 0 : index
    %10 = vector.load %arg3[%c0_4, %c0_5, %c0_6] : memref<1x1x128xf32, #tpu.memory_space<vmem>>, vector<1x1x128xf32>
    %11 = vector.shape_cast %10 : vector<1x1x128xf32> to vector<1x128xf32>
    %c0_7 = arith.constant 0 : index
    %c0_8 = arith.constant 0 : index
    %c0_9 = arith.constant 0 : index
    %12 = vector.load %arg4[%c0_7, %c0_8, %c0_9] : memref<1x1x128xf32, #tpu.memory_space<vmem>>, vector<1x1x128xf32>
    %13 = vector.shape_cast %12 : vector<1x1x128xf32> to vector<1x128xf32>
    %cst_10 = arith.constant dense<0.000000e+00> : vector<8xf32>
    %14 = vector.multi_reduction <add>, %9, %cst_10 [1] : vector<8x128xf32> to vector<8xf32>
    %15 = vector.shape_cast %14 : vector<8xf32> to vector<8x1xf32>
    %cst_11 = arith.constant 1.280000e+02 : f32
    %16 = vector.broadcast %cst_11 : f32 to vector<8x1xf32>
    %17 = arith.divf %15, %16 : vector<8x1xf32>
    %18 = vector.broadcast %17 : vector<8x1xf32> to vector<8x128xf32>
    %19 = arith.subf %9, %18 : vector<8x128xf32>
    %20 = arith.mulf %19, %19 : vector<8x128xf32>
    %cst_12 = arith.constant dense<0.000000e+00> : vector<8xf32>
    %21 = vector.multi_reduction <add>, %20, %cst_12 [1] : vector<8x128xf32> to vector<8xf32>
    %22 = vector.shape_cast %21 : vector<8xf32> to vector<8x1xf32>
    %cst_13 = arith.constant 1.280000e+02 : f32
    %23 = vector.broadcast %cst_13 : f32 to vector<8x1xf32>
    %24 = arith.divf %22, %23 : vector<8x1xf32>
    %cst_14 = arith.constant 9.99999974E-6 : f32
    %25 = vector.broadcast %cst_14 : f32 to vector<8x1xf32>
    %26 = arith.addf %24, %25 : vector<8x1xf32>
    %27 = math.rsqrt %26 : vector<8x1xf32>
    %28 = vector.broadcast %27 : vector<8x1xf32> to vector<8x128xf32>
    %29 = arith.mulf %19, %28 : vector<8x128xf32>
    %30 = vector.broadcast %11 : vector<1x128xf32> to vector<8x128xf32>
    %31 = arith.mulf %29, %30 : vector<8x128xf32>
    %32 = vector.broadcast %13 : vector<1x128xf32> to vector<8x128xf32>
    %33 = arith.addf %31, %32 : vector<8x128xf32>
    %c0_15 = arith.constant 0 : index
    %c0_16 = arith.constant 0 : index
    %c0_17 = arith.constant 0 : index
    %34 = vector.load %arg5[%c0_15, %c0_16, %c0_17] : memref<1x8x128xf32, #tpu.memory_space<vmem>>, vector<1x8x128xf32>
    %35 = vector.shape_cast %34 : vector<1x8x128xf32> to vector<8x128xf32>
    %36 = vector.shape_cast %33 : vector<8x128xf32> to vector<1x8x128xf32>
    tpu.vector_store %arg5[%c0_15, %c0_16, %c0_17], %36 {strides = array<i32>} : memref<1x8x128xf32, #tpu.memory_space<vmem>>, vector<1x8x128xf32>,
    return
  }
  func.func @transform_0(%arg0: i32, %arg1: i32) -> (i32, i32, i32) {
    %c0_i32 = arith.constant 0 : i32
    %c0_i32_0 = arith.constant 0 : i32
    return %arg0, %arg1, %c0_i32 : i32, i32, i32
  }
  func.func @transform_1(%arg0: i32, %arg1: i32) -> (i32, i32, i32) {
    %c0_i32 = arith.constant 0 : i32
    %c0_i32_0 = arith.constant 0 : i32
    %c0_i32_1 = arith.constant 0 : i32
    return %arg0, %c0_i32, %c0_i32_0 : i32, i32, i32
  }
  func.func @transform_2(%arg0: i32, %arg1: i32) -> (i32, i32, i32) {
    %c0_i32 = arith.constant 0 : i32
    %c0_i32_0 = arith.constant 0 : i32
    %c0_i32_1 = arith.constant 0 : i32
    return %arg0, %c0_i32, %c0_i32_0 : i32, i32, i32
  }
  func.func @transform_3(%arg0: i32, %arg1: i32) -> (i32, i32, i32) {
    %c0_i32 = arith.constant 0 : i32
    %c0_i32_0 = arith.constant 0 : i32
    return %arg0, %arg1, %c0_i32 : i32, i32, i32
  }
}

module attributes {stable_mosaic.version = 11 : i64} {
  func.func @_group_matmul_kernel(%arg0: i32, %arg1: i32, %arg2: memref<1x128x20xbf16, #tpu.memory_space<vmem>>, %arg3: memref<1x20x8xbf16, #tpu.memory_space<vmem>>, %arg4: memref<1x1x8xf32, #tpu.memory_space<vmem>>, %arg5: memref<1x128x8xf32, #tpu.memory_space<vmem>>) attributes {dimension_semantics = [#tpu.dimension_semantics<parallel>, #tpu.dimension_semantics<parallel>], iteration_bounds = array<i64: 4, 1>, scalar_prefetch = 0 : i64, scratch_operands = 0 : i64, tpu.core_type = #tpu.core_type<tc>, window_params = [{transform_indices = @transform_0, window_bounds = array<i64: 1, 128, 20>}, {transform_indices = @transform_1, window_bounds = array<i64: 1, 20, 8>}, {transform_indices = @transform_2, window_bounds = array<i64: 1, 1, 8>}, {transform_indices = @transform_3, window_bounds = array<i64: 1, 128, 8>}]} {
    %c0 = arith.constant 0 : index
    %c0_0 = arith.constant 0 : index
    %c0_1 = arith.constant 0 : index
    %0 = vector.load %arg2[%c0, %c0_0, %c0_1] : memref<1x128x20xbf16, #tpu.memory_space<vmem>>, vector<1x128x20xbf16>
    %1 = vector.shape_cast %0 : vector<1x128x20xbf16> to vector<128x20xbf16>
    %c0_2 = arith.constant 0 : index
    %c0_3 = arith.constant 0 : index
    %c0_4 = arith.constant 0 : index
    %2 = vector.load %arg3[%c0_2, %c0_3, %c0_4] : memref<1x20x8xbf16, #tpu.memory_space<vmem>>, vector<1x20x8xbf16>
    %3 = vector.shape_cast %2 : vector<1x20x8xbf16> to vector<20x8xbf16>
    %cst = arith.constant dense<0.000000e+00> : vector<128x8xf32>
    %4 = tpu.matmul %1, %3, %cst {dimension_numbers = #tpu.dot_dimension_numbers<[1], [0], [0], [1], [0, 0, 1, 1], [], []>} : vector<128x20xbf16>, vector<20x8xbf16>, vector<128x8xf32> -> vector<128x8xf32>
    %c0_5 = arith.constant 0 : index
    %c0_6 = arith.constant 0 : index
    %c0_7 = arith.constant 0 : index
    %5 = vector.load %arg4[%c0_5, %c0_6, %c0_7] : memref<1x1x8xf32, #tpu.memory_space<vmem>>, vector<1x1x8xf32>
    %6 = vector.shape_cast %5 : vector<1x1x8xf32> to vector<1x8xf32>
    %7 = vector.broadcast %6 : vector<1x8xf32> to vector<128x8xf32>
    %8 = arith.addf %4, %7 : vector<128x8xf32>
    %c0_8 = arith.constant 0 : index
    %c0_9 = arith.constant 0 : index
    %c0_10 = arith.constant 0 : index
    %9 = vector.load %arg5[%c0_8, %c0_9, %c0_10] : memref<1x128x8xf32, #tpu.memory_space<vmem>>, vector<1x128x8xf32>
    %10 = vector.shape_cast %9 : vector<1x128x8xf32> to vector<128x8xf32>
    %11 = vector.shape_cast %8 : vector<128x8xf32> to vector<1x128x8xf32>
    tpu.vector_store %arg5[%c0_8, %c0_9, %c0_10], %11 {strides = array<i32>} : memref<1x128x8xf32, #tpu.memory_space<vmem>>, vector<1x128x8xf32>,
    return
  }
  func.func @transform_0(%arg0: i32, %arg1: i32) -> (i32, i32, i32) {
    %c0_i32 = arith.constant 0 : i32
    %c0_i32_0 = arith.constant 0 : i32
    return %arg0, %arg1, %c0_i32 : i32, i32, i32
  }
  func.func @transform_1(%arg0: i32, %arg1: i32) -> (i32, i32, i32) {
    %c0_i32 = arith.constant 0 : i32
    %c0_i32_0 = arith.constant 0 : i32
    %c0_i32_1 = arith.constant 0 : i32
    return %arg0, %c0_i32, %c0_i32_0 : i32, i32, i32
  }
  func.func @transform_2(%arg0: i32, %arg1: i32) -> (i32, i32, i32) {
    %c0_i32 = arith.constant 0 : i32
    %c0_i32_0 = arith.constant 0 : i32
    %c0_i32_1 = arith.constant 0 : i32
    return %arg0, %c0_i32, %c0_i32_0 : i32, i32, i32
  }
  func.func @transform_3(%arg0: i32, %arg1: i32) -> (i32, i32, i32) {
    %c0_i32 = arith.constant 0 : i32
    %c0_i32_0 = arith.constant 0 : i32
    return %arg0, %arg1, %c0_i32 : i32, i32, i32
  }
}

module attributes {stable_mosaic.version = 11 : i64} {
  func.func @_group_matmul_kernel(%arg0: i32, %arg1: i32, %arg2: memref<1x64x40xbf16, #tpu.memory_space<vmem>>, %arg3: memref<1x40x16xbf16, #tpu.memory_space<vmem>>, %arg4: memref<1x1x16xf32, #tpu.memory_space<vmem>>, %arg5: memref<1x64x16xf32, #tpu.memory_space<vmem>>) attributes {dimension_semantics = [#tpu.dimension_semantics<parallel>, #tpu.dimension_semantics<parallel>], iteration_bounds = array<i64: 4, 1>, scalar_prefetch = 0 : i64, scratch_operands = 0 : i64, tpu.core_type = #tpu.core_type<tc>, window_params = [{transform_indices = @transform_0, window_bounds = array<i64: 1, 64, 40>}, {transform_indices = @transform_1, window_bounds = array<i64: 1, 40, 16>}, {transform_indices = @transform_2, window_bounds = array<i64: 1, 1, 16>}, {transform_indices = @transform_3, window_bounds = array<i64: 1, 64, 16>}]} {
    %c0 = arith.constant 0 : index
    %c0_0 = arith.constant 0 : index
    %c0_1 = arith.constant 0 : index
    %0 = vector.load %arg2[%c0, %c0_0, %c0_1] : memref<1x64x40xbf16, #tpu.memory_space<vmem>>, vector<1x64x40xbf16>
    %1 = vector.shape_cast %0 : vector<1x64x40xbf16> to vector<64x40xbf16>
    %c0_2 = arith.constant 0 : index
    %c0_3 = arith.constant 0 : index
    %c0_4 = arith.constant 0 : index
    %2 = vector.load %arg3[%c0_2, %c0_3, %c0_4] : memref<1x40x16xbf16, #tpu.memory_space<vmem>>, vector<1x40x16xbf16>
    %3 = vector.shape_cast %2 : vector<1x40x16xbf16> to vector<40x16xbf16>
    %cst = arith.constant dense<0.000000e+00> : vector<64x16xf32>
    %4 = tpu.matmul %1, %3, %cst {dimension_numbers = #tpu.dot_dimension_numbers<[1], [0], [0], [1], [0, 0, 1, 1], [], []>} : vector<64x40xbf16>, vector<40x16xbf16>, vector<64x16xf32> -> vector<64x16xf32>
    %c0_5 = arith.constant 0 : index
    %c0_6 = arith.constant 0 : index
    %c0_7 = arith.constant 0 : index
    %5 = vector.load %arg4[%c0_5, %c0_6, %c0_7] : memref<1x1x16xf32, #tpu.memory_space<vmem>>, vector<1x1x16xf32>
    %6 = vector.shape_cast %5 : vector<1x1x16xf32> to vector<1x16xf32>
    %7 = vector.broadcast %6 : vector<1x16xf32> to vector<64x16xf32>
    %8 = arith.addf %4, %7 : vector<64x16xf32>
    %c0_8 = arith.constant 0 : index
    %c0_9 = arith.constant 0 : index
    %c0_10 = arith.constant 0 : index
    %9 = vector.load %arg5[%c0_8, %c0_9, %c0_10] : memref<1x64x16xf32, #tpu.memory_space<vmem>>, vector<1x64x16xf32>
    %10 = vector.shape_cast %9 : vector<1x64x16xf32> to vector<64x16xf32>
    %11 = vector.shape_cast %8 : vector<64x16xf32> to vector<1x64x16xf32>
    tpu.vector_store %arg5[%c0_8, %c0_9, %c0_10], %11 {strides = array<i32>} : memref<1x64x16xf32, #tpu.memory_space<vmem>>, vector<1x64x16xf32>,
    return
  }
  func.func @transform_0(%arg0: i32, %arg1: i32) -> (i32, i32, i32) {
    %c0_i32 = arith.constant 0 : i32
    %c0_i32_0 = arith.constant 0 : i32
    return %arg0, %arg1, %c0_i32 : i32, i32, i32
  }
  func.func @transform_1(%arg0: i32, %arg1: i32) -> (i32, i32, i32) {
    %c0_i32 = arith.constant 0 : i32
    %c0_i32_0 = arith.constant 0 : i32
    %c0_i32_1 = arith.constant 0 : i32
    return %arg0, %c0_i32, %c0_i32_0 : i32, i32, i32
  }
  func.func @transform_2(%arg0: i32, %arg1: i32) -> (i32, i32, i32) {
    %c0_i32 = arith.constant 0 : i32
    %c0_i32_0 = arith.constant 0 : i32
    %c0_i32_1 = arith.constant 0 : i32
    return %arg0, %c0_i32, %c0_i32_0 : i32, i32, i32
  }
  func.func @transform_3(%arg0: i32, %arg1: i32) -> (i32, i32, i32) {
    %c0_i32 = arith.constant 0 : i32
    %c0_i32_0 = arith.constant 0 : i32
    return %arg0, %arg1, %c0_i32 : i32, i32, i32
  }
}

module attributes {stable_mosaic.version = 11 : i64} {
  func.func @_group_matmul_kernel(%arg0: i32, %arg1: i32, %arg2: memref<1x32x80xbf16, #tpu.memory_space<vmem>>, %arg3: memref<1x80x32xbf16, #tpu.memory_space<vmem>>, %arg4: memref<1x1x32xf32, #tpu.memory_space<vmem>>, %arg5: memref<1x32x32xf32, #tpu.memory_space<vmem>>) attributes {dimension_semantics = [#tpu.dimension_semantics<parallel>, #tpu.dimension_semantics<parallel>], iteration_bounds = array<i64: 4, 1>, scalar_prefetch = 0 : i64, scratch_operands = 0 : i64, tpu.core_type = #tpu.core_type<tc>, window_params = [{transform_indices = @transform_0, window_bounds = array<i64: 1, 32, 80>}, {transform_indices = @transform_1, window_bounds = array<i64: 1, 80, 32>}, {transform_indices = @transform_2, window_bounds = array<i64: 1, 1, 32>}, {transform_indices = @transform_3, window_bounds = array<i64: 1, 32, 32>}]} {
    %c0 = arith.constant 0 : index
    %c0_0 = arith.constant 0 : index
    %c0_1 = arith.constant 0 : index
    %0 = vector.load %arg2[%c0, %c0_0, %c0_1] : memref<1x32x80xbf16, #tpu.memory_space<vmem>>, vector<1x32x80xbf16>
    %1 = vector.shape_cast %0 : vector<1x32x80xbf16> to vector<32x80xbf16>
    %c0_2 = arith.constant 0 : index
    %c0_3 = arith.constant 0 : index
    %c0_4 = arith.constant 0 : index
    %2 = vector.load %arg3[%c0_2, %c0_3, %c0_4] : memref<1x80x32xbf16, #tpu.memory_space<vmem>>, vector<1x80x32xbf16>
    %3 = vector.shape_cast %2 : vector<1x80x32xbf16> to vector<80x32xbf16>
    %cst = arith.constant dense<0.000000e+00> : vector<32x32xf32>
    %4 = tpu.matmul %1, %3, %cst {dimension_numbers = #tpu.dot_dimension_numbers<[1], [0], [0], [1], [0, 0, 1, 1], [], []>} : vector<32x80xbf16>, vector<80x32xbf16>, vector<32x32xf32> -> vector<32x32xf32>
    %c0_5 = arith.constant 0 : index
    %c0_6 = arith.constant 0 : index
    %c0_7 = arith.constant 0 : index
    %5 = vector.load %arg4[%c0_5, %c0_6, %c0_7] : memref<1x1x32xf32, #tpu.memory_space<vmem>>, vector<1x1x32xf32>
    %6 = vector.shape_cast %5 : vector<1x1x32xf32> to vector<1x32xf32>
    %7 = vector.broadcast %6 : vector<1x32xf32> to vector<32x32xf32>
    %8 = arith.addf %4, %7 : vector<32x32xf32>
    %c0_8 = arith.constant 0 : index
    %c0_9 = arith.constant 0 : index
    %c0_10 = arith.constant 0 : index
    %9 = vector.load %arg5[%c0_8, %c0_9, %c0_10] : memref<1x32x32xf32, #tpu.memory_space<vmem>>, vector<1x32x32xf32>
    %10 = vector.shape_cast %9 : vector<1x32x32xf32> to vector<32x32xf32>
    %11 = vector.shape_cast %8 : vector<32x32xf32> to vector<1x32x32xf32>
    tpu.vector_store %arg5[%c0_8, %c0_9, %c0_10], %11 {strides = array<i32>} : memref<1x32x32xf32, #tpu.memory_space<vmem>>, vector<1x32x32xf32>,
    return
  }
  func.func @transform_0(%arg0: i32, %arg1: i32) -> (i32, i32, i32) {
    %c0_i32 = arith.constant 0 : i32
    %c0_i32_0 = arith.constant 0 : i32
    return %arg0, %arg1, %c0_i32 : i32, i32, i32
  }
  func.func @transform_1(%arg0: i32, %arg1: i32) -> (i32, i32, i32) {
    %c0_i32 = arith.constant 0 : i32
    %c0_i32_0 = arith.constant 0 : i32
    %c0_i32_1 = arith.constant 0 : i32
    return %arg0, %c0_i32, %c0_i32_0 : i32, i32, i32
  }
  func.func @transform_2(%arg0: i32, %arg1: i32) -> (i32, i32, i32) {
    %c0_i32 = arith.constant 0 : i32
    %c0_i32_0 = arith.constant 0 : i32
    %c0_i32_1 = arith.constant 0 : i32
    return %arg0, %c0_i32, %c0_i32_0 : i32, i32, i32
  }
  func.func @transform_3(%arg0: i32, %arg1: i32) -> (i32, i32, i32) {
    %c0_i32 = arith.constant 0 : i32
    %c0_i32_0 = arith.constant 0 : i32
    return %arg0, %arg1, %c0_i32 : i32, i32, i32
  }
}

module attributes {stable_mosaic.version = 11 : i64} {
  func.func @_group_matmul_kernel(%arg0: i32, %arg1: i32, %arg2: memref<1x16x160xbf16, #tpu.memory_space<vmem>>, %arg3: memref<1x160x64xbf16, #tpu.memory_space<vmem>>, %arg4: memref<1x1x64xf32, #tpu.memory_space<vmem>>, %arg5: memref<1x16x64xf32, #tpu.memory_space<vmem>>) attributes {dimension_semantics = [#tpu.dimension_semantics<parallel>, #tpu.dimension_semantics<parallel>], iteration_bounds = array<i64: 4, 1>, scalar_prefetch = 0 : i64, scratch_operands = 0 : i64, tpu.core_type = #tpu.core_type<tc>, window_params = [{transform_indices = @transform_0, window_bounds = array<i64: 1, 16, 160>}, {transform_indices = @transform_1, window_bounds = array<i64: 1, 160, 64>}, {transform_indices = @transform_2, window_bounds = array<i64: 1, 1, 64>}, {transform_indices = @transform_3, window_bounds = array<i64: 1, 16, 64>}]} {
    %c0 = arith.constant 0 : index
    %c0_0 = arith.constant 0 : index
    %c0_1 = arith.constant 0 : index
    %0 = vector.load %arg2[%c0, %c0_0, %c0_1] : memref<1x16x160xbf16, #tpu.memory_space<vmem>>, vector<1x16x160xbf16>
    %1 = vector.shape_cast %0 : vector<1x16x160xbf16> to vector<16x160xbf16>
    %c0_2 = arith.constant 0 : index
    %c0_3 = arith.constant 0 : index
    %c0_4 = arith.constant 0 : index
    %2 = vector.load %arg3[%c0_2, %c0_3, %c0_4] : memref<1x160x64xbf16, #tpu.memory_space<vmem>>, vector<1x160x64xbf16>
    %3 = vector.shape_cast %2 : vector<1x160x64xbf16> to vector<160x64xbf16>
    %cst = arith.constant dense<0.000000e+00> : vector<16x64xf32>
    %4 = tpu.matmul %1, %3, %cst {dimension_numbers = #tpu.dot_dimension_numbers<[1], [0], [0], [1], [0, 0, 1, 1], [], []>} : vector<16x160xbf16>, vector<160x64xbf16>, vector<16x64xf32> -> vector<16x64xf32>
    %c0_5 = arith.constant 0 : index
    %c0_6 = arith.constant 0 : index
    %c0_7 = arith.constant 0 : index
    %5 = vector.load %arg4[%c0_5, %c0_6, %c0_7] : memref<1x1x64xf32, #tpu.memory_space<vmem>>, vector<1x1x64xf32>
    %6 = vector.shape_cast %5 : vector<1x1x64xf32> to vector<1x64xf32>
    %7 = vector.broadcast %6 : vector<1x64xf32> to vector<16x64xf32>
    %8 = arith.addf %4, %7 : vector<16x64xf32>
    %c0_8 = arith.constant 0 : index
    %c0_9 = arith.constant 0 : index
    %c0_10 = arith.constant 0 : index
    %9 = vector.load %arg5[%c0_8, %c0_9, %c0_10] : memref<1x16x64xf32, #tpu.memory_space<vmem>>, vector<1x16x64xf32>
    %10 = vector.shape_cast %9 : vector<1x16x64xf32> to vector<16x64xf32>
    %11 = vector.shape_cast %8 : vector<16x64xf32> to vector<1x16x64xf32>
    tpu.vector_store %arg5[%c0_8, %c0_9, %c0_10], %11 {strides = array<i32>} : memref<1x16x64xf32, #tpu.memory_space<vmem>>, vector<1x16x64xf32>,
    return
  }
  func.func @transform_0(%arg0: i32, %arg1: i32) -> (i32, i32, i32) {
    %c0_i32 = arith.constant 0 : i32
    %c0_i32_0 = arith.constant 0 : i32
    return %arg0, %arg1, %c0_i32 : i32, i32, i32
  }
  func.func @transform_1(%arg0: i32, %arg1: i32) -> (i32, i32, i32) {
    %c0_i32 = arith.constant 0 : i32
    %c0_i32_0 = arith.constant 0 : i32
    %c0_i32_1 = arith.constant 0 : i32
    return %arg0, %c0_i32, %c0_i32_0 : i32, i32, i32
  }
  func.func @transform_2(%arg0: i32, %arg1: i32) -> (i32, i32, i32) {
    %c0_i32 = arith.constant 0 : i32
    %c0_i32_0 = arith.constant 0 : i32
    %c0_i32_1 = arith.constant 0 : i32
    return %arg0, %c0_i32, %c0_i32_0 : i32, i32, i32
  }
  func.func @transform_3(%arg0: i32, %arg1: i32) -> (i32, i32, i32) {
    %c0_i32 = arith.constant 0 : i32
    %c0_i32_0 = arith.constant 0 : i32
    return %arg0, %arg1, %c0_i32 : i32, i32, i32
  }
}

module attributes {stable_mosaic.version = 11 : i64} {
  func.func @_group_matmul_kernel(%arg0: i32, %arg1: i32, %arg2: memref<1x8x320xbf16, #tpu.memory_space<vmem>>, %arg3: memref<1x320x128xbf16, #tpu.memory_space<vmem>>, %arg4: memref<1x1x128xf32, #tpu.memory_space<vmem>>, %arg5: memref<1x8x128xf32, #tpu.memory_space<vmem>>) attributes {dimension_semantics = [#tpu.dimension_semantics<parallel>, #tpu.dimension_semantics<parallel>], iteration_bounds = array<i64: 4, 1>, scalar_prefetch = 0 : i64, scratch_operands = 0 : i64, tpu.core_type = #tpu.core_type<tc>, window_params = [{transform_indices = @transform_0, window_bounds = array<i64: 1, 8, 320>}, {transform_indices = @transform_1, window_bounds = array<i64: 1, 320, 128>}, {transform_indices = @transform_2, window_bounds = array<i64: 1, 1, 128>}, {transform_indices = @transform_3, window_bounds = array<i64: 1, 8, 128>}]} {
    %c0 = arith.constant 0 : index
    %c0_0 = arith.constant 0 : index
    %c0_1 = arith.constant 0 : index
    %0 = vector.load %arg2[%c0, %c0_0, %c0_1] : memref<1x8x320xbf16, #tpu.memory_space<vmem>>, vector<1x8x320xbf16>
    %1 = vector.shape_cast %0 : vector<1x8x320xbf16> to vector<8x320xbf16>
    %c0_2 = arith.constant 0 : index
    %c0_3 = arith.constant 0 : index
    %c0_4 = arith.constant 0 : index
    %2 = vector.load %arg3[%c0_2, %c0_3, %c0_4] : memref<1x320x128xbf16, #tpu.memory_space<vmem>>, vector<1x320x128xbf16>
    %3 = vector.shape_cast %2 : vector<1x320x128xbf16> to vector<320x128xbf16>
    %cst = arith.constant dense<0.000000e+00> : vector<8x128xf32>
    %4 = tpu.matmul %1, %3, %cst {dimension_numbers = #tpu.dot_dimension_numbers<[1], [0], [0], [1], [0, 0, 1, 1], [], []>} : vector<8x320xbf16>, vector<320x128xbf16>, vector<8x128xf32> -> vector<8x128xf32>
    %c0_5 = arith.constant 0 : index
    %c0_6 = arith.constant 0 : index
    %c0_7 = arith.constant 0 : index
    %5 = vector.load %arg4[%c0_5, %c0_6, %c0_7] : memref<1x1x128xf32, #tpu.memory_space<vmem>>, vector<1x1x128xf32>
    %6 = vector.shape_cast %5 : vector<1x1x128xf32> to vector<1x128xf32>
    %7 = vector.broadcast %6 : vector<1x128xf32> to vector<8x128xf32>
    %8 = arith.addf %4, %7 : vector<8x128xf32>
    %c0_8 = arith.constant 0 : index
    %c0_9 = arith.constant 0 : index
    %c0_10 = arith.constant 0 : index
    %9 = vector.load %arg5[%c0_8, %c0_9, %c0_10] : memref<1x8x128xf32, #tpu.memory_space<vmem>>, vector<1x8x128xf32>
    %10 = vector.shape_cast %9 : vector<1x8x128xf32> to vector<8x128xf32>
    %11 = vector.shape_cast %8 : vector<8x128xf32> to vector<1x8x128xf32>
    tpu.vector_store %arg5[%c0_8, %c0_9, %c0_10], %11 {strides = array<i32>} : memref<1x8x128xf32, #tpu.memory_space<vmem>>, vector<1x8x128xf32>,
    return
  }
  func.func @transform_0(%arg0: i32, %arg1: i32) -> (i32, i32, i32) {
    %c0_i32 = arith.constant 0 : i32
    %c0_i32_0 = arith.constant 0 : i32
    return %arg0, %arg1, %c0_i32 : i32, i32, i32
  }
  func.func @transform_1(%arg0: i32, %arg1: i32) -> (i32, i32, i32) {
    %c0_i32 = arith.constant 0 : i32
    %c0_i32_0 = arith.constant 0 : i32
    %c0_i32_1 = arith.constant 0 : i32
    return %arg0, %c0_i32, %c0_i32_0 : i32, i32, i32
  }
  func.func @transform_2(%arg0: i32, %arg1: i32) -> (i32, i32, i32) {
    %c0_i32 = arith.constant 0 : i32
    %c0_i32_0 = arith.constant 0 : i32
    %c0_i32_1 = arith.constant 0 : i32
    return %arg0, %c0_i32, %c0_i32_0 : i32, i32, i32
  }
  func.func @transform_3(%arg0: i32, %arg1: i32) -> (i32, i32, i32) {
    %c0_i32 = arith.constant 0 : i32
    %c0_i32_0 = arith.constant 0 : i32
    return %arg0, %arg1, %c0_i32 : i32, i32, i32
  }
}

module attributes {stable_mosaic.version = 11 : i64} {
  func.func @_group_matmul_kernel(%arg0: i32, %arg1: i32, %arg2: memref<1x8x128xf32, #tpu.memory_space<vmem>>, %arg3: memref<1x128x32xbf16, #tpu.memory_space<vmem>>, %arg4: memref<1x1x32xf32, #tpu.memory_space<vmem>>, %arg5: memref<1x8x32xf32, #tpu.memory_space<vmem>>) attributes {dimension_semantics = [#tpu.dimension_semantics<parallel>, #tpu.dimension_semantics<parallel>], iteration_bounds = array<i64: 4, 1>, scalar_prefetch = 0 : i64, scratch_operands = 0 : i64, tpu.core_type = #tpu.core_type<tc>, window_params = [{transform_indices = @transform_0, window_bounds = array<i64: 1, 8, 128>}, {transform_indices = @transform_1, window_bounds = array<i64: 1, 128, 32>}, {transform_indices = @transform_2, window_bounds = array<i64: 1, 1, 32>}, {transform_indices = @transform_3, window_bounds = array<i64: 1, 8, 32>}]} {
    %c0 = arith.constant 0 : index
    %c0_0 = arith.constant 0 : index
    %c0_1 = arith.constant 0 : index
    %0 = vector.load %arg2[%c0, %c0_0, %c0_1] : memref<1x8x128xf32, #tpu.memory_space<vmem>>, vector<1x8x128xf32>
    %1 = vector.shape_cast %0 : vector<1x8x128xf32> to vector<8x128xf32>
    %2 = arith.truncf %1 : vector<8x128xf32> to vector<8x128xbf16>
    %c0_2 = arith.constant 0 : index
    %c0_3 = arith.constant 0 : index
    %c0_4 = arith.constant 0 : index
    %3 = vector.load %arg3[%c0_2, %c0_3, %c0_4] : memref<1x128x32xbf16, #tpu.memory_space<vmem>>, vector<1x128x32xbf16>
    %4 = vector.shape_cast %3 : vector<1x128x32xbf16> to vector<128x32xbf16>
    %cst = arith.constant dense<0.000000e+00> : vector<8x32xf32>
    %5 = tpu.matmul %2, %4, %cst {dimension_numbers = #tpu.dot_dimension_numbers<[1], [0], [0], [1], [0, 0, 1, 1], [], []>} : vector<8x128xbf16>, vector<128x32xbf16>, vector<8x32xf32> -> vector<8x32xf32>
    %c0_5 = arith.constant 0 : index
    %c0_6 = arith.constant 0 : index
    %c0_7 = arith.constant 0 : index
    %6 = vector.load %arg4[%c0_5, %c0_6, %c0_7] : memref<1x1x32xf32, #tpu.memory_space<vmem>>, vector<1x1x32xf32>
    %7 = vector.shape_cast %6 : vector<1x1x32xf32> to vector<1x32xf32>
    %8 = vector.broadcast %7 : vector<1x32xf32> to vector<8x32xf32>
    %9 = arith.addf %5, %8 : vector<8x32xf32>
    %c0_8 = arith.constant 0 : index
    %c0_9 = arith.constant 0 : index
    %c0_10 = arith.constant 0 : index
    %10 = vector.load %arg5[%c0_8, %c0_9, %c0_10] : memref<1x8x32xf32, #tpu.memory_space<vmem>>, vector<1x8x32xf32>
    %11 = vector.shape_cast %10 : vector<1x8x32xf32> to vector<8x32xf32>
    %12 = vector.shape_cast %9 : vector<8x32xf32> to vector<1x8x32xf32>
    tpu.vector_store %arg5[%c0_8, %c0_9, %c0_10], %12 {strides = array<i32>} : memref<1x8x32xf32, #tpu.memory_space<vmem>>, vector<1x8x32xf32>,
    return
  }
  func.func @transform_0(%arg0: i32, %arg1: i32) -> (i32, i32, i32) {
    %c0_i32 = arith.constant 0 : i32
    %c0_i32_0 = arith.constant 0 : i32
    return %arg0, %arg1, %c0_i32 : i32, i32, i32
  }
  func.func @transform_1(%arg0: i32, %arg1: i32) -> (i32, i32, i32) {
    %c0_i32 = arith.constant 0 : i32
    %c0_i32_0 = arith.constant 0 : i32
    %c0_i32_1 = arith.constant 0 : i32
    return %arg0, %c0_i32, %c0_i32_0 : i32, i32, i32
  }
  func.func @transform_2(%arg0: i32, %arg1: i32) -> (i32, i32, i32) {
    %c0_i32 = arith.constant 0 : i32
    %c0_i32_0 = arith.constant 0 : i32
    %c0_i32_1 = arith.constant 0 : i32
    return %arg0, %c0_i32, %c0_i32_0 : i32, i32, i32
  }
  func.func @transform_3(%arg0: i32, %arg1: i32) -> (i32, i32, i32) {
    %c0_i32 = arith.constant 0 : i32
    %c0_i32_0 = arith.constant 0 : i32
    return %arg0, %arg1, %c0_i32 : i32, i32, i32
  }
}

module attributes {stable_mosaic.version = 11 : i64} {
  func.func @_fused_linear_kernel(%arg0: i32, %arg1: memref<32x32xf32, #tpu.memory_space<vmem>>, %arg2: memref<1x32xf32, #tpu.memory_space<vmem>>, %arg3: memref<1x32xf32, #tpu.memory_space<vmem>>, %arg4: memref<32x96xbf16, #tpu.memory_space<vmem>>, %arg5: memref<1x96xf32, #tpu.memory_space<vmem>>, %arg6: memref<32x96xf32, #tpu.memory_space<vmem>>) attributes {dimension_semantics = [#tpu.dimension_semantics<parallel>], iteration_bounds = array<i64: 1>, scalar_prefetch = 0 : i64, scratch_operands = 0 : i64, tpu.core_type = #tpu.core_type<tc>, window_params = [{transform_indices = @transform_0, window_bounds = array<i64: 32, 32>}, {pipeline_mode = #tpu.pipeline_mode<synchronous>, transform_indices = @transform_1, window_bounds = array<i64: 1, 32>}, {pipeline_mode = #tpu.pipeline_mode<synchronous>, transform_indices = @transform_2, window_bounds = array<i64: 1, 32>}, {pipeline_mode = #tpu.pipeline_mode<synchronous>, transform_indices = @transform_3, window_bounds = array<i64: 32, 96>}, {pipeline_mode = #tpu.pipeline_mode<synchronous>, transform_indices = @transform_4, window_bounds = array<i64: 1, 96>}, {transform_indices = @transform_5, window_bounds = array<i64: 32, 96>}]} {
    %c0 = arith.constant 0 : index
    %c0_0 = arith.constant 0 : index
    %0 = vector.load %arg1[%c0, %c0_0] : memref<32x32xf32, #tpu.memory_space<vmem>>, vector<32x32xf32>
    %c0_1 = arith.constant 0 : index
    %c0_2 = arith.constant 0 : index
    %1 = vector.load %arg2[%c0_1, %c0_2] : memref<1x32xf32, #tpu.memory_space<vmem>>, vector<1x32xf32>
    %c0_3 = arith.constant 0 : index
    %c0_4 = arith.constant 0 : index
    %2 = vector.load %arg3[%c0_3, %c0_4] : memref<1x32xf32, #tpu.memory_space<vmem>>, vector<1x32xf32>
    %cst = arith.constant dense<0.000000e+00> : vector<32xf32>
    %3 = vector.multi_reduction <add>, %0, %cst [1] : vector<32x32xf32> to vector<32xf32>
    %4 = vector.shape_cast %3 : vector<32xf32> to vector<32x1xf32>
    %cst_5 = arith.constant 3.200000e+01 : f32
    %5 = vector.broadcast %cst_5 : f32 to vector<32x1xf32>
    %6 = arith.divf %4, %5 : vector<32x1xf32>
    %7 = vector.broadcast %6 : vector<32x1xf32> to vector<32x32xf32>
    %8 = arith.subf %0, %7 : vector<32x32xf32>
    %9 = arith.mulf %8, %8 : vector<32x32xf32>
    %cst_6 = arith.constant dense<0.000000e+00> : vector<32xf32>
    %10 = vector.multi_reduction <add>, %9, %cst_6 [1] : vector<32x32xf32> to vector<32xf32>
    %11 = vector.shape_cast %10 : vector<32xf32> to vector<32x1xf32>
    %cst_7 = arith.constant 3.200000e+01 : f32
    %12 = vector.broadcast %cst_7 : f32 to vector<32x1xf32>
    %13 = arith.divf %11, %12 : vector<32x1xf32>
    %cst_8 = arith.constant 9.99999974E-6 : f32
    %14 = vector.broadcast %cst_8 : f32 to vector<32x1xf32>
    %15 = arith.addf %13, %14 : vector<32x1xf32>
    %16 = math.rsqrt %15 : vector<32x1xf32>
    %17 = vector.broadcast %16 : vector<32x1xf32> to vector<32x32xf32>
    %18 = arith.mulf %8, %17 : vector<32x32xf32>
    %19 = vector.broadcast %1 : vector<1x32xf32> to vector<32x32xf32>
    %20 = arith.mulf %18, %19 : vector<32x32xf32>
    %21 = vector.broadcast %2 : vector<1x32xf32> to vector<32x32xf32>
    %22 = arith.addf %20, %21 : vector<32x32xf32>
    %c0_9 = arith.constant 0 : index
    %c0_10 = arith.constant 0 : index
    %23 = vector.load %arg4[%c0_9, %c0_10] : memref<32x96xbf16, #tpu.memory_space<vmem>>, vector<32x96xbf16>
    %c0_11 = arith.constant 0 : index
    %c0_12 = arith.constant 0 : index
    %24 = vector.load %arg5[%c0_11, %c0_12] : memref<1x96xf32, #tpu.memory_space<vmem>>, vector<1x96xf32>
    %25 = arith.truncf %22 : vector<32x32xf32> to vector<32x32xbf16>
    %cst_13 = arith.constant dense<0.000000e+00> : vector<32x96xf32>
    %26 = tpu.matmul %25, %23, %cst_13 {dimension_numbers = #tpu.dot_dimension_numbers<[1], [0], [0], [1], [0, 0, 1, 1], [], []>} : vector<32x32xbf16>, vector<32x96xbf16>, vector<32x96xf32> -> vector<32x96xf32>
    %27 = vector.broadcast %24 : vector<1x96xf32> to vector<32x96xf32>
    %28 = arith.addf %26, %27 : vector<32x96xf32>
    %c0_14 = arith.constant 0 : index
    %c0_15 = arith.constant 0 : index
    %29 = vector.load %arg6[%c0_14, %c0_15] : memref<32x96xf32, #tpu.memory_space<vmem>>, vector<32x96xf32>
    tpu.vector_store %arg6[%c0_14, %c0_15], %28 {strides = array<i32>} : memref<32x96xf32, #tpu.memory_space<vmem>>, vector<32x96xf32>,
    return
  }
  func.func @transform_0(%arg0: i32) -> (i32, i32) {
    %c0_i32 = arith.constant 0 : i32
    %c0_i32_0 = arith.constant 0 : i32
    return %arg0, %c0_i32 : i32, i32
  }
  func.func @transform_1(%arg0: i32) -> (i32, i32) {
    %c0_i32 = arith.constant 0 : i32
    %c0_i32_0 = arith.constant 0 : i32
    %c0_i32_1 = arith.constant 0 : i32
    return %c0_i32, %c0_i32_0 : i32, i32
  }
  func.func @transform_2(%arg0: i32) -> (i32, i32) {
    %c0_i32 = arith.constant 0 : i32
    %c0_i32_0 = arith.constant 0 : i32
    %c0_i32_1 = arith.constant 0 : i32
    return %c0_i32, %c0_i32_0 : i32, i32
  }
  func.func @transform_3(%arg0: i32) -> (i32, i32) {
    %c0_i32 = arith.constant 0 : i32
    %c0_i32_0 = arith.constant 0 : i32
    %c0_i32_1 = arith.constant 0 : i32
    return %c0_i32, %c0_i32_0 : i32, i32
  }
  func.func @transform_4(%arg0: i32) -> (i32, i32) {
    %c0_i32 = arith.constant 0 : i32
    %c0_i32_0 = arith.constant 0 : i32
    %c0_i32_1 = arith.constant 0 : i32
    return %c0_i32, %c0_i32_0 : i32, i32
  }
  func.func @transform_5(%arg0: i32) -> (i32, i32) {
    %c0_i32 = arith.constant 0 : i32
    %c0_i32_0 = arith.constant 0 : i32
    return %arg0, %c0_i32 : i32, i32
  }
}

module attributes {stable_mosaic.version = 11 : i64} {
  func.func @_attn_kernel(%arg0: i32, %arg1: memref<32x4x8xf32, #tpu.memory_space<vmem>>, %arg2: memref<32x4x8xf32, #tpu.memory_space<vmem>>, %arg3: memref<32x4x8xf32, #tpu.memory_space<vmem>>, %arg4: memref<32x4x8xf32, #tpu.memory_space<vmem>>) attributes {dimension_semantics = [#tpu.dimension_semantics<parallel>], iteration_bounds = array<i64: 1>, scalar_prefetch = 0 : i64, scratch_operands = 0 : i64, tpu.core_type = #tpu.core_type<tc>, window_params = [{transform_indices = @transform_0, window_bounds = array<i64: 32, 4, 8>}, {transform_indices = @transform_1, window_bounds = array<i64: 32, 4, 8>}, {transform_indices = @transform_2, window_bounds = array<i64: 32, 4, 8>}, {transform_indices = @transform_3, window_bounds = array<i64: 32, 4, 8>}]} {
    %c0 = arith.constant 0 : index
    %c0_0 = arith.constant 0 : index
    %c0_1 = arith.constant 0 : index
    %0 = vector.load %arg1[%c0, %c0_0, %c0_1] : memref<32x4x8xf32, #tpu.memory_space<vmem>>, vector<32x4x8xf32>
    %1 = arith.truncf %0 : vector<32x4x8xf32> to vector<32x4x8xbf16>
    %c0_2 = arith.constant 0 : index
    %c0_3 = arith.constant 0 : index
    %c0_4 = arith.constant 0 : index
    %2 = vector.load %arg2[%c0_2, %c0_3, %c0_4] : memref<32x4x8xf32, #tpu.memory_space<vmem>>, vector<32x4x8xf32>
    %3 = arith.truncf %2 : vector<32x4x8xf32> to vector<32x4x8xbf16>
    "tpu.trace_start"() <{level = 10 : i32, message = "bqd,bkd->bqk"}> : () -> ()
    %cst = arith.constant dense<0.000000e+00> : vector<32x4x4xf32>
    %4 = tpu.matmul %1, %3, %cst {dimension_numbers = #tpu.dot_dimension_numbers<[2], [2], [1], [1], [0, 0, 0, 1, 1, 1], [0], [0]>} : vector<32x4x8xbf16>, vector<32x4x8xbf16>, vector<32x4x4xf32> -> vector<32x4x4xf32>
    "tpu.trace_stop"() : () -> ()
    %cst_5 = arith.constant 0.353553385 : f32
    %5 = vector.broadcast %cst_5 : f32 to vector<32x4x4xf32>
    %6 = arith.mulf %4, %5 : vector<32x4x4xf32>
    %cst_6 = arith.constant dense<0xFF800000> : vector<32x4xf32>
    %7 = vector.multi_reduction <maximumf>, %6, %cst_6 [2] : vector<32x4x4xf32> to vector<32x4xf32>
    %8 = vector.shape_cast %7 : vector<32x4xf32> to vector<32x4x1xf32>
    %9 = vector.broadcast %8 : vector<32x4x1xf32> to vector<32x4x4xf32>
    %10 = arith.subf %6, %9 : vector<32x4x4xf32>
    %11 = math.exp %10 : vector<32x4x4xf32>
    %cst_7 = arith.constant dense<0.000000e+00> : vector<32x4xf32>
    %12 = vector.multi_reduction <add>, %11, %cst_7 [2] : vector<32x4x4xf32> to vector<32x4xf32>
    %13 = vector.shape_cast %12 : vector<32x4xf32> to vector<32x4x1xf32>
    %14 = tpu.reciprocal %13 {approx = true} : vector<32x4x1xf32> -> vector<32x4x1xf32>
    %15 = vector.broadcast %14 : vector<32x4x1xf32> to vector<32x4x4xf32>
    %16 = arith.mulf %11, %15 : vector<32x4x4xf32>
    %17 = arith.truncf %16 : vector<32x4x4xf32> to vector<32x4x4xbf16>
    %c0_8 = arith.constant 0 : index
    %c0_9 = arith.constant 0 : index
    %c0_10 = arith.constant 0 : index
    %18 = vector.load %arg3[%c0_8, %c0_9, %c0_10] : memref<32x4x8xf32, #tpu.memory_space<vmem>>, vector<32x4x8xf32>
    %19 = arith.truncf %18 : vector<32x4x8xf32> to vector<32x4x8xbf16>
    "tpu.trace_start"() <{level = 10 : i32, message = "bqk,bkd->bqd"}> : () -> ()
    %cst_11 = arith.constant dense<0.000000e+00> : vector<32x4x8xf32>
    %20 = tpu.matmul %17, %19, %cst_11 {dimension_numbers = #tpu.dot_dimension_numbers<[2], [1], [1], [2], [0, 0, 0, 1, 1, 2], [0], [0]>} : vector<32x4x4xbf16>, vector<32x4x8xbf16>, vector<32x4x8xf32> -> vector<32x4x8xf32>
    "tpu.trace_stop"() : () -> ()
    %c0_12 = arith.constant 0 : index
    %c0_13 = arith.constant 0 : index
    %c0_14 = arith.constant 0 : index
    %21 = vector.load %arg4[%c0_12, %c0_13, %c0_14] : memref<32x4x8xf32, #tpu.memory_space<vmem>>, vector<32x4x8xf32>
    tpu.vector_store %arg4[%c0_12, %c0_13, %c0_14], %20 {strides = array<i32>} : memref<32x4x8xf32, #tpu.memory_space<vmem>>, vector<32x4x8xf32>,
    return
  }
  func.func @transform_0(%arg0: i32) -> (i32, i32, i32) {
    %c0_i32 = arith.constant 0 : i32
    %c0_i32_0 = arith.constant 0 : i32
    %c0_i32_1 = arith.constant 0 : i32
    return %arg0, %c0_i32, %c0_i32_0 : i32, i32, i32
  }
  func.func @transform_1(%arg0: i32) -> (i32, i32, i32) {
    %c0_i32 = arith.constant 0 : i32
    %c0_i32_0 = arith.constant 0 : i32
    %c0_i32_1 = arith.constant 0 : i32
    return %arg0, %c0_i32, %c0_i32_0 : i32, i32, i32
  }
  func.func @transform_2(%arg0: i32) -> (i32, i32, i32) {
    %c0_i32 = arith.constant 0 : i32
    %c0_i32_0 = arith.constant 0 : i32
    %c0_i32_1 = arith.constant 0 : i32
    return %arg0, %c0_i32, %c0_i32_0 : i32, i32, i32
  }
  func.func @transform_3(%arg0: i32) -> (i32, i32, i32) {
    %c0_i32 = arith.constant 0 : i32
    %c0_i32_0 = arith.constant 0 : i32
    %c0_i32_1 = arith.constant 0 : i32
    return %arg0, %c0_i32, %c0_i32_0 : i32, i32, i32
  }
}

module attributes {stable_mosaic.version = 11 : i64} {
  func.func @_fused_linear_kernel(%arg0: i32, %arg1: memref<32x32xf32, #tpu.memory_space<vmem>>, %arg2: memref<32x32xbf16, #tpu.memory_space<vmem>>, %arg3: memref<1x32xf32, #tpu.memory_space<vmem>>, %arg4: memref<32x32xf32, #tpu.memory_space<vmem>>, %arg5: memref<32x32xf32, #tpu.memory_space<vmem>>) attributes {dimension_semantics = [#tpu.dimension_semantics<parallel>], iteration_bounds = array<i64: 1>, scalar_prefetch = 0 : i64, scratch_operands = 0 : i64, tpu.core_type = #tpu.core_type<tc>, window_params = [{transform_indices = @transform_0, window_bounds = array<i64: 32, 32>}, {pipeline_mode = #tpu.pipeline_mode<synchronous>, transform_indices = @transform_1, window_bounds = array<i64: 32, 32>}, {pipeline_mode = #tpu.pipeline_mode<synchronous>, transform_indices = @transform_2, window_bounds = array<i64: 1, 32>}, {transform_indices = @transform_3, window_bounds = array<i64: 32, 32>}, {transform_indices = @transform_4, window_bounds = array<i64: 32, 32>}]} {
    %c0 = arith.constant 0 : index
    %c0_0 = arith.constant 0 : index
    %0 = vector.load %arg1[%c0, %c0_0] : memref<32x32xf32, #tpu.memory_space<vmem>>, vector<32x32xf32>
    %c0_1 = arith.constant 0 : index
    %c0_2 = arith.constant 0 : index
    %1 = vector.load %arg2[%c0_1, %c0_2] : memref<32x32xbf16, #tpu.memory_space<vmem>>, vector<32x32xbf16>
    %c0_3 = arith.constant 0 : index
    %c0_4 = arith.constant 0 : index
    %2 = vector.load %arg3[%c0_3, %c0_4] : memref<1x32xf32, #tpu.memory_space<vmem>>, vector<1x32xf32>
    %3 = arith.truncf %0 : vector<32x32xf32> to vector<32x32xbf16>
    %cst = arith.constant dense<0.000000e+00> : vector<32x32xf32>
    %4 = tpu.matmul %3, %1, %cst {dimension_numbers = #tpu.dot_dimension_numbers<[1], [0], [0], [1], [0, 0, 1, 1], [], []>} : vector<32x32xbf16>, vector<32x32xbf16>, vector<32x32xf32> -> vector<32x32xf32>
    %5 = vector.broadcast %2 : vector<1x32xf32> to vector<32x32xf32>
    %6 = arith.addf %4, %5 : vector<32x32xf32>
    %c0_5 = arith.constant 0 : index
    %c0_6 = arith.constant 0 : index
    %7 = vector.load %arg4[%c0_5, %c0_6] : memref<32x32xf32, #tpu.memory_space<vmem>>, vector<32x32xf32>
    %8 = arith.addf %6, %7 : vector<32x32xf32>
    %c0_7 = arith.constant 0 : index
    %c0_8 = arith.constant 0 : index
    %9 = vector.load %arg5[%c0_7, %c0_8] : memref<32x32xf32, #tpu.memory_space<vmem>>, vector<32x32xf32>
    tpu.vector_store %arg5[%c0_7, %c0_8], %8 {strides = array<i32>} : memref<32x32xf32, #tpu.memory_space<vmem>>, vector<32x32xf32>,
    return
  }
  func.func @transform_0(%arg0: i32) -> (i32, i32) {
    %c0_i32 = arith.constant 0 : i32
    %c0_i32_0 = arith.constant 0 : i32
    return %arg0, %c0_i32 : i32, i32
  }
  func.func @transform_1(%arg0: i32) -> (i32, i32) {
    %c0_i32 = arith.constant 0 : i32
    %c0_i32_0 = arith.constant 0 : i32
    %c0_i32_1 = arith.constant 0 : i32
    return %c0_i32, %c0_i32_0 : i32, i32
  }
  func.func @transform_2(%arg0: i32) -> (i32, i32) {
    %c0_i32 = arith.constant 0 : i32
    %c0_i32_0 = arith.constant 0 : i32
    %c0_i32_1 = arith.constant 0 : i32
    return %c0_i32, %c0_i32_0 : i32, i32
  }
  func.func @transform_3(%arg0: i32) -> (i32, i32) {
    %c0_i32 = arith.constant 0 : i32
    %c0_i32_0 = arith.constant 0 : i32
    return %arg0, %c0_i32 : i32, i32
  }
  func.func @transform_4(%arg0: i32) -> (i32, i32) {
    %c0_i32 = arith.constant 0 : i32
    %c0_i32_0 = arith.constant 0 : i32
    return %arg0, %c0_i32 : i32, i32
  }
}

module attributes {stable_mosaic.version = 11 : i64} {
  func.func @_ffn_kernel(%arg0: i32, %arg1: memref<32x32xf32, #tpu.memory_space<vmem>>, %arg2: memref<1x32xf32, #tpu.memory_space<vmem>>, %arg3: memref<1x32xf32, #tpu.memory_space<vmem>>, %arg4: memref<32x64xbf16, #tpu.memory_space<vmem>>, %arg5: memref<1x64xf32, #tpu.memory_space<vmem>>, %arg6: memref<64x32xbf16, #tpu.memory_space<vmem>>, %arg7: memref<1x32xf32, #tpu.memory_space<vmem>>, %arg8: memref<32x32xf32, #tpu.memory_space<vmem>>) attributes {dimension_semantics = [#tpu.dimension_semantics<parallel>], iteration_bounds = array<i64: 1>, scalar_prefetch = 0 : i64, scratch_operands = 0 : i64, tpu.core_type = #tpu.core_type<tc>, window_params = [{transform_indices = @transform_0, window_bounds = array<i64: 32, 32>}, {pipeline_mode = #tpu.pipeline_mode<synchronous>, transform_indices = @transform_1, window_bounds = array<i64: 1, 32>}, {pipeline_mode = #tpu.pipeline_mode<synchronous>, transform_indices = @transform_2, window_bounds = array<i64: 1, 32>}, {pipeline_mode = #tpu.pipeline_mode<synchronous>, transform_indices = @transform_3, window_bounds = array<i64: 32, 64>}, {pipeline_mode = #tpu.pipeline_mode<synchronous>, transform_indices = @transform_4, window_bounds = array<i64: 1, 64>}, {pipeline_mode = #tpu.pipeline_mode<synchronous>, transform_indices = @transform_5, window_bounds = array<i64: 64, 32>}, {pipeline_mode = #tpu.pipeline_mode<synchronous>, transform_indices = @transform_6, window_bounds = array<i64: 1, 32>}, {transform_indices = @transform_7, window_bounds = array<i64: 32, 32>}]} {
    %c0 = arith.constant 0 : index
    %c0_0 = arith.constant 0 : index
    %0 = vector.load %arg1[%c0, %c0_0] : memref<32x32xf32, #tpu.memory_space<vmem>>, vector<32x32xf32>
    %c0_1 = arith.constant 0 : index
    %c0_2 = arith.constant 0 : index
    %1 = vector.load %arg2[%c0_1, %c0_2] : memref<1x32xf32, #tpu.memory_space<vmem>>, vector<1x32xf32>
    %c0_3 = arith.constant 0 : index
    %c0_4 = arith.constant 0 : index
    %2 = vector.load %arg3[%c0_3, %c0_4] : memref<1x32xf32, #tpu.memory_space<vmem>>, vector<1x32xf32>
    %cst = arith.constant dense<0.000000e+00> : vector<32xf32>
    %3 = vector.multi_reduction <add>, %0, %cst [1] : vector<32x32xf32> to vector<32xf32>
    %4 = vector.shape_cast %3 : vector<32xf32> to vector<32x1xf32>
    %cst_5 = arith.constant 3.200000e+01 : f32
    %5 = vector.broadcast %cst_5 : f32 to vector<32x1xf32>
    %6 = arith.divf %4, %5 : vector<32x1xf32>
    %7 = vector.broadcast %6 : vector<32x1xf32> to vector<32x32xf32>
    %8 = arith.subf %0, %7 : vector<32x32xf32>
    %9 = arith.mulf %8, %8 : vector<32x32xf32>
    %cst_6 = arith.constant dense<0.000000e+00> : vector<32xf32>
    %10 = vector.multi_reduction <add>, %9, %cst_6 [1] : vector<32x32xf32> to vector<32xf32>
    %11 = vector.shape_cast %10 : vector<32xf32> to vector<32x1xf32>
    %cst_7 = arith.constant 3.200000e+01 : f32
    %12 = vector.broadcast %cst_7 : f32 to vector<32x1xf32>
    %13 = arith.divf %11, %12 : vector<32x1xf32>
    %cst_8 = arith.constant 9.99999974E-6 : f32
    %14 = vector.broadcast %cst_8 : f32 to vector<32x1xf32>
    %15 = arith.addf %13, %14 : vector<32x1xf32>
    %16 = math.rsqrt %15 : vector<32x1xf32>
    %17 = vector.broadcast %16 : vector<32x1xf32> to vector<32x32xf32>
    %18 = arith.mulf %8, %17 : vector<32x32xf32>
    %19 = vector.broadcast %1 : vector<1x32xf32> to vector<32x32xf32>
    %20 = arith.mulf %18, %19 : vector<32x32xf32>
    %21 = vector.broadcast %2 : vector<1x32xf32> to vector<32x32xf32>
    %22 = arith.addf %20, %21 : vector<32x32xf32>
    %23 = arith.truncf %22 : vector<32x32xf32> to vector<32x32xbf16>
    %c0_9 = arith.constant 0 : index
    %c0_10 = arith.constant 0 : index
    %24 = vector.load %arg4[%c0_9, %c0_10] : memref<32x64xbf16, #tpu.memory_space<vmem>>, vector<32x64xbf16>
    %cst_11 = arith.constant dense<0.000000e+00> : vector<32x64xf32>
    %25 = tpu.matmul %23, %24, %cst_11 {dimension_numbers = #tpu.dot_dimension_numbers<[1], [0], [0], [1], [0, 0, 1, 1], [], []>} : vector<32x32xbf16>, vector<32x64xbf16>, vector<32x64xf32> -> vector<32x64xf32>
    %c0_12 = arith.constant 0 : index
    %c0_13 = arith.constant 0 : index
    %26 = vector.load %arg5[%c0_12, %c0_13] : memref<1x64xf32, #tpu.memory_space<vmem>>, vector<1x64xf32>
    %27 = vector.broadcast %26 : vector<1x64xf32> to vector<32x64xf32>
    %28 = arith.addf %25, %27 : vector<32x64xf32>
    %cst_14 = arith.constant 0.000000e+00 : f32
    %29 = vector.broadcast %cst_14 : f32 to vector<32x64xf32>
    %30 = arith.maximumf %28, %29 : vector<32x64xf32>
    %31 = arith.truncf %30 : vector<32x64xf32> to vector<32x64xbf16>
    %c0_15 = arith.constant 0 : index
    %c0_16 = arith.constant 0 : index
    %32 = vector.load %arg6[%c0_15, %c0_16] : memref<64x32xbf16, #tpu.memory_space<vmem>>, vector<64x32xbf16>
    %cst_17 = arith.constant dense<0.000000e+00> : vector<32x32xf32>
    %33 = tpu.matmul %31, %32, %cst_17 {dimension_numbers = #tpu.dot_dimension_numbers<[1], [0], [0], [1], [0, 0, 1, 1], [], []>} : vector<32x64xbf16>, vector<64x32xbf16>, vector<32x32xf32> -> vector<32x32xf32>
    %34 = arith.addf %0, %33 : vector<32x32xf32>
    %c0_18 = arith.constant 0 : index
    %c0_19 = arith.constant 0 : index
    %35 = vector.load %arg7[%c0_18, %c0_19] : memref<1x32xf32, #tpu.memory_space<vmem>>, vector<1x32xf32>
    %36 = vector.broadcast %35 : vector<1x32xf32> to vector<32x32xf32>
    %37 = arith.addf %34, %36 : vector<32x32xf32>
    %c0_20 = arith.constant 0 : index
    %c0_21 = arith.constant 0 : index
    %38 = vector.load %arg8[%c0_20, %c0_21] : memref<32x32xf32, #tpu.memory_space<vmem>>, vector<32x32xf32>
    tpu.vector_store %arg8[%c0_20, %c0_21], %37 {strides = array<i32>} : memref<32x32xf32, #tpu.memory_space<vmem>>, vector<32x32xf32>,
    return
  }
  func.func @transform_0(%arg0: i32) -> (i32, i32) {
    %c0_i32 = arith.constant 0 : i32
    %c0_i32_0 = arith.constant 0 : i32
    return %arg0, %c0_i32 : i32, i32
  }
  func.func @transform_1(%arg0: i32) -> (i32, i32) {
    %c0_i32 = arith.constant 0 : i32
    %c0_i32_0 = arith.constant 0 : i32
    %c0_i32_1 = arith.constant 0 : i32
    return %c0_i32, %c0_i32_0 : i32, i32
  }
  func.func @transform_2(%arg0: i32) -> (i32, i32) {
    %c0_i32 = arith.constant 0 : i32
    %c0_i32_0 = arith.constant 0 : i32
    %c0_i32_1 = arith.constant 0 : i32
    return %c0_i32, %c0_i32_0 : i32, i32
  }
  func.func @transform_3(%arg0: i32) -> (i32, i32) {
    %c0_i32 = arith.constant 0 : i32
    %c0_i32_0 = arith.constant 0 : i32
    %c0_i32_1 = arith.constant 0 : i32
    return %c0_i32, %c0_i32_0 : i32, i32
  }
  func.func @transform_4(%arg0: i32) -> (i32, i32) {
    %c0_i32 = arith.constant 0 : i32
    %c0_i32_0 = arith.constant 0 : i32
    %c0_i32_1 = arith.constant 0 : i32
    return %c0_i32, %c0_i32_0 : i32, i32
  }
  func.func @transform_5(%arg0: i32) -> (i32, i32) {
    %c0_i32 = arith.constant 0 : i32
    %c0_i32_0 = arith.constant 0 : i32
    %c0_i32_1 = arith.constant 0 : i32
    return %c0_i32, %c0_i32_0 : i32, i32
  }
  func.func @transform_6(%arg0: i32) -> (i32, i32) {
    %c0_i32 = arith.constant 0 : i32
    %c0_i32_0 = arith.constant 0 : i32
    %c0_i32_1 = arith.constant 0 : i32
    return %c0_i32, %c0_i32_0 : i32, i32
  }
  func.func @transform_7(%arg0: i32) -> (i32, i32) {
    %c0_i32 = arith.constant 0 : i32
    %c0_i32_0 = arith.constant 0 : i32
    return %arg0, %c0_i32 : i32, i32
  }
}

module attributes {stable_mosaic.version = 11 : i64} {
  func.func @_fused_linear_kernel(%arg0: i32, %arg1: memref<32x32xf32, #tpu.memory_space<vmem>>, %arg2: memref<32x96xbf16, #tpu.memory_space<vmem>>, %arg3: memref<1x96xf32, #tpu.memory_space<vmem>>, %arg4: memref<32x96xf32, #tpu.memory_space<vmem>>) attributes {dimension_semantics = [#tpu.dimension_semantics<parallel>], iteration_bounds = array<i64: 1>, scalar_prefetch = 0 : i64, scratch_operands = 0 : i64, tpu.core_type = #tpu.core_type<tc>, window_params = [{transform_indices = @transform_0, window_bounds = array<i64: 32, 32>}, {pipeline_mode = #tpu.pipeline_mode<synchronous>, transform_indices = @transform_1, window_bounds = array<i64: 32, 96>}, {pipeline_mode = #tpu.pipeline_mode<synchronous>, transform_indices = @transform_2, window_bounds = array<i64: 1, 96>}, {transform_indices = @transform_3, window_bounds = array<i64: 32, 96>}]} {
    %c0 = arith.constant 0 : index
    %c0_0 = arith.constant 0 : index
    %0 = vector.load %arg1[%c0, %c0_0] : memref<32x32xf32, #tpu.memory_space<vmem>>, vector<32x32xf32>
    %c0_1 = arith.constant 0 : index
    %c0_2 = arith.constant 0 : index
    %1 = vector.load %arg2[%c0_1, %c0_2] : memref<32x96xbf16, #tpu.memory_space<vmem>>, vector<32x96xbf16>
    %c0_3 = arith.constant 0 : index
    %c0_4 = arith.constant 0 : index
    %2 = vector.load %arg3[%c0_3, %c0_4] : memref<1x96xf32, #tpu.memory_space<vmem>>, vector<1x96xf32>
    %3 = arith.truncf %0 : vector<32x32xf32> to vector<32x32xbf16>
    %cst = arith.constant dense<0.000000e+00> : vector<32x96xf32>
    %4 = tpu.matmul %3, %1, %cst {dimension_numbers = #tpu.dot_dimension_numbers<[1], [0], [0], [1], [0, 0, 1, 1], [], []>} : vector<32x32xbf16>, vector<32x96xbf16>, vector<32x96xf32> -> vector<32x96xf32>
    %5 = vector.broadcast %2 : vector<1x96xf32> to vector<32x96xf32>
    %6 = arith.addf %4, %5 : vector<32x96xf32>
    %c0_5 = arith.constant 0 : index
    %c0_6 = arith.constant 0 : index
    %7 = vector.load %arg4[%c0_5, %c0_6] : memref<32x96xf32, #tpu.memory_space<vmem>>, vector<32x96xf32>
    tpu.vector_store %arg4[%c0_5, %c0_6], %6 {strides = array<i32>} : memref<32x96xf32, #tpu.memory_space<vmem>>, vector<32x96xf32>,
    return
  }
  func.func @transform_0(%arg0: i32) -> (i32, i32) {
    %c0_i32 = arith.constant 0 : i32
    %c0_i32_0 = arith.constant 0 : i32
    return %arg0, %c0_i32 : i32, i32
  }
  func.func @transform_1(%arg0: i32) -> (i32, i32) {
    %c0_i32 = arith.constant 0 : i32
    %c0_i32_0 = arith.constant 0 : i32
    %c0_i32_1 = arith.constant 0 : i32
    return %c0_i32, %c0_i32_0 : i32, i32
  }
  func.func @transform_2(%arg0: i32) -> (i32, i32) {
    %c0_i32 = arith.constant 0 : i32
    %c0_i32_0 = arith.constant 0 : i32
    %c0_i32_1 = arith.constant 0 : i32
    return %c0_i32, %c0_i32_0 : i32, i32
  }
  func.func @transform_3(%arg0: i32) -> (i32, i32) {
    %c0_i32 = arith.constant 0 : i32
    %c0_i32_0 = arith.constant 0 : i32
    return %arg0, %c0_i32 : i32, i32
  }
}

module attributes {stable_mosaic.version = 11 : i64} {
  func.func @_fused_linear_kernel(%arg0: i32, %arg1: memref<32x32xf32, #tpu.memory_space<vmem>>, %arg2: memref<32x32xbf16, #tpu.memory_space<vmem>>, %arg3: memref<1x32xf32, #tpu.memory_space<vmem>>, %arg4: memref<32x32xf32, #tpu.memory_space<vmem>>, %arg5: memref<1x32xf32, #tpu.memory_space<vmem>>, %arg6: memref<1x32xf32, #tpu.memory_space<vmem>>, %arg7: memref<32x32xf32, #tpu.memory_space<vmem>>) attributes {dimension_semantics = [#tpu.dimension_semantics<parallel>], iteration_bounds = array<i64: 1>, scalar_prefetch = 0 : i64, scratch_operands = 0 : i64, tpu.core_type = #tpu.core_type<tc>, window_params = [{transform_indices = @transform_0, window_bounds = array<i64: 32, 32>}, {pipeline_mode = #tpu.pipeline_mode<synchronous>, transform_indices = @transform_1, window_bounds = array<i64: 32, 32>}, {pipeline_mode = #tpu.pipeline_mode<synchronous>, transform_indices = @transform_2, window_bounds = array<i64: 1, 32>}, {transform_indices = @transform_3, window_bounds = array<i64: 32, 32>}, {pipeline_mode = #tpu.pipeline_mode<synchronous>, transform_indices = @transform_4, window_bounds = array<i64: 1, 32>}, {pipeline_mode = #tpu.pipeline_mode<synchronous>, transform_indices = @transform_5, window_bounds = array<i64: 1, 32>}, {transform_indices = @transform_6, window_bounds = array<i64: 32, 32>}]} {
    %c0 = arith.constant 0 : index
    %c0_0 = arith.constant 0 : index
    %0 = vector.load %arg1[%c0, %c0_0] : memref<32x32xf32, #tpu.memory_space<vmem>>, vector<32x32xf32>
    %c0_1 = arith.constant 0 : index
    %c0_2 = arith.constant 0 : index
    %1 = vector.load %arg2[%c0_1, %c0_2] : memref<32x32xbf16, #tpu.memory_space<vmem>>, vector<32x32xbf16>
    %c0_3 = arith.constant 0 : index
    %c0_4 = arith.constant 0 : index
    %2 = vector.load %arg3[%c0_3, %c0_4] : memref<1x32xf32, #tpu.memory_space<vmem>>, vector<1x32xf32>
    %3 = arith.truncf %0 : vector<32x32xf32> to vector<32x32xbf16>
    %cst = arith.constant dense<0.000000e+00> : vector<32x32xf32>
    %4 = tpu.matmul %3, %1, %cst {dimension_numbers = #tpu.dot_dimension_numbers<[1], [0], [0], [1], [0, 0, 1, 1], [], []>} : vector<32x32xbf16>, vector<32x32xbf16>, vector<32x32xf32> -> vector<32x32xf32>
    %5 = vector.broadcast %2 : vector<1x32xf32> to vector<32x32xf32>
    %6 = arith.addf %4, %5 : vector<32x32xf32>
    %c0_5 = arith.constant 0 : index
    %c0_6 = arith.constant 0 : index
    %7 = vector.load %arg4[%c0_5, %c0_6] : memref<32x32xf32, #tpu.memory_space<vmem>>, vector<32x32xf32>
    %8 = arith.addf %6, %7 : vector<32x32xf32>
    %c0_7 = arith.constant 0 : index
    %c0_8 = arith.constant 0 : index
    %9 = vector.load %arg5[%c0_7, %c0_8] : memref<1x32xf32, #tpu.memory_space<vmem>>, vector<1x32xf32>
    %c0_9 = arith.constant 0 : index
    %c0_10 = arith.constant 0 : index
    %10 = vector.load %arg6[%c0_9, %c0_10] : memref<1x32xf32, #tpu.memory_space<vmem>>, vector<1x32xf32>
    %cst_11 = arith.constant dense<0.000000e+00> : vector<32xf32>
    %11 = vector.multi_reduction <add>, %8, %cst_11 [1] : vector<32x32xf32> to vector<32xf32>
    %12 = vector.shape_cast %11 : vector<32xf32> to vector<32x1xf32>
    %cst_12 = arith.constant 3.200000e+01 : f32
    %13 = vector.broadcast %cst_12 : f32 to vector<32x1xf32>
    %14 = arith.divf %12, %13 : vector<32x1xf32>
    %15 = vector.broadcast %14 : vector<32x1xf32> to vector<32x32xf32>
    %16 = arith.subf %8, %15 : vector<32x32xf32>
    %17 = arith.mulf %16, %16 : vector<32x32xf32>
    %cst_13 = arith.constant dense<0.000000e+00> : vector<32xf32>
    %18 = vector.multi_reduction <add>, %17, %cst_13 [1] : vector<32x32xf32> to vector<32xf32>
    %19 = vector.shape_cast %18 : vector<32xf32> to vector<32x1xf32>
    %cst_14 = arith.constant 3.200000e+01 : f32
    %20 = vector.broadcast %cst_14 : f32 to vector<32x1xf32>
    %21 = arith.divf %19, %20 : vector<32x1xf32>
    %cst_15 = arith.constant 9.99999974E-6 : f32
    %22 = vector.broadcast %cst_15 : f32 to vector<32x1xf32>
    %23 = arith.addf %21, %22 : vector<32x1xf32>
    %24 = math.rsqrt %23 : vector<32x1xf32>
    %25 = vector.broadcast %24 : vector<32x1xf32> to vector<32x32xf32>
    %26 = arith.mulf %16, %25 : vector<32x32xf32>
    %27 = vector.broadcast %9 : vector<1x32xf32> to vector<32x32xf32>
    %28 = arith.mulf %26, %27 : vector<32x32xf32>
    %29 = vector.broadcast %10 : vector<1x32xf32> to vector<32x32xf32>
    %30 = arith.addf %28, %29 : vector<32x32xf32>
    %c0_16 = arith.constant 0 : index
    %c0_17 = arith.constant 0 : index
    %31 = vector.load %arg7[%c0_16, %c0_17] : memref<32x32xf32, #tpu.memory_space<vmem>>, vector<32x32xf32>
    tpu.vector_store %arg7[%c0_16, %c0_17], %30 {strides = array<i32>} : memref<32x32xf32, #tpu.memory_space<vmem>>, vector<32x32xf32>,
    return
  }
  func.func @transform_0(%arg0: i32) -> (i32, i32) {
    %c0_i32 = arith.constant 0 : i32
    %c0_i32_0 = arith.constant 0 : i32
    return %arg0, %c0_i32 : i32, i32
  }
  func.func @transform_1(%arg0: i32) -> (i32, i32) {
    %c0_i32 = arith.constant 0 : i32
    %c0_i32_0 = arith.constant 0 : i32
    %c0_i32_1 = arith.constant 0 : i32
    return %c0_i32, %c0_i32_0 : i32, i32
  }
  func.func @transform_2(%arg0: i32) -> (i32, i32) {
    %c0_i32 = arith.constant 0 : i32
    %c0_i32_0 = arith.constant 0 : i32
    %c0_i32_1 = arith.constant 0 : i32
    return %c0_i32, %c0_i32_0 : i32, i32
  }
  func.func @transform_3(%arg0: i32) -> (i32, i32) {
    %c0_i32 = arith.constant 0 : i32
    %c0_i32_0 = arith.constant 0 : i32
    return %arg0, %c0_i32 : i32, i32
  }
  func.func @transform_4(%arg0: i32) -> (i32, i32) {
    %c0_i32 = arith.constant 0 : i32
    %c0_i32_0 = arith.constant 0 : i32
    %c0_i32_1 = arith.constant 0 : i32
    return %c0_i32, %c0_i32_0 : i32, i32
  }
  func.func @transform_5(%arg0: i32) -> (i32, i32) {
    %c0_i32 = arith.constant 0 : i32
    %c0_i32_0 = arith.constant 0 : i32
    %c0_i32_1 = arith.constant 0 : i32
    return %c0_i32, %c0_i32_0 : i32, i32
  }
  func.func @transform_6(%arg0: i32) -> (i32, i32) {
    %c0_i32 = arith.constant 0 : i32
    %c0_i32_0 = arith.constant 0 : i32
    return %arg0, %c0_i32 : i32, i32
  }
}

module attributes {stable_mosaic.version = 11 : i64} {
  func.func @_ffn_kernel(%arg0: i32, %arg1: memref<32x32xf32, #tpu.memory_space<vmem>>, %arg2: memref<32x64xbf16, #tpu.memory_space<vmem>>, %arg3: memref<1x64xf32, #tpu.memory_space<vmem>>, %arg4: memref<64x32xbf16, #tpu.memory_space<vmem>>, %arg5: memref<1x32xf32, #tpu.memory_space<vmem>>, %arg6: memref<1x32xf32, #tpu.memory_space<vmem>>, %arg7: memref<1x32xf32, #tpu.memory_space<vmem>>, %arg8: memref<32x32xf32, #tpu.memory_space<vmem>>) attributes {dimension_semantics = [#tpu.dimension_semantics<parallel>], iteration_bounds = array<i64: 1>, scalar_prefetch = 0 : i64, scratch_operands = 0 : i64, tpu.core_type = #tpu.core_type<tc>, window_params = [{transform_indices = @transform_0, window_bounds = array<i64: 32, 32>}, {pipeline_mode = #tpu.pipeline_mode<synchronous>, transform_indices = @transform_1, window_bounds = array<i64: 32, 64>}, {pipeline_mode = #tpu.pipeline_mode<synchronous>, transform_indices = @transform_2, window_bounds = array<i64: 1, 64>}, {pipeline_mode = #tpu.pipeline_mode<synchronous>, transform_indices = @transform_3, window_bounds = array<i64: 64, 32>}, {pipeline_mode = #tpu.pipeline_mode<synchronous>, transform_indices = @transform_4, window_bounds = array<i64: 1, 32>}, {pipeline_mode = #tpu.pipeline_mode<synchronous>, transform_indices = @transform_5, window_bounds = array<i64: 1, 32>}, {pipeline_mode = #tpu.pipeline_mode<synchronous>, transform_indices = @transform_6, window_bounds = array<i64: 1, 32>}, {transform_indices = @transform_7, window_bounds = array<i64: 32, 32>}]} {
    %c0 = arith.constant 0 : index
    %c0_0 = arith.constant 0 : index
    %0 = vector.load %arg1[%c0, %c0_0] : memref<32x32xf32, #tpu.memory_space<vmem>>, vector<32x32xf32>
    %1 = arith.truncf %0 : vector<32x32xf32> to vector<32x32xbf16>
    %c0_1 = arith.constant 0 : index
    %c0_2 = arith.constant 0 : index
    %2 = vector.load %arg2[%c0_1, %c0_2] : memref<32x64xbf16, #tpu.memory_space<vmem>>, vector<32x64xbf16>
    %cst = arith.constant dense<0.000000e+00> : vector<32x64xf32>
    %3 = tpu.matmul %1, %2, %cst {dimension_numbers = #tpu.dot_dimension_numbers<[1], [0], [0], [1], [0, 0, 1, 1], [], []>} : vector<32x32xbf16>, vector<32x64xbf16>, vector<32x64xf32> -> vector<32x64xf32>
    %c0_3 = arith.constant 0 : index
    %c0_4 = arith.constant 0 : index
    %4 = vector.load %arg3[%c0_3, %c0_4] : memref<1x64xf32, #tpu.memory_space<vmem>>, vector<1x64xf32>
    %5 = vector.broadcast %4 : vector<1x64xf32> to vector<32x64xf32>
    %6 = arith.addf %3, %5 : vector<32x64xf32>
    %cst_5 = arith.constant 0.000000e+00 : f32
    %7 = vector.broadcast %cst_5 : f32 to vector<32x64xf32>
    %8 = arith.maximumf %6, %7 : vector<32x64xf32>
    %9 = arith.truncf %8 : vector<32x64xf32> to vector<32x64xbf16>
    %c0_6 = arith.constant 0 : index
    %c0_7 = arith.constant 0 : index
    %10 = vector.load %arg4[%c0_6, %c0_7] : memref<64x32xbf16, #tpu.memory_space<vmem>>, vector<64x32xbf16>
    %cst_8 = arith.constant dense<0.000000e+00> : vector<32x32xf32>
    %11 = tpu.matmul %9, %10, %cst_8 {dimension_numbers = #tpu.dot_dimension_numbers<[1], [0], [0], [1], [0, 0, 1, 1], [], []>} : vector<32x64xbf16>, vector<64x32xbf16>, vector<32x32xf32> -> vector<32x32xf32>
    %12 = arith.addf %0, %11 : vector<32x32xf32>
    %c0_9 = arith.constant 0 : index
    %c0_10 = arith.constant 0 : index
    %13 = vector.load %arg5[%c0_9, %c0_10] : memref<1x32xf32, #tpu.memory_space<vmem>>, vector<1x32xf32>
    %14 = vector.broadcast %13 : vector<1x32xf32> to vector<32x32xf32>
    %15 = arith.addf %12, %14 : vector<32x32xf32>
    %c0_11 = arith.constant 0 : index
    %c0_12 = arith.constant 0 : index
    %16 = vector.load %arg6[%c0_11, %c0_12] : memref<1x32xf32, #tpu.memory_space<vmem>>, vector<1x32xf32>
    %c0_13 = arith.constant 0 : index
    %c0_14 = arith.constant 0 : index
    %17 = vector.load %arg7[%c0_13, %c0_14] : memref<1x32xf32, #tpu.memory_space<vmem>>, vector<1x32xf32>
    %cst_15 = arith.constant dense<0.000000e+00> : vector<32xf32>
    %18 = vector.multi_reduction <add>, %15, %cst_15 [1] : vector<32x32xf32> to vector<32xf32>
    %19 = vector.shape_cast %18 : vector<32xf32> to vector<32x1xf32>
    %cst_16 = arith.constant 3.200000e+01 : f32
    %20 = vector.broadcast %cst_16 : f32 to vector<32x1xf32>
    %21 = arith.divf %19, %20 : vector<32x1xf32>
    %22 = vector.broadcast %21 : vector<32x1xf32> to vector<32x32xf32>
    %23 = arith.subf %15, %22 : vector<32x32xf32>
    %24 = arith.mulf %23, %23 : vector<32x32xf32>
    %cst_17 = arith.constant dense<0.000000e+00> : vector<32xf32>
    %25 = vector.multi_reduction <add>, %24, %cst_17 [1] : vector<32x32xf32> to vector<32xf32>
    %26 = vector.shape_cast %25 : vector<32xf32> to vector<32x1xf32>
    %cst_18 = arith.constant 3.200000e+01 : f32
    %27 = vector.broadcast %cst_18 : f32 to vector<32x1xf32>
    %28 = arith.divf %26, %27 : vector<32x1xf32>
    %cst_19 = arith.constant 9.99999974E-6 : f32
    %29 = vector.broadcast %cst_19 : f32 to vector<32x1xf32>
    %30 = arith.addf %28, %29 : vector<32x1xf32>
    %31 = math.rsqrt %30 : vector<32x1xf32>
    %32 = vector.broadcast %31 : vector<32x1xf32> to vector<32x32xf32>
    %33 = arith.mulf %23, %32 : vector<32x32xf32>
    %34 = vector.broadcast %16 : vector<1x32xf32> to vector<32x32xf32>
    %35 = arith.mulf %33, %34 : vector<32x32xf32>
    %36 = vector.broadcast %17 : vector<1x32xf32> to vector<32x32xf32>
    %37 = arith.addf %35, %36 : vector<32x32xf32>
    %c0_20 = arith.constant 0 : index
    %c0_21 = arith.constant 0 : index
    %38 = vector.load %arg8[%c0_20, %c0_21] : memref<32x32xf32, #tpu.memory_space<vmem>>, vector<32x32xf32>
    tpu.vector_store %arg8[%c0_20, %c0_21], %37 {strides = array<i32>} : memref<32x32xf32, #tpu.memory_space<vmem>>, vector<32x32xf32>,
    return
  }
  func.func @transform_0(%arg0: i32) -> (i32, i32) {
    %c0_i32 = arith.constant 0 : i32
    %c0_i32_0 = arith.constant 0 : i32
    return %arg0, %c0_i32 : i32, i32
  }
  func.func @transform_1(%arg0: i32) -> (i32, i32) {
    %c0_i32 = arith.constant 0 : i32
    %c0_i32_0 = arith.constant 0 : i32
    %c0_i32_1 = arith.constant 0 : i32
    return %c0_i32, %c0_i32_0 : i32, i32
  }
  func.func @transform_2(%arg0: i32) -> (i32, i32) {
    %c0_i32 = arith.constant 0 : i32
    %c0_i32_0 = arith.constant 0 : i32
    %c0_i32_1 = arith.constant 0 : i32
    return %c0_i32, %c0_i32_0 : i32, i32
  }
  func.func @transform_3(%arg0: i32) -> (i32, i32) {
    %c0_i32 = arith.constant 0 : i32
    %c0_i32_0 = arith.constant 0 : i32
    %c0_i32_1 = arith.constant 0 : i32
    return %c0_i32, %c0_i32_0 : i32, i32
  }
  func.func @transform_4(%arg0: i32) -> (i32, i32) {
    %c0_i32 = arith.constant 0 : i32
    %c0_i32_0 = arith.constant 0 : i32
    %c0_i32_1 = arith.constant 0 : i32
    return %c0_i32, %c0_i32_0 : i32, i32
  }
  func.func @transform_5(%arg0: i32) -> (i32, i32) {
    %c0_i32 = arith.constant 0 : i32
    %c0_i32_0 = arith.constant 0 : i32
    %c0_i32_1 = arith.constant 0 : i32
    return %c0_i32, %c0_i32_0 : i32, i32
  }
  func.func @transform_6(%arg0: i32) -> (i32, i32) {
    %c0_i32 = arith.constant 0 : i32
    %c0_i32_0 = arith.constant 0 : i32
    %c0_i32_1 = arith.constant 0 : i32
    return %c0_i32, %c0_i32_0 : i32, i32
  }
  func.func @transform_7(%arg0: i32) -> (i32, i32) {
    %c0_i32 = arith.constant 0 : i32
    %c0_i32_0 = arith.constant 0 : i32
    return %arg0, %c0_i32 : i32, i32
  }
}

</mosaic_0001>

<bundles_post_ra>
// kernel: cl_forward.25
= control target key start
LH: loop header
LB: loop body
LE: loop exit
PB: predicated region body
PF: predicated region fallthrough
CT: control target
= control target key end

     0   :  { %s942_s12 = smov 0   ;;  %s944_s13 = smov 0   ;;  %s1121_s0 = inlined_call_operand.vmem [shape: bf16[4,256,40], index: 0, kind: input, shape index: {}]   ;;  %s1122_s1 = inlined_call_operand.vmem [shape: bf16[4,40,4], index: 1, kind: input, shape index: {}]   ;;  %s1123_s2 = inlined_call_operand.vmem [shape: f32[4,1,4], index: 2, kind: input, shape index: {}]   ;;  %s1124_s3 = inlined_call_operand.vmem [shape: f32[4,256,4], index: 3, kind: output, shape index: {}]  }
   0x1   :  { %s946_s14 = smov 0  }
   0x2 LB: > { %s25_s15 = sadd.s32 1, %s916_s13  ;;  %p743_p0 = scmp.ge.s32.totalorder %s920_s14, 1  ;;  %s920_s14 = sphi %s946_s14, %s13_s14   ;;  %s916_s13 = sphi %s944_s13, %s1126_s13   ;;  %s912_s12 = sphi %s942_s12, %s1125_s12  }
   0x3   : > { %p27_p1 = scmp.ge.s32.totalorder %s25_s15, 4  ;;  %p176_p2 = scmp.lt.s32.totalorder %s920_s14, 5 }
   0x5   : > { %s1128_s15 = smov (%p27_p1, %s25_s15), 0  ;;  %p177_p3 = pnand %p743_p0, %p176_p2 }
   0x6   : > { %p217_p4 = scmp.lt.s32.totalorder (!%p177_p3), %s912_s12, 3  ;;  %vm384_vm0 = vcmask (!%p177_p3), 326656   ;;  %vm433_vm1 = vcmask (!%p177_p3), 1043456   ;;  %vm598_vm2 = vcmask (!%p177_p3), 31744  }
   0x7   : > { %180 = sbr.rel (%p177_p3) target bundleno = 273 (0x111), region = 32 }
   0xe   : > { %s1130_s12 = smov (!%p217_p4, %s912_s12), 3 }
   0xf   : > { %s787_s16 = sshll.u32 %s1130_s12, 7  ;;  %s854_s17 = smul.u32 20, %s1130_s12 }
  0x10   : > { %s967_s20 = scalar_lea.vmem %s1121_s0, %s787_s16  ;;  %s233_s26 = scalar_lea.vmem %s1123_s2, %s1130_s12 }
  0x11   : > { %s230_s23 = scalar_lea.vmem %s1122_s1, %s854_s17  ;;  %v882_v0 = vld [vmem:[%s967_s20] sm:$0xff]   ;;  %v884_v6 = vld [vmem:[%s967_s20 + $0x8] sm:$0xff]   ;;  %v886_v8 = vld [vmem:[%s967_s20 + $0x10] sm:$0xff]   ;;  %s788_s27 = sshll.u32 %s1130_s12, 8 }
  0x12   : > { %v879_v1 = vld [vmem:[%s230_s23] sm:$0xff]   ;;  %v880_v2 = vld [vmem:[%s230_s23 + $0x8] sm:$0xff]   ;;  %814 = vmatprep.mubr.msk.bf16.mxu0 %vm384_vm0, %v882_v0  ;;  %v881_v4 = vld [vmem:[%s230_s23 + $0x10] ss:$0 sps:$4 sm:$0xff]   ;;  %s1014_s30 = scalar_lea.vmem %s1124_s3, %s788_s27 }
  0x13   : > { %808 = vmatprep.subr.bf16.mxu0 %v879_v1  ;;  %846 = vmatprep.subr.bf16.mxu1 %v879_v1  ;;  %v883_v3 = vld [vmem:[%s967_s20 + $0x40] sm:$0xff]   ;;  %v435_v5 = vsel %vm433_vm1, %v881_v4, 0  ;;  %v885_v7 = vld [vmem:[%s967_s20 + $0x48] sm:$0xff]   ;;  %v887_v9 = vld [vmem:[%s967_s20 + $0x50] sm:$0xff]  }
  0x14   : > { %809 = vmatpush3.bf16.msra.mxu0 %v879_v1  ;;  %849 = vmatpush3.bf16.msra.mxu1 %v879_v1  ;;  %v888_v10 = vld [vmem:[%s967_s20 + $0x18] sm:$0xff]   ;;  %v890_v12 = vld [vmem:[%s967_s20 + $0x20] sm:$0xff]   ;;  %v892_v14 = vld [vmem:[%s967_s20 + $0x28] sm:$0xff]  }
  0x15   : > { %810 = vmatprep.subr.bf16.mxu0 %v880_v2  ;;  %847 = vmatprep.subr.bf16.mxu1 %v880_v2  ;;  %v889_v11 = vld [vmem:[%s967_s20 + $0x58] sm:$0xff]   ;;  %v891_v13 = vld [vmem:[%s967_s20 + $0x60] sm:$0xff]   ;;  %v893_v15 = vld [vmem:[%s967_s20 + $0x68] sm:$0xff]  }
  0x16   : > { %830 = vmatprep.mubr.msk.bf16.mxu1 %vm384_vm0, %v883_v3  ;;  %v894_v16 = vld [vmem:[%s967_s20 + $0x30] sm:$0xff]   ;;  %v896_v18 = vld [vmem:[%s967_s20 + $0x38] sm:$0xff]   ;;  %v1009_v20 = vld [vmem:[%s233_s26] ss:$0 sm:$0xff] }
  0x17   : > { %v895_v17 = vld [vmem:[%s967_s20 + $0x70] sm:$0xff]   ;;  %v897_v19 = vld [vmem:[%s967_s20 + $0x78] sm:$0xff]  }
  0x18   : > { %811 = vmatpush3.bf16.msra.mxu0 %v880_v2  ;;  %850 = vmatpush3.bf16.msra.mxu1 %v880_v2 }
  0x19   : > { %852 = vmatprep.subr.msk.bf16.mxu0 %vm433_vm1, %v881_v4  ;;  %853 = vmatprep.subr.msk.bf16.mxu1 %vm433_vm1, %v881_v4 }
  0x1c   : > { %813 = vmatpush3.bf16.msra.mxu0 %v435_v5  ;;  %851 = vmatpush3.bf16.msra.mxu1 %v435_v5 }
  0x1f   : > { %815 = vmatmul.mubr.msk.bf16.vlgmr.msra.gmra.mrb[0].mxu0 %vm384_vm0, %v884_v6  ;;  %831 = vmatmul.mubr.msk.bf16.vlgmr.msra.gmra.mrb[0].mxu1 %vm384_vm0, %v885_v7 }
  0x20   : > { %818 = vmatprep.mubr.msk.bf16.mxu0 %vm384_vm0, %v886_v8  ;;  %834 = vmatprep.mubr.msk.bf16.mxu1 %vm384_vm0, %v887_v9 }
  0x27   : > { %819 = vmatmul.mubr.msk.bf16.gmra.mrb[4].mxu0 %vm384_vm0, %v888_v10  ;;  %835 = vmatmul.mubr.msk.bf16.gmra.mrb[4].mxu1 %vm384_vm0, %v889_v11 }
  0x28   : > { %822 = vmatprep.mubr.msk.bf16.mxu0 %vm384_vm0, %v890_v12  ;;  %838 = vmatprep.mubr.msk.bf16.mxu1 %vm384_vm0, %v891_v13 }
  0x2f   : > { %823 = vmatmul.mubr.msk.bf16.gmra.mrb[8].mxu0 %vm384_vm0, %v892_v14  ;;  %839 = vmatmul.mubr.msk.bf16.gmra.mrb[8].mxu1 %vm384_vm0, %v893_v15 }
  0x30   : > { %826 = vmatprep.mubr.msk.bf16.mxu0 %vm384_vm0, %v894_v16  ;;  %842 = vmatprep.mubr.msk.bf16.mxu1 %vm384_vm0, %v895_v17 }
  0x37   : > { %827 = vmatmul.mubr.msk.bf16.gmra.mrb[12].mxu0 %vm384_vm0, %v896_v18  ;;  %843 = vmatmul.mubr.msk.bf16.gmra.mrb[12].mxu1 %vm384_vm0, %v897_v19 }
  0xf2   : > { %v816_v21 = vpop.f32.mrb[0].mxu0  ;;  %v832_v22 = vpop.f32.mrb[0].mxu1 }
  0xf3   : > { %v480_v23 = vadd.f32 %v816_v21, %v1009_v20  ;;  %v544_v24 = vadd.f32 %v832_v22, %v1009_v20  ;;  %v471_v25 = vpop.f32.mrb[1].mxu0  ;;  %v535_v26 = vpop.f32.mrb[1].mxu1 }
  0xf4   : > { %v472_v27 = vadd.f32 %v1009_v20, %v471_v25  ;;  %v536_v28 = vadd.f32 %v1009_v20, %v535_v26  ;;  %v817_v29 = vpop.f32.mrb[2].mxu0  ;;  %v833_v30 = vpop.f32.mrb[2].mxu1 }
  0xf5   : > { %601 = vst.msk [vmem:[%s1014_s30 + $0x10] sm:$0xff] %vm598_vm2, %v480_v23  ;;  %617 = vst.msk [vmem:[%s1014_s30 + $0x90] sm:$0xff] %vm598_vm2, %v544_v24  ;;  %v483_v31 = vadd.f32 %v817_v29, %v1009_v20  ;;  %v547_v32 = vadd.f32 %v833_v30, %v1009_v20  ;;  %v474_v33 = vpop.f32.mrb[3].mxu0  ;;  %v538_v34 = vpop.f32.mrb[3].mxu1 }
  0xf6   : > { %599 = vst.msk [vmem:[%s1014_s30] sm:$0xff] %vm598_vm2, %v472_v27  ;;  %615 = vst.msk [vmem:[%s1014_s30 + $0x80] sm:$0xff] %vm598_vm2, %v536_v28  ;;  %v475_v35 = vadd.f32 %v1009_v20, %v474_v33  ;;  %v539_v36 = vadd.f32 %v1009_v20, %v538_v34 }
  0xf7   : > { %602 = vst.msk [vmem:[%s1014_s30 + $0x18] sm:$0xff] %vm598_vm2, %v483_v31  ;;  %618 = vst.msk [vmem:[%s1014_s30 + $0x98] sm:$0xff] %vm598_vm2, %v547_v32 }
  0xf8   : > { %600 = vst.msk [vmem:[%s1014_s30 + $0x8] sm:$0xff] %vm598_vm2, %v475_v35  ;;  %616 = vst.msk [vmem:[%s1014_s30 + $0x88] sm:$0xff] %vm598_vm2, %v539_v36 }
  0xfa   : > { %v820_v37 = vpop.f32.mrb[4].mxu0  ;;  %v836_v38 = vpop.f32.mrb[4].mxu1 }
  0xfb   : > { %v496_v39 = vadd.f32 %v820_v37, %v1009_v20  ;;  %v560_v40 = vadd.f32 %v836_v38, %v1009_v20  ;;  %v487_v41 = vpop.f32.mrb[5].mxu0  ;;  %v551_v42 = vpop.f32.mrb[5].mxu1 }
  0xfc   : > { %v488_v43 = vadd.f32 %v1009_v20, %v487_v41  ;;  %v552_v44 = vadd.f32 %v1009_v20, %v551_v42  ;;  %v821_v45 = vpop.f32.mrb[6].mxu0  ;;  %v837_v46 = vpop.f32.mrb[6].mxu1 }
  0xfd   : > { %605 = vst.msk [vmem:[%s1014_s30 + $0x30] sm:$0xff] %vm598_vm2, %v496_v39  ;;  %621 = vst.msk [vmem:[%s1014_s30 + $0xb0] sm:$0xff] %vm598_vm2, %v560_v40  ;;  %v499_v47 = vadd.f32 %v821_v45, %v1009_v20  ;;  %v563_v48 = vadd.f32 %v837_v46, %v1009_v20  ;;  %v490_v49 = vpop.f32.mrb[7].mxu0  ;;  %v554_v50 = vpop.f32.mrb[7].mxu1 }
  0xfe   : > { %603 = vst.msk [vmem:[%s1014_s30 + $0x20] sm:$0xff] %vm598_vm2, %v488_v43  ;;  %619 = vst.msk [vmem:[%s1014_s30 + $0xa0] sm:$0xff] %vm598_vm2, %v552_v44  ;;  %v491_v51 = vadd.f32 %v1009_v20, %v490_v49  ;;  %v555_v52 = vadd.f32 %v1009_v20, %v554_v50 }
  0xff   : > { %606 = vst.msk [vmem:[%s1014_s30 + $0x38] sm:$0xff] %vm598_vm2, %v499_v47  ;;  %622 = vst.msk [vmem:[%s1014_s30 + $0xb8] sm:$0xff] %vm598_vm2, %v563_v48 }
 0x100   : > { %604 = vst.msk [vmem:[%s1014_s30 + $0x28] sm:$0xff] %vm598_vm2, %v491_v51  ;;  %620 = vst.msk [vmem:[%s1014_s30 + $0xa8] sm:$0xff] %vm598_vm2, %v555_v52 }
 0x102   : > { %v824_v53 = vpop.f32.mrb[8].mxu0  ;;  %v840_v54 = vpop.f32.mrb[8].mxu1 }
 0x103   : > { %v512_v55 = vadd.f32 %v824_v53, %v1009_v20  ;;  %v576_v56 = vadd.f32 %v840_v54, %v1009_v20  ;;  %v503_v57 = vpop.f32.mrb[9].mxu0  ;;  %v567_v58 = vpop.f32.mrb[9].mxu1 }
 0x104   : > { %v504_v59 = vadd.f32 %v1009_v20, %v503_v57  ;;  %v568_v60 = vadd.f32 %v1009_v20, %v567_v58  ;;  %v825_v61 = vpop.f32.mrb[10].mxu0  ;;  %v841_v62 = vpop.f32.mrb[10].mxu1 }
 0x105   : > { %609 = vst.msk [vmem:[%s1014_s30 + $0x50] sm:$0xff] %vm598_vm2, %v512_v55  ;;  %625 = vst.msk [vmem:[%s1014_s30 + $0xd0] sm:$0xff] %vm598_vm2, %v576_v56  ;;  %v515_v63 = vadd.f32 %v825_v61, %v1009_v20  ;;  %v579_v0 = vadd.f32 %v841_v62, %v1009_v20  ;;  %v506_v1 = vpop.f32.mrb[11].mxu0  ;;  %v570_v2 = vpop.f32.mrb[11].mxu1 }
 0x106   : > { %607 = vst.msk [vmem:[%s1014_s30 + $0x40] sm:$0xff] %vm598_vm2, %v504_v59  ;;  %623 = vst.msk [vmem:[%s1014_s30 + $0xc0] sm:$0xff] %vm598_vm2, %v568_v60  ;;  %v507_v3 = vadd.f32 %v1009_v20, %v506_v1  ;;  %v571_v4 = vadd.f32 %v1009_v20, %v570_v2 }
 0x107   : > { %610 = vst.msk [vmem:[%s1014_s30 + $0x58] sm:$0xff] %vm598_vm2, %v515_v63  ;;  %626 = vst.msk [vmem:[%s1014_s30 + $0xd8] sm:$0xff] %vm598_vm2, %v579_v0 }
 0x108   : > { %608 = vst.msk [vmem:[%s1014_s30 + $0x48] sm:$0xff] %vm598_vm2, %v507_v3  ;;  %624 = vst.msk [vmem:[%s1014_s30 + $0xc8] sm:$0xff] %vm598_vm2, %v571_v4 }
 0x10a   : > { %v828_v5 = vpop.f32.mrb[12].mxu0  ;;  %v844_v6 = vpop.f32.mrb[12].mxu1 }
 0x10b   : > { %v528_v7 = vadd.f32 %v828_v5, %v1009_v20  ;;  %v592_v8 = vadd.f32 %v844_v6, %v1009_v20  ;;  %v519_v9 = vpop.f32.mrb[13].mxu0  ;;  %v583_v10 = vpop.f32.mrb[13].mxu1 }
 0x10c   : > { %v520_v11 = vadd.f32 %v1009_v20, %v519_v9  ;;  %v584_v12 = vadd.f32 %v1009_v20, %v583_v10  ;;  %v829_v13 = vpop.f32.mrb[14].mxu0  ;;  %v845_v14 = vpop.f32.mrb[14].mxu1 }
 0x10d   : > { %613 = vst.msk [vmem:[%s1014_s30 + $0x70] sm:$0xff] %vm598_vm2, %v528_v7  ;;  %629 = vst.msk [vmem:[%s1014_s30 + $0xf0] sm:$0xff] %vm598_vm2, %v592_v8  ;;  %v531_v15 = vadd.f32 %v829_v13, %v1009_v20  ;;  %v595_v16 = vadd.f32 %v845_v14, %v1009_v20  ;;  %v522_v17 = vpop.f32.mrb[15].mxu0  ;;  %v586_v18 = vpop.f32.mrb[15].mxu1 }
 0x10e   : > { %611 = vst.msk [vmem:[%s1014_s30 + $0x60] sm:$0xff] %vm598_vm2, %v520_v11  ;;  %627 = vst.msk [vmem:[%s1014_s30 + $0xe0] sm:$0xff] %vm598_vm2, %v584_v12  ;;  %v523_v19 = vadd.f32 %v1009_v20, %v522_v17  ;;  %v587_v21 = vadd.f32 %v1009_v20, %v586_v18 }
 0x10f   : > { %614 = vst.msk [vmem:[%s1014_s30 + $0x78] sm:$0xff] %vm598_vm2, %v531_v15  ;;  %630 = vst.msk [vmem:[%s1014_s30 + $0xf8] sm:$0xff] %vm598_vm2, %v595_v16 }
 0x110   : > { %612 = vst.msk [vmem:[%s1014_s30 + $0x68] sm:$0xff] %vm598_vm2, %v523_v19  ;;  %628 = vst.msk [vmem:[%s1014_s30 + $0xe8] sm:$0xff] %vm598_vm2, %v587_v21 }
 0x111 PF: > { %s13_s14 = sadd.s32 1, %s920_s14   ;;  %s1125_s12 = smov %s916_s13 }
 0x112   : > { %p10_p5 = scmp.ge.s32.totalorder %s13_s14, 6   ;;  %s1126_s13 = smov %s1128_s15 }
 0x114   :  { %12 = sbr.rel (!%p10_p5) target bundleno = 2 (0x2), region = 68 }

// kernel: cl_forward.26
= control target key start
LH: loop header
LB: loop body
LE: loop exit
PB: predicated region body
PF: predicated region fallthrough
CT: control target
= control target key end

     0   :  { %s437_s12 = smov 0   ;;  %s439_s13 = smov 0   ;;  %s481_s0 = inlined_call_operand.vmem [shape: f32[4,8,128], index: 0, kind: input, shape index: {}]   ;;  %s482_s1 = inlined_call_operand.vmem [shape: f32[4,1,128], index: 1, kind: input, shape index: {}]   ;;  %s483_s2 = inlined_call_operand.vmem [shape: f32[4,1,128], index: 2, kind: input, shape index: {}]   ;;  %s484_s3 = inlined_call_operand.vmem [shape: f32[4,8,128], index: 3, kind: output, shape index: {}]  }
   0x1   :  { %s441_s14 = smov 0  }
   0x2 LB: > { %s25_s15 = sadd.s32 1, %s411_s13  ;;  %p357_p0 = scmp.ge.s32.totalorder %s415_s14, 1  ;;  %s415_s14 = sphi %s441_s14, %s13_s14   ;;  %s411_s13 = sphi %s439_s13, %s486_s13   ;;  %s407_s12 = sphi %s437_s12, %s485_s12  }
   0x3   : > { %p27_p1 = scmp.ge.s32.totalorder %s25_s15, 4  ;;  %p171_p2 = scmp.lt.s32.totalorder %s415_s14, 5 }
   0x5   : > { %s488_s15 = smov (%p27_p1, %s25_s15), 0  ;;  %p172_p3 = pnand %p357_p0, %p171_p2 }
   0x6   : > { %p205_p4 = scmp.lt.s32.totalorder (!%p172_p3), %s407_s12, 3 }
   0x7   : > { %175 = sbr.rel (%p172_p3) target bundleno = 348 (0x15c), region = 32 }
   0xe   : > { %s490_s12 = smov (!%p205_p4, %s407_s12), 3 }
   0xf   : > { %s358_s16 = sshll.u32 %s490_s12, 3  ;;  %s214_s22 = scalar_lea.vmem %s482_s1, %s490_s12 }
  0x10   : > { %s211_s19 = scalar_lea.vmem %s481_s0, %s358_s16  ;;  %s217_s25 = scalar_lea.vmem %s483_s2, %s490_s12  ;;  %v361_v14 = vld [vmem:[%s214_s22] ss:$0 sm:$0xff] }
  0x11   : > { %v225_v0 = vld [vmem:[%s211_s19] sm:$0xff]  ;;  %s224_s28 = scalar_lea.vmem %s484_s3, %s358_s16 }
  0x12   : > { %v227_v1 = vmin.f32 %v225_v0, 0.0  ;;  %vm226_vm0 = vcmp.gt.f32.partialorder %v225_v0, 0.0  ;;  %v362_v16 = vld [vmem:[%s217_s25] ss:$0 sm:$0xff] }
  0x14   : > { %v228_v2 = vmul.f32 1.442695, %v227_v1 }
  0x16   : > { %389 = vpow2.f32 %v228_v2 }
  0x20   : > { %v390_v3 = vpop.eup %389 }
  0x21   : > { %v360_v4 = vadd.f32 -1.0, %v390_v3 }
  0x23   : > { %v231_v5 = vsel %vm226_vm0, %v225_v0, %v360_v4 }
  0x24   : > { %234 = vadd.xlane.f32.xlu0 %v231_v5 }
  0xb1   : > { %v235_v6 = vpop.xlane.xlu0 %234 }
  0xb2   : > { %v237_v7 = vmul.f32 0.0078125, %v235_v6 }
  0xb4   : > { %v238_v8 = vsub.f32 %v231_v5, %v237_v7 }
  0xb6   : > { %v239_v9 = vmul.f32 %v238_v8, %v238_v8 }
  0xb8   : > { %240 = vadd.xlane.f32.xlu0 %v239_v9 }
 0x145   : > { %v241_v10 = vpop.xlane.xlu0 %240 }
 0x146   : > { %v242_v11 = vmul.f32 0.0078125, %v241_v10 }
 0x148   : > { %v243_v12 = vadd.f32 1e-05, %v242_v11 }
 0x14a   : > { %391 = vrsqrt.f32 %v243_v12 }
 0x154   : > { %v392_v13 = vpop.eup %391 }
 0x155   : > { %v245_v15 = vmul.f32 %v392_v13, %v238_v8 }
 0x157   : > { %v252_v17 = vmul.f32 %v361_v14, %v245_v15 }
 0x159   : > { %v259_v18 = vadd.f32 %v362_v16, %v252_v17 }
 0x15b   : > { %260 = vst [vmem:[%s224_s28] sm:$0xff] %v259_v18 }
 0x15c PF: > { %s13_s14 = sadd.s32 1, %s415_s14   ;;  %s485_s12 = smov %s411_s13 }
 0x15d   : > { %p10_p5 = scmp.ge.s32.totalorder %s13_s14, 6   ;;  %s486_s13 = smov %s488_s15 }
 0x15f   :  { %12 = sbr.rel (!%p10_p5) target bundleno = 2 (0x2), region = 68 }

// kernel: cl_forward.27
= control target key start
LH: loop header
LB: loop body
LE: loop exit
PB: predicated region body
PF: predicated region fallthrough
CT: control target
= control target key end

     0   :  { %s719_s12 = smov 0   ;;  %s721_s13 = smov 0   ;;  %s806_s0 = inlined_call_operand.vmem [shape: bf16[4,128,20], index: 0, kind: input, shape index: {}]   ;;  %s807_s1 = inlined_call_operand.vmem [shape: bf16[4,20,8], index: 1, kind: input, shape index: {}]   ;;  %s808_s2 = inlined_call_operand.vmem [shape: f32[4,1,8], index: 2, kind: input, shape index: {}]   ;;  %s809_s3 = inlined_call_operand.vmem [shape: f32[4,128,8], index: 3, kind: output, shape index: {}]  }
   0x1   :  { %s723_s14 = smov 0  }
   0x2 LB: > { %s25_s15 = sadd.s32 1, %s693_s13  ;;  %p575_p0 = scmp.ge.s32.totalorder %s697_s14, 1  ;;  %s697_s14 = sphi %s723_s14, %s13_s14   ;;  %s693_s13 = sphi %s721_s13, %s811_s13   ;;  %s689_s12 = sphi %s719_s12, %s810_s12  }
   0x3   : > { %p27_p1 = scmp.ge.s32.totalorder %s25_s15, 4  ;;  %p176_p2 = scmp.lt.s32.totalorder %s697_s14, 5 }
   0x5   : > { %s813_s15 = smov (%p27_p1, %s25_s15), 0  ;;  %p177_p3 = pnand %p575_p0, %p176_p2 }
   0x6   : > { %p217_p4 = scmp.lt.s32.totalorder (!%p177_p3), %s689_s12, 3  ;;  %vm320_vm0 = vcmask (!%p177_p3), 162816   ;;  %vm345_vm1 = vcmask (!%p177_p3), 1041408   ;;  %vm446_vm2 = vcmask (!%p177_p3), 64512  }
   0x7   : > { %180 = sbr.rel (%p177_p3) target bundleno = 253 (0xfd), region = 32 }
   0xe   : > { %s815_s12 = smov (!%p217_p4, %s689_s12), 3 }
   0xf   : > { %s602_s16 = sshll.u32 %s815_s12, 6  ;;  %s640_s17 = smul.u32 12, %s815_s12 }
  0x10   : > { %s224_s20 = scalar_lea.vmem %s806_s0, %s602_s16  ;;  %s233_s26 = scalar_lea.vmem %s808_s2, %s815_s12 }
  0x11   : > { %s230_s23 = scalar_lea.vmem %s807_s1, %s640_s17  ;;  %v667_v0 = vld [vmem:[%s224_s20] sm:$0xff]   ;;  %v669_v5 = vld [vmem:[%s224_s20 + $0x8] sm:$0xff]   ;;  %v671_v7 = vld [vmem:[%s224_s20 + $0x10] sm:$0xff]   ;;  %s603_s27 = sshll.u32 %s815_s12, 7 }
  0x12   : > { %v665_v1 = vld [vmem:[%s230_s23] sm:$0xff]   ;;  %v666_v2 = vld [vmem:[%s230_s23 + $0x8] ss:$0 sps:$4 sm:$0x33]   ;;  %618 = vmatprep.mubr.msk.bf16.mxu0 %vm320_vm0, %v667_v0  ;;  %v672_v8 = vld [vmem:[%s224_s20 + $0x30] sm:$0xff]   ;;  %s763_s30 = scalar_lea.vmem %s809_s3, %s603_s27 }
  0x13   : > { %v668_v3 = vld [vmem:[%s224_s20 + $0x20] sm:$0xff]   ;;  %614 = vmatprep.subr.bf16.mxu0 %v665_v1  ;;  %634 = vmatprep.subr.bf16.mxu1 %v665_v1  ;;  %v347_v4 = vsel %vm345_vm1, %v666_v2, 0  ;;  %v670_v6 = vld [vmem:[%s224_s20 + $0x28] sm:$0xff]   ;;  %v673_v9 = vld [vmem:[%s224_s20 + $0x18] sm:$0xff]  }
  0x14   : > { %615 = vmatpush3.bf16.msra.mxu0 %v665_v1  ;;  %636 = vmatpush3.bf16.msra.mxu1 %v665_v1  ;;  %v674_v10 = vld [vmem:[%s224_s20 + $0x38] sm:$0xff]   ;;  %v581_v11 = vld [vmem:[%s233_s26] ss:$0 sm:$0xff] }
  0x15   : > { %638 = vmatprep.subr.msk.bf16.mxu0 %vm345_vm1, %v666_v2  ;;  %639 = vmatprep.subr.msk.bf16.mxu1 %vm345_vm1, %v666_v2 }
  0x16   : > { %626 = vmatprep.mubr.msk.bf16.mxu1 %vm320_vm0, %v668_v3 }
  0x18   : > { %617 = vmatpush3.bf16.msra.mxu0 %v347_v4  ;;  %637 = vmatpush3.bf16.msra.mxu1 %v347_v4 }
  0x1b   : > { %619 = vmatmul.mubr.msk.bf16.vlgmr.msra.gmra.mrb[0].mxu0 %vm320_vm0, %v669_v5  ;;  %627 = vmatmul.mubr.msk.bf16.vlgmr.msra.gmra.mrb[0].mxu1 %vm320_vm0, %v670_v6 }
  0x1c   : > { %622 = vmatprep.mubr.msk.bf16.mxu0 %vm320_vm0, %v671_v7  ;;  %630 = vmatprep.mubr.msk.bf16.mxu1 %vm320_vm0, %v672_v8 }
  0x23   : > { %623 = vmatmul.mubr.msk.bf16.gmra.mrb[4].mxu0 %vm320_vm0, %v673_v9  ;;  %631 = vmatmul.mubr.msk.bf16.gmra.mrb[4].mxu1 %vm320_vm0, %v674_v10 }
  0xee   : > { %v620_v12 = vpop.f32.mrb[0].mxu0  ;;  %v628_v13 = vpop.f32.mrb[0].mxu1 }
  0xef   : > { %v392_v14 = vadd.f32 %v620_v12, %v581_v11  ;;  %v424_v15 = vadd.f32 %v628_v13, %v581_v11  ;;  %v383_v16 = vpop.f32.mrb[1].mxu0  ;;  %v415_v17 = vpop.f32.mrb[1].mxu1 }
  0xf0   : > { %v384_v18 = vadd.f32 %v581_v11, %v383_v16  ;;  %v416_v19 = vadd.f32 %v581_v11, %v415_v17  ;;  %v621_v20 = vpop.f32.mrb[2].mxu0  ;;  %v629_v21 = vpop.f32.mrb[2].mxu1 }
  0xf1   : > { %449 = vst.msk [vmem:[%s763_s30 + $0x10] sm:$0xff] %vm446_vm2, %v392_v14  ;;  %457 = vst.msk [vmem:[%s763_s30 + $0x50] sm:$0xff] %vm446_vm2, %v424_v15  ;;  %v395_v22 = vadd.f32 %v621_v20, %v581_v11  ;;  %v427_v23 = vadd.f32 %v629_v21, %v581_v11  ;;  %v386_v24 = vpop.f32.mrb[3].mxu0  ;;  %v418_v25 = vpop.f32.mrb[3].mxu1 }
  0xf2   : > { %447 = vst.msk [vmem:[%s763_s30] sm:$0xff] %vm446_vm2, %v384_v18  ;;  %455 = vst.msk [vmem:[%s763_s30 + $0x40] sm:$0xff] %vm446_vm2, %v416_v19  ;;  %v387_v26 = vadd.f32 %v581_v11, %v386_v24  ;;  %v419_v27 = vadd.f32 %v581_v11, %v418_v25 }
  0xf3   : > { %450 = vst.msk [vmem:[%s763_s30 + $0x18] sm:$0xff] %vm446_vm2, %v395_v22  ;;  %458 = vst.msk [vmem:[%s763_s30 + $0x58] sm:$0xff] %vm446_vm2, %v427_v23 }
  0xf4   : > { %448 = vst.msk [vmem:[%s763_s30 + $0x8] sm:$0xff] %vm446_vm2, %v387_v26  ;;  %456 = vst.msk [vmem:[%s763_s30 + $0x48] sm:$0xff] %vm446_vm2, %v419_v27 }
  0xf6   : > { %v624_v28 = vpop.f32.mrb[4].mxu0  ;;  %v632_v29 = vpop.f32.mrb[4].mxu1 }
  0xf7   : > { %v408_v30 = vadd.f32 %v624_v28, %v581_v11  ;;  %v440_v31 = vadd.f32 %v632_v29, %v581_v11  ;;  %v399_v32 = vpop.f32.mrb[5].mxu0  ;;  %v431_v33 = vpop.f32.mrb[5].mxu1 }
  0xf8   : > { %v400_v34 = vadd.f32 %v581_v11, %v399_v32  ;;  %v432_v35 = vadd.f32 %v581_v11, %v431_v33  ;;  %v625_v36 = vpop.f32.mrb[6].mxu0  ;;  %v633_v37 = vpop.f32.mrb[6].mxu1 }
  0xf9   : > { %453 = vst.msk [vmem:[%s763_s30 + $0x30] sm:$0xff] %vm446_vm2, %v408_v30  ;;  %461 = vst.msk [vmem:[%s763_s30 + $0x70] sm:$0xff] %vm446_vm2, %v440_v31  ;;  %v411_v38 = vadd.f32 %v625_v36, %v581_v11  ;;  %v443_v39 = vadd.f32 %v633_v37, %v581_v11  ;;  %v402_v40 = vpop.f32.mrb[7].mxu0  ;;  %v434_v41 = vpop.f32.mrb[7].mxu1 }
  0xfa   : > { %451 = vst.msk [vmem:[%s763_s30 + $0x20] sm:$0xff] %vm446_vm2, %v400_v34  ;;  %459 = vst.msk [vmem:[%s763_s30 + $0x60] sm:$0xff] %vm446_vm2, %v432_v35  ;;  %v403_v42 = vadd.f32 %v581_v11, %v402_v40  ;;  %v435_v43 = vadd.f32 %v581_v11, %v434_v41 }
  0xfb   : > { %454 = vst.msk [vmem:[%s763_s30 + $0x38] sm:$0xff] %vm446_vm2, %v411_v38  ;;  %462 = vst.msk [vmem:[%s763_s30 + $0x78] sm:$0xff] %vm446_vm2, %v443_v39 }
  0xfc   : > { %452 = vst.msk [vmem:[%s763_s30 + $0x28] sm:$0xff] %vm446_vm2, %v403_v42  ;;  %460 = vst.msk [vmem:[%s763_s30 + $0x68] sm:$0xff] %vm446_vm2, %v435_v43 }
  0xfd PF: > { %s13_s14 = sadd.s32 1, %s697_s14   ;;  %s810_s12 = smov %s693_s13 }
  0xfe   : > { %p10_p5 = scmp.ge.s32.totalorder %s13_s14, 6   ;;  %s811_s13 = smov %s813_s15 }
 0x100   :  { %12 = sbr.rel (!%p10_p5) target bundleno = 2 (0x2), region = 68 }

// kernel: cl_forward.29
= control target key start
LH: loop header
LB: loop body
LE: loop exit
PB: predicated region body
PF: predicated region fallthrough
CT: control target
= control target key end

     0   :  { %s630_s12 = smov 0   ;;  %s632_s13 = smov 0   ;;  %s687_s0 = inlined_call_operand.vmem [shape: bf16[4,64,40], index: 0, kind: input, shape index: {}]   ;;  %s688_s1 = inlined_call_operand.vmem [shape: bf16[4,40,16], index: 1, kind: input, shape index: {}]   ;;  %s689_s2 = inlined_call_operand.vmem [shape: f32[4,1,16], index: 2, kind: input, shape index: {}]   ;;  %s690_s3 = inlined_call_operand.vmem [shape: f32[4,64,16], index: 3, kind: output, shape index: {}]  }
   0x1   :  { %s634_s14 = smov 0  }
   0x2 LB: > { %s25_s15 = sadd.s32 1, %s604_s13  ;;  %p503_p0 = scmp.ge.s32.totalorder %s608_s14, 1  ;;  %s608_s14 = sphi %s634_s14, %s13_s14   ;;  %s604_s13 = sphi %s632_s13, %s692_s13   ;;  %s600_s12 = sphi %s630_s12, %s691_s12  }
   0x3   : > { %p27_p1 = scmp.ge.s32.totalorder %s25_s15, 4  ;;  %p176_p2 = scmp.lt.s32.totalorder %s608_s14, 5 }
   0x5   : > { %s694_s15 = smov (%p27_p1, %s25_s15), 0  ;;  %p177_p3 = pnand %p503_p0, %p176_p2 }
   0x6   : > { %p217_p4 = scmp.lt.s32.totalorder (!%p177_p3), %s600_s12, 3  ;;  %vm300_vm0 = vcmask (!%p177_p3), 326656   ;;  %vm313_vm1 = vcmask (!%p177_p3), 1043456   ;;  %vm382_vm2 = vcmask (!%p177_p3), 130048  }
   0x7   : > { %180 = sbr.rel (%p177_p3) target bundleno = 249 (0xf9), region = 32 }
   0xe   : > { %s696_s12 = smov (!%p217_p4, %s600_s12), 3 }
   0xf   : > { %s554_s16 = smul.u32 20, %s696_s12  ;;  %s523_s17 = sshll.u32 %s696_s12, 5 }
  0x10   : > { %s224_s20 = scalar_lea.vmem %s687_s0, %s523_s17  ;;  %s233_s26 = scalar_lea.vmem %s689_s2, %s696_s12 }
  0x11   : > { %s230_s23 = scalar_lea.vmem %s688_s1, %s554_s16  ;;  %v582_v0 = vld [vmem:[%s224_s20] sm:$0xff]   ;;  %v583_v3 = vld [vmem:[%s224_s20 + $0x10] sm:$0xff]   ;;  %v584_v6 = vld [vmem:[%s224_s20 + $0x8] sm:$0xff]   ;;  %s524_s27 = sshll.u32 %s696_s12, 6 }
  0x12   : > { %v579_v1 = vld [vmem:[%s230_s23] sm:$0xff]   ;;  %v580_v2 = vld [vmem:[%s230_s23 + $0x8] sm:$0xff]   ;;  %538 = vmatprep.mubr.msk.bf16.mxu0 %vm300_vm0, %v582_v0  ;;  %v581_v4 = vld [vmem:[%s230_s23 + $0x10] ss:$0 sps:$4 sm:$0xff]   ;;  %542 = vmatprep.mubr.msk.bf16.mxu1 %vm300_vm0, %v583_v3  ;;  %s242_s30 = scalar_lea.vmem %s690_s3, %s524_s27 }
  0x13   : > { %532 = vmatprep.subr.bf16.mxu0 %v579_v1  ;;  %546 = vmatprep.subr.bf16.mxu1 %v579_v1  ;;  %v315_v5 = vsel %vm313_vm1, %v581_v4, 0  ;;  %v585_v7 = vld [vmem:[%s224_s20 + $0x18] sm:$0xff]   ;;  %v509_v8 = vld [vmem:[%s233_s26] ss:$0 sm:$0xff] }
  0x14   : > { %533 = vmatpush3.bf16.msra.mxu0 %v579_v1  ;;  %549 = vmatpush3.bf16.msra.mxu1 %v579_v1 }
  0x15   : > { %534 = vmatprep.subr.bf16.mxu0 %v580_v2  ;;  %547 = vmatprep.subr.bf16.mxu1 %v580_v2 }
  0x18   : > { %535 = vmatpush3.bf16.msra.mxu0 %v580_v2  ;;  %550 = vmatpush3.bf16.msra.mxu1 %v580_v2 }
  0x19   : > { %552 = vmatprep.subr.msk.bf16.mxu0 %vm313_vm1, %v581_v4  ;;  %553 = vmatprep.subr.msk.bf16.mxu1 %vm313_vm1, %v581_v4 }
  0x1c   : > { %537 = vmatpush3.bf16.msra.mxu0 %v315_v5  ;;  %551 = vmatpush3.bf16.msra.mxu1 %v315_v5 }
  0x1f   : > { %539 = vmatmul.mubr.msk.bf16.vlgmr.msra.gmra.mrb[0].mxu0 %vm300_vm0, %v584_v6  ;;  %543 = vmatmul.mubr.msk.bf16.vlgmr.msra.gmra.mrb[0].mxu1 %vm300_vm0, %v585_v7 }
  0xf2   : > { %v540_v9 = vpop.f32.mrb[0].mxu0  ;;  %v544_v10 = vpop.f32.mrb[0].mxu1 }
  0xf3   : > { %v360_v11 = vadd.f32 %v540_v9, %v509_v8  ;;  %v376_v12 = vadd.f32 %v544_v10, %v509_v8  ;;  %v351_v13 = vpop.f32.mrb[1].mxu0  ;;  %v367_v14 = vpop.f32.mrb[1].mxu1 }
  0xf4   : > { %v352_v15 = vadd.f32 %v509_v8, %v351_v13  ;;  %v368_v16 = vadd.f32 %v509_v8, %v367_v14  ;;  %v541_v17 = vpop.f32.mrb[2].mxu0  ;;  %v545_v18 = vpop.f32.mrb[2].mxu1 }
  0xf5   : > { %385 = vst.msk [vmem:[%s242_s30 + $0x10] sm:$0xff] %vm382_vm2, %v360_v11  ;;  %389 = vst.msk [vmem:[%s242_s30 + $0x30] sm:$0xff] %vm382_vm2, %v376_v12  ;;  %v363_v19 = vadd.f32 %v541_v17, %v509_v8  ;;  %v379_v20 = vadd.f32 %v545_v18, %v509_v8  ;;  %v354_v21 = vpop.f32.mrb[3].mxu0  ;;  %v370_v22 = vpop.f32.mrb[3].mxu1 }
  0xf6   : > { %383 = vst.msk [vmem:[%s242_s30] sm:$0xff] %vm382_vm2, %v352_v15  ;;  %387 = vst.msk [vmem:[%s242_s30 + $0x20] sm:$0xff] %vm382_vm2, %v368_v16  ;;  %v355_v23 = vadd.f32 %v509_v8, %v354_v21  ;;  %v371_v24 = vadd.f32 %v509_v8, %v370_v22 }
  0xf7   : > { %386 = vst.msk [vmem:[%s242_s30 + $0x18] sm:$0xff] %vm382_vm2, %v363_v19  ;;  %390 = vst.msk [vmem:[%s242_s30 + $0x38] sm:$0xff] %vm382_vm2, %v379_v20 }
  0xf8   : > { %384 = vst.msk [vmem:[%s242_s30 + $0x8] sm:$0xff] %vm382_vm2, %v355_v23  ;;  %388 = vst.msk [vmem:[%s242_s30 + $0x28] sm:$0xff] %vm382_vm2, %v371_v24 }
  0xf9 PF: > { %s13_s14 = sadd.s32 1, %s608_s14   ;;  %s691_s12 = smov %s604_s13 }
  0xfa   : > { %p10_p5 = scmp.ge.s32.totalorder %s13_s14, 6   ;;  %s692_s13 = smov %s694_s15 }
  0xfc   :  { %12 = sbr.rel (!%p10_p5) target bundleno = 2 (0x2), region = 68 }

// kernel: cl_forward.31
= control target key start
LH: loop header
LB: loop body
LE: loop exit
PB: predicated region body
PF: predicated region fallthrough
CT: control target
= control target key end

     0   :  { %s596_s12 = smov 0   ;;  %s598_s13 = smov 0   ;;  %s643_s0 = inlined_call_operand.vmem [shape: bf16[4,32,80], index: 0, kind: input, shape index: {}]   ;;  %s644_s1 = inlined_call_operand.vmem [shape: bf16[4,80,32], index: 1, kind: input, shape index: {}]   ;;  %s645_s2 = inlined_call_operand.vmem [shape: f32[4,1,32], index: 2, kind: input, shape index: {}]   ;;  %s646_s3 = inlined_call_operand.vmem [shape: f32[4,32,32], index: 3, kind: output, shape index: {}]  }
   0x1   :  { %s600_s14 = smov 0  }
   0x2 LB: > { %s25_s15 = sadd.s32 1, %s570_s13  ;;  %p479_p0 = scmp.ge.s32.totalorder %s574_s14, 1  ;;  %s574_s14 = sphi %s600_s14, %s13_s14   ;;  %s570_s13 = sphi %s598_s13, %s648_s13   ;;  %s566_s12 = sphi %s596_s12, %s647_s12  }
   0x3   : > { %p27_p1 = scmp.ge.s32.totalorder %s25_s15, 4  ;;  %p176_p2 = scmp.lt.s32.totalorder %s574_s14, 5 }
   0x5   : > { %s650_s15 = smov (%p27_p1, %s25_s15), 0  ;;  %p177_p3 = pnand %p479_p0, %p176_p2 }
   0x6   : > { %p217_p4 = scmp.lt.s32.totalorder (!%p177_p3), %s566_s12, 3  ;;  %vm306_vm0 = vcmask (!%p177_p3), 654336   ;;  %vm362_vm1 = vcmask (!%p177_p3), 261120  }
   0x7   : > { %180 = sbr.rel (%p177_p3) target bundleno = 257 (0x101), region = 32 }
   0xe   : > { %s652_s12 = smov (!%p217_p4, %s566_s12), 3 }
   0xf   : > { %s520_s16 = smul.u32 40, %s652_s12  ;;  %s497_s17 = sshll.u32 %s652_s12, 4 }
  0x10   : > { %s224_s20 = scalar_lea.vmem %s643_s0, %s497_s17  ;;  %s233_s26 = scalar_lea.vmem %s645_s2, %s652_s12 }
  0x11   : > { %s230_s23 = scalar_lea.vmem %s644_s1, %s520_s16  ;;  %v550_v0 = vld [vmem:[%s224_s20] sm:$0xff]   ;;  %v551_v6 = vld [vmem:[%s224_s20 + $0x8] sm:$0xff]   ;;  %s498_s27 = sshll.u32 %s652_s12, 5 }
  0x12   : > { %v545_v1 = vld [vmem:[%s230_s23] sm:$0xff]   ;;  %v546_v2 = vld [vmem:[%s230_s23 + $0x8] sm:$0xff]   ;;  %516 = vmatprep.mubr.msk.bf16.mxu0 %vm306_vm0, %v550_v0  ;;  %v547_v3 = vld [vmem:[%s230_s23 + $0x10] sm:$0xff]   ;;  %s242_s30 = scalar_lea.vmem %s646_s3, %s498_s27 }
  0x13   : > { %506 = vmatprep.subr.bf16.mxu0 %v545_v1  ;;  %v548_v4 = vld [vmem:[%s230_s23 + $0x18] sm:$0xff]   ;;  %v549_v5 = vld [vmem:[%s230_s23 + $0x20] sm:$0xff]  }
  0x14   : > { %507 = vmatpush3.bf16.msra.mxu0 %v545_v1  ;;  %v485_v7 = vld [vmem:[%s233_s26] ss:$0 sm:$0xff] }
  0x15   : > { %508 = vmatprep.subr.bf16.mxu0 %v546_v2 }
  0x18   : > { %509 = vmatpush3.bf16.msra.mxu0 %v546_v2 }
  0x19   : > { %510 = vmatprep.subr.bf16.mxu0 %v547_v3 }
  0x1c   : > { %511 = vmatpush3.bf16.msra.mxu0 %v547_v3 }
  0x1d   : > { %512 = vmatprep.subr.bf16.mxu0 %v548_v4 }
  0x20   : > { %513 = vmatpush3.bf16.msra.mxu0 %v548_v4 }
  0x21   : > { %514 = vmatprep.subr.bf16.mxu0 %v549_v5 }
  0x24   : > { %515 = vmatpush3.bf16.msra.mxu0 %v549_v5 }
  0x27   : > { %517 = vmatmul.mubr.msk.bf16.vlgmr.msra.gmra.mrb[0].mxu0 %vm306_vm0, %v551_v6 }
  0xfa   : > { %v518_v8 = vpop.f32.mrb[0].mxu0 }
  0xfb   : > { %v356_v9 = vadd.f32 %v518_v8, %v485_v7  ;;  %v347_v10 = vpop.f32.mrb[1].mxu0 }
  0xfc   : > { %v348_v11 = vadd.f32 %v485_v7, %v347_v10  ;;  %v519_v12 = vpop.f32.mrb[2].mxu0 }
  0xfd   : > { %365 = vst.msk [vmem:[%s242_s30 + $0x10] sm:$0xff] %vm362_vm1, %v356_v9  ;;  %v359_v13 = vadd.f32 %v519_v12, %v485_v7  ;;  %v350_v14 = vpop.f32.mrb[3].mxu0 }
  0xfe   : > { %363 = vst.msk [vmem:[%s242_s30] sm:$0xff] %vm362_vm1, %v348_v11  ;;  %v351_v15 = vadd.f32 %v485_v7, %v350_v14 }
  0xff   : > { %366 = vst.msk [vmem:[%s242_s30 + $0x18] sm:$0xff] %vm362_vm1, %v359_v13 }
 0x100   : > { %364 = vst.msk [vmem:[%s242_s30 + $0x8] sm:$0xff] %vm362_vm1, %v351_v15 }
 0x101 PF: > { %s13_s14 = sadd.s32 1, %s574_s14   ;;  %s647_s12 = smov %s570_s13 }
 0x102   : > { %p10_p5 = scmp.ge.s32.totalorder %s13_s14, 6   ;;  %s648_s13 = smov %s650_s15 }
 0x104   :  { %12 = sbr.rel (!%p10_p5) target bundleno = 2 (0x2), region = 68 }

// kernel: cl_forward.33
= control target key start
LH: loop header
LB: loop body
LE: loop exit
PB: predicated region body
PF: predicated region fallthrough
CT: control target
= control target key end

     0   :  { %s617_s12 = smov 0   ;;  %s619_s13 = smov 0   ;;  %s669_s0 = inlined_call_operand.vmem [shape: bf16[4,16,160], index: 0, kind: input, shape index: {}]   ;;  %s670_s1 = inlined_call_operand.vmem [shape: bf16[4,160,64], index: 1, kind: input, shape index: {}]   ;;  %s671_s2 = inlined_call_operand.vmem [shape: f32[4,1,64], index: 2, kind: input, shape index: {}]   ;;  %s672_s3 = inlined_call_operand.vmem [shape: f32[4,16,64], index: 3, kind: output, shape index: {}]  }
   0x1   :  { %s621_s14 = smov 0  }
   0x2 LB: > { %s25_s15 = sadd.s32 1, %s590_s13  ;;  %p509_p0 = scmp.ge.s32.totalorder %s594_s14, 1  ;;  %s594_s14 = sphi %s621_s14, %s13_s14   ;;  %s590_s13 = sphi %s619_s13, %s674_s13   ;;  %s586_s12 = sphi %s617_s12, %s673_s12  }
   0x3   : > { %p27_p1 = scmp.ge.s32.totalorder %s25_s15, 4  ;;  %p177_p2 = scmp.lt.s32.totalorder %s594_s14, 5 }
   0x5   : > { %s676_s15 = smov (%p27_p1, %s25_s15), 0  ;;  %p178_p3 = pnand %p509_p0, %p177_p2 }
   0x6   : > { %p219_p4 = scmp.lt.s32.totalorder (!%p178_p3), %s586_s12, 3  ;;  %v596_v0 = vmov (!%p178_p3), 0   ;;  %vm346_vm0 = vcmask (!%p178_p3), 261120   ;;  %vm391_vm1 = vcmask (!%p178_p3), 523264  }
   0x7   : > { %181 = sbr.rel (%p178_p3) target bundleno = 275 (0x113), region = 32  ;;  %350 = vmatprep.subr.bf16.mxu0 (!%p178_p3), %v596_v0 }
   0xe   : > { %s678_s12 = smov (!%p219_p4, %s586_s12), 3 }
   0xf   : > { %s533_s16 = smul.u32 80, %s678_s12  ;;  %s531_s17 = sshll.u32 %s678_s12, 4 }
  0x10   : > { %s644_s20 = scalar_lea.vmem %s669_s0, %s531_s17  ;;  %s236_s26 = scalar_lea.vmem %s671_s2, %s678_s12 }
  0x11   : > { %s233_s23 = scalar_lea.vmem %s670_s1, %s533_s16  ;;  %v571_v5 = vld [vmem:[%s644_s20 + $0x4] ss:$8 sps:$4 sm:$0xff]   ;;  %v569_v12 = vld [vmem:[%s644_s20] ss:$8 sps:$4 sm:$0xff]   ;;  %s245_s29 = scalar_lea.vmem %s672_s3, %s531_s17 }
  0x12   : > { %v559_v1 = vld [vmem:[%s233_s23] sm:$0xff]   ;;  %v560_v2 = vld [vmem:[%s233_s23 + $0x8] sm:$0xff]   ;;  %v561_v3 = vld [vmem:[%s233_s23 + $0x10] sm:$0xff]   ;;  %528 = vmatprep.mubr.msk.bf16.mxu0 %vm346_vm0, %v571_v5 }
  0x13   : > { %351 = vmatpush1.bf16.msra.mxu0 %v559_v1  ;;  %v562_v4 = vld [vmem:[%s233_s23 + $0x18] sm:$0xff]   ;;  %v563_v6 = vld [vmem:[%s233_s23 + $0x20] sm:$0xff]   ;;  %v564_v7 = vld [vmem:[%s233_s23 + $0x28] sm:$0xff]  }
  0x14   : > { %352 = vmatprep.subr.bf16.mxu0 %v596_v0  ;;  %v565_v8 = vld [vmem:[%s233_s23 + $0x30] sm:$0xff]   ;;  %v566_v9 = vld [vmem:[%s233_s23 + $0x38] sm:$0xff]   ;;  %v567_v10 = vld [vmem:[%s233_s23 + $0x40] sm:$0xff]  }
  0x15   : > { %v568_v11 = vld [vmem:[%s233_s23 + $0x48] sm:$0xff]   ;;  %v515_v13 = vld [vmem:[%s236_s26] ss:$0 sm:$0xff] }
  0x17   : > { %353 = vmatpush1.bf16.msra.mxu0 %v560_v2 }
  0x18   : > { %354 = vmatprep.subr.bf16.mxu0 %v596_v0 }
  0x1b   : > { %355 = vmatpush1.bf16.msra.mxu0 %v561_v3 }
  0x1c   : > { %356 = vmatprep.subr.bf16.mxu0 %v596_v0 }
  0x1f   : > { %357 = vmatpush1.bf16.msra.mxu0 %v562_v4 }
  0x20   : > { %358 = vmatprep.subr.bf16.mxu0 %v596_v0 }
  0x23   : > { %359 = vmatpush1.bf16.msra.mxu0 %v563_v6 }
  0x24   : > { %360 = vmatprep.subr.bf16.mxu0 %v596_v0 }
  0x27   : > { %361 = vmatpush1.bf16.msra.mxu0 %v564_v7 }
  0x28   : > { %362 = vmatprep.subr.bf16.mxu0 %v596_v0 }
  0x2b   : > { %363 = vmatpush1.bf16.msra.mxu0 %v565_v8 }
  0x2c   : > { %364 = vmatprep.subr.bf16.mxu0 %v596_v0 }
  0x2f   : > { %365 = vmatpush1.bf16.msra.mxu0 %v566_v9 }
  0x30   : > { %366 = vmatprep.subr.bf16.mxu0 %v596_v0 }
  0x33   : > { %367 = vmatpush1.bf16.msra.mxu0 %v567_v10 }
  0x34   : > { %368 = vmatprep.subr.bf16.mxu0 %v596_v0 }
  0x37   : > { %369 = vmatpush1.bf16.msra.mxu0 %v568_v11 }
  0x3a   : > { %383 = vmatmul.mubr.bf16.vlgmr.msra.gmra.mrb[0].mxu0 %v569_v12 }
 0x10d   : > { %v384_v14 = vpop.f32.mrb[0].mxu0 }
 0x10e   : > { %v385_v15 = vadd.f32 %v515_v13, %v384_v14  ;;  %v386_v16 = vpop.f32.mrb[1].mxu0 }
 0x10f   : > { %v387_v17 = vpop.f32.mrb[2].mxu0 }
 0x110   : > { %392 = vst.msk [vmem:[%s245_s29] sm:$0xff] %vm391_vm1, %v385_v15  ;;  %v388_v18 = vadd.f32 %v515_v13, %v387_v17  ;;  %v389_v19 = vpop.f32.mrb[3].mxu0 }
 0x112   : > { %393 = vst.msk [vmem:[%s245_s29 + $0x8] sm:$0xff] %vm391_vm1, %v388_v18 }
 0x113 PF: > { %s13_s14 = sadd.s32 1, %s594_s14   ;;  %s673_s12 = smov %s590_s13 }
 0x114   : > { %p10_p5 = scmp.ge.s32.totalorder %s13_s14, 6   ;;  %s674_s13 = smov %s676_s15 }
 0x116   :  { %12 = sbr.rel (!%p10_p5) target bundleno = 2 (0x2), region = 68 }

// kernel: cl_forward.35
= control target key start
LH: loop header
LB: loop body
LE: loop exit
PB: predicated region body
PF: predicated region fallthrough
CT: control target
= control target key end

     0   :  { %s774_s12 = smov 0   ;;  %s776_s13 = smov 0   ;;  %s841_s0 = inlined_call_operand.vmem [shape: bf16[4,8,320], index: 0, kind: input, shape index: {}]   ;;  %s842_s1 = inlined_call_operand.vmem [shape: bf16[4,320,128], index: 1, kind: input, shape index: {}]   ;;  %s843_s2 = inlined_call_operand.vmem [shape: f32[4,1,128], index: 2, kind: input, shape index: {}]   ;;  %s844_s3 = inlined_call_operand.vmem [shape: f32[4,8,128], index: 3, kind: output, shape index: {}]  }
   0x1   :  { %s778_s14 = smov 0  }
   0x2 LB: > { %s25_s15 = sadd.s32 1, %s746_s13  ;;  %p607_p0 = scmp.ge.s32.totalorder %s750_s14, 1  ;;  %s750_s14 = sphi %s778_s14, %s13_s14   ;;  %s746_s13 = sphi %s776_s13, %s846_s13   ;;  %s742_s12 = sphi %s774_s12, %s845_s12  }
   0x3   : > { %p27_p1 = scmp.ge.s32.totalorder %s25_s15, 4  ;;  %p175_p2 = scmp.lt.s32.totalorder %s750_s14, 5 }
   0x5   : > { %s848_s15 = smov (%p27_p1, %s25_s15), 0  ;;  %p176_p3 = pnand %p607_p0, %p175_p2 }
   0x6   : > { %p213_p4 = scmp.lt.s32.totalorder (!%p176_p3), %s742_s12, 3  ;;  %v752_v0 = vmov (!%p176_p3), 0.0   ;;  %vm753_vm0 = vmmov (!%p176_p3), 0   ;;  %vm417_vm1 = vcmask (!%p176_p3), 523264  }
   0x7   : > { %179 = sbr.rel (%p176_p3) target bundleno = 271 (0x10f), region = 32  ;;  %665 = vmatprep.subr.bf16.mxu1 (!%p176_p3), %v752_v0  ;;  %673 = vmatprep.mubr.msk.bf16.mxu1 (!%p176_p3), %vm753_vm0, %v752_v0 }
   0xe   : > { %s850_s12 = smov (!%p213_p4, %s742_s12), 3 }
   0xf   : > { %s678_s16 = smul.u32 160, %s850_s12  ;;  %s229_s26 = scalar_lea.vmem %s843_s2, %s850_s12 }
  0x10   : > { %s677_s20 = smul.u32 12, %s850_s12  ;;  %v611_v31 = vld [vmem:[%s229_s26] ss:$0 sm:$0xff]  ;;  %s610_s27 = sshll.u32 %s850_s12, 3 }
  0x11   : > { %s798_s19 = scalar_lea.vmem %s842_s1, %s678_s16  ;;  %s236_s30 = scalar_lea.vmem %s844_s3, %s610_s27 }
  0x12   : > { %v705_v1 = vld [vmem:[%s798_s19 + $0x40] sm:$0xff]   ;;  %v707_v3 = vld [vmem:[%s798_s19 + $0x48] sm:$0xff]   ;;  %v709_v5 = vld [vmem:[%s798_s19 + $0x50] sm:$0xff]   ;;  %s221_s23 = scalar_lea.vmem %s841_s0, %s677_s20 }
  0x13   : > { %v706_v2 = vld [vmem:[%s798_s19] sm:$0xff]   ;;  %638 = vmatprep.subr.bf16.mxu0 %v705_v1  ;;  %v708_v4 = vld [vmem:[%s798_s19 + $0x8] sm:$0xff]   ;;  %v710_v6 = vld [vmem:[%s798_s19 + $0x10] sm:$0xff]  }
  0x14   : > { %639 = vmatpush3.bf16.msra.mxu0 %v706_v2  ;;  %v711_v7 = vld [vmem:[%s798_s19 + $0x58] sm:$0xff]   ;;  %v715_v8 = vld [vmem:[%s798_s19 + $0x80] sm:$0xff]   ;;  %v718_v11 = vld [vmem:[%s798_s19 + $0x88] sm:$0xff]  }
  0x15   : > { %640 = vmatprep.subr.bf16.mxu0 %v707_v3  ;;  %v712_v9 = vld [vmem:[%s798_s19 + $0x18] sm:$0xff]   ;;  %v713_v10 = vld [vmem:[%s798_s19 + $0x60] sm:$0xff]   ;;  %666 = vmatpush3.bf16.msra.mxu1 %v715_v8  ;;  %v716_v13 = vld [vmem:[%s798_s19 + $0x68] sm:$0xff]  }
  0x16   : > { %667 = vmatprep.subr.bf16.mxu1 %v752_v0  ;;  %v714_v12 = vld [vmem:[%s798_s19 + $0x20] sm:$0xff]   ;;  %v721_v14 = vld [vmem:[%s798_s19 + $0x90] sm:$0xff]   ;;  %v717_v15 = vld [vmem:[%s798_s19 + $0x28] sm:$0xff]  }
  0x17   : > { %v719_v16 = vld [vmem:[%s798_s19 + $0x70] sm:$0xff]   ;;  %v238_v17 = vld [vmem:[%s221_s23] sm:$0xff]  ;;  %v727_v19 = vld [vmem:[%s798_s19 + $0x98] sm:$0xff]  }
  0x18   : > { %641 = vmatpush3.bf16.msra.mxu0 %v708_v4  ;;  %v613_v18 = vcombine.high %v238_v17, %v238_v17  ;;  %v720_v20 = vld [vmem:[%s798_s19 + $0x30] sm:$0xff]   ;;  %v726_v21 = vld [vmem:[%s221_s23 + $0x8] ss:$0 sps:$4 sm:$0xff]   ;;  %v722_v22 = vld [vmem:[%s798_s19 + $0x78] sm:$0xff]   ;;  %v612_v24 = vcombine.low %v238_v17, %v238_v17 }
  0x19   : > { %642 = vmatprep.subr.bf16.mxu0 %v709_v5  ;;  %668 = vmatpush3.bf16.msra.mxu1 %v718_v11  ;;  %v723_v23 = vld [vmem:[%s798_s19 + $0x38] sm:$0xff]  }
  0x1a   : > { %669 = vmatprep.subr.bf16.mxu1 %v752_v0  ;;  %453 = vmatprep.mubr.bf16.mxu0 %v613_v18 }
  0x1c   : > { %643 = vmatpush3.bf16.msra.mxu0 %v710_v6 }
  0x1d   : > { %644 = vmatprep.subr.bf16.mxu0 %v711_v7  ;;  %670 = vmatpush3.bf16.msra.mxu1 %v721_v14 }
  0x1e   : > { %671 = vmatprep.subr.bf16.mxu1 %v752_v0 }
  0x20   : > { %645 = vmatpush3.bf16.msra.mxu0 %v712_v9 }
  0x21   : > { %646 = vmatprep.subr.bf16.mxu0 %v713_v10  ;;  %672 = vmatpush3.bf16.msra.mxu1 %v727_v19 }
  0x24   : > { %647 = vmatpush3.bf16.msra.mxu0 %v714_v12  ;;  %674 = vmatmul.mubr.msk.bf16.vlgmr.msra.gmra.mrb[0].mxu1 %vm417_vm1, %v726_v21 }
  0x25   : > { %648 = vmatprep.subr.bf16.mxu0 %v716_v13 }
  0x28   : > { %649 = vmatpush3.bf16.msra.mxu0 %v717_v15 }
  0x29   : > { %650 = vmatprep.subr.bf16.mxu0 %v719_v16 }
  0x2c   : > { %651 = vmatpush3.bf16.msra.mxu0 %v720_v20 }
  0x2d   : > { %652 = vmatprep.subr.bf16.mxu0 %v722_v22 }
  0x30   : > { %653 = vmatpush3.bf16.msra.mxu0 %v723_v23 }
  0x33   : > { %454 = vmatmul.mubr.bf16.vlgmr.msra.gmra.mrb[0].mxu0 %v612_v24 }
  0xf7   : > { %v495_v25 = vpop.f32.mrb[0].mxu1 }
  0xf8   : > { %v675_v26 = vpop.f32.mrb[1].mxu1 }
  0xf9   : > { %v498_v27 = vpop.f32.mrb[2].mxu1 }
  0xfa   : > { %v676_v28 = vpop.f32.mrb[3].mxu1 }
 0x106   : > { %v654_v29 = vpop.f32.mrb[0].mxu0 }
 0x107   : > { %v655_v30 = vpop.f32.mrb[1].mxu0 }
 0x108   : > { %v656_v32 = vadd.f32 %v655_v30, %v654_v29  ;;  %v657_v33 = vpop.f32.mrb[2].mxu0 }
 0x109   : > { %v658_v34 = vpop.f32.mrb[3].mxu0 }
 0x10a   : > { %v456_v35 = vadd.f32 %v656_v32, %v611_v31 }
 0x10c   : > { %v496_v36 = vadd.f32 %v495_v25, %v456_v35 }
 0x10e   : > { %501 = vst [vmem:[%s236_s30] sm:$0xff] %v496_v36 }
 0x10f PF: > { %s13_s14 = sadd.s32 1, %s750_s14   ;;  %s845_s12 = smov %s746_s13 }
 0x110   : > { %p10_p5 = scmp.ge.s32.totalorder %s13_s14, 6   ;;  %s846_s13 = smov %s848_s15 }
 0x112   :  { %12 = sbr.rel (!%p10_p5) target bundleno = 2 (0x2), region = 68 }

// kernel: cl_forward.37
= control target key start
LH: loop header
LB: loop body
LE: loop exit
PB: predicated region body
PF: predicated region fallthrough
CT: control target
= control target key end

     0   :  { %s572_s12 = smov 0   ;;  %s574_s13 = smov 0   ;;  %s616_s0 = inlined_call_operand.vmem [shape: f32[4,8,128], index: 0, kind: input, shape index: {}]   ;;  %s617_s1 = inlined_call_operand.vmem [shape: bf16[4,128,32], index: 1, kind: input, shape index: {}]   ;;  %s618_s2 = inlined_call_operand.vmem [shape: f32[4,1,32], index: 2, kind: input, shape index: {}]   ;;  %s619_s3 = inlined_call_operand.vmem [shape: f32[4,8,32], index: 3, kind: output, shape index: {}]  }
   0x1   :  { %s576_s14 = smov 0  }
   0x2 LB: > { %s25_s15 = sadd.s32 1, %s544_s13  ;;  %p446_p0 = scmp.ge.s32.totalorder %s548_s14, 1  ;;  %s548_s14 = sphi %s576_s14, %s13_s14   ;;  %s544_s13 = sphi %s574_s13, %s621_s13   ;;  %s540_s12 = sphi %s572_s12, %s620_s12  }
   0x3   : > { %p27_p1 = scmp.ge.s32.totalorder %s25_s15, 4  ;;  %p173_p2 = scmp.lt.s32.totalorder %s548_s14, 5 }
   0x5   : > { %s623_s15 = smov (%p27_p1, %s25_s15), 0  ;;  %p174_p3 = pnand %p446_p0, %p173_p2 }
   0x6   : > { %p209_p4 = scmp.lt.s32.totalorder (!%p174_p3), %s540_s12, 3  ;;  %v550_v0 = vmov (!%p174_p3), 0.0   ;;  %vm551_vm0 = vmmov (!%p174_p3), 0   ;;  %vm345_vm1 = vcmask (!%p174_p3), 261120  }
   0x7   : > { %177 = sbr.rel (%p174_p3) target bundleno = 264 (0x108), region = 32  ;;  %472 = vmatprep.subr.bf16.mxu0 (!%p174_p3), %v550_v0  ;;  %488 = vmatprep.mubr.msk.bf16.mxu0 (!%p174_p3), %vm551_vm0, %v550_v0 }
   0xe   : > { %s625_s12 = smov (!%p209_p4, %s540_s12), 3 }
   0xf   : > { %s462_s16 = sshll.u32 %s625_s12, 6  ;;  %s447_s20 = sshll.u32 %s625_s12, 3 }
  0x10   : > { %s220_s19 = scalar_lea.vmem %s617_s1, %s462_s16  ;;  %s215_s23 = scalar_lea.vmem %s616_s0, %s447_s20 }
  0x11   : > { %v518_v1 = vld [vmem:[%s220_s19] sm:$0xff]   ;;  %v519_v2 = vld [vmem:[%s220_s19 + $0x8] sm:$0xff]   ;;  %v520_v3 = vld [vmem:[%s220_s19 + $0x10] sm:$0xff]   ;;  %s223_s26 = scalar_lea.vmem %s618_s2, %s625_s12  ;;  %s230_s29 = scalar_lea.vmem %s619_s3, %s447_s20 }
  0x12   : > { %473 = vmatpush3.bf16.msra.mxu0 %v518_v1  ;;  %v521_v4 = vld [vmem:[%s220_s19 + $0x18] sm:$0xff]   ;;  %v522_v5 = vld [vmem:[%s220_s19 + $0x20] sm:$0xff]   ;;  %v523_v6 = vld [vmem:[%s220_s19 + $0x28] sm:$0xff]  }
  0x13   : > { %474 = vmatprep.subr.bf16.mxu0 %v550_v0  ;;  %v524_v7 = vld [vmem:[%s220_s19 + $0x30] sm:$0xff]   ;;  %v525_v8 = vld [vmem:[%s220_s19 + $0x38] sm:$0xff]   ;;  %v232_v9 = vld [vmem:[%s215_s23] sm:$0xff] }
  0x14   : > { %v233_v10 = vpack.c.bf16 %v232_v9, %v232_v9  ;;  %v451_v11 = vld [vmem:[%s223_s26] ss:$0 sm:$0xff] }
  0x16   : > { %475 = vmatpush3.bf16.msra.mxu0 %v519_v2 }
  0x17   : > { %476 = vmatprep.subr.bf16.mxu0 %v550_v0 }
  0x1a   : > { %477 = vmatpush3.bf16.msra.mxu0 %v520_v3 }
  0x1b   : > { %478 = vmatprep.subr.bf16.mxu0 %v550_v0 }
  0x1e   : > { %479 = vmatpush3.bf16.msra.mxu0 %v521_v4 }
  0x1f   : > { %480 = vmatprep.subr.bf16.mxu0 %v550_v0 }
  0x22   : > { %481 = vmatpush3.bf16.msra.mxu0 %v522_v5 }
  0x23   : > { %482 = vmatprep.subr.bf16.mxu0 %v550_v0 }
  0x26   : > { %483 = vmatpush3.bf16.msra.mxu0 %v523_v6 }
  0x27   : > { %484 = vmatprep.subr.bf16.mxu0 %v550_v0 }
  0x2a   : > { %485 = vmatpush3.bf16.msra.mxu0 %v524_v7 }
  0x2b   : > { %486 = vmatprep.subr.bf16.mxu0 %v550_v0 }
  0x2e   : > { %487 = vmatpush3.bf16.msra.mxu0 %v525_v8 }
  0x31   : > { %489 = vmatmul.mubr.bf16.vlgmr.msra.gmra.mrb[0].mxu0 %v233_v10 }
 0x104   : > { %v339_v12 = vpop.f32.mrb[0].mxu0 }
 0x105   : > { %v340_v13 = vadd.f32 %v451_v11, %v339_v12  ;;  %v490_v14 = vpop.f32.mrb[1].mxu0 }
 0x106   : > { %v342_v15 = vpop.f32.mrb[2].mxu0 }
 0x107   : > { %346 = vst.msk [vmem:[%s230_s29] sm:$0xff] %vm345_vm1, %v340_v13  ;;  %v491_v16 = vpop.f32.mrb[3].mxu0 }
 0x108 PF: > { %s13_s14 = sadd.s32 1, %s548_s14   ;;  %s620_s12 = smov %s544_s13 }
 0x109   : > { %p10_p5 = scmp.ge.s32.totalorder %s13_s14, 6   ;;  %s621_s13 = smov %s623_s15 }
 0x10b   :  { %12 = sbr.rel (!%p10_p5) target bundleno = 2 (0x2), region = 68 }

// kernel: cl_forward.38
= control target key start
LH: loop header
LB: loop body
LE: loop exit
PB: predicated region body
PF: predicated region fallthrough
CT: control target
= control target key end

     0   :  { %vm27_vm0 = vcmask 261120   ;;  %vm181_vm1 = vcmask 785408   ;;  %s298_s0 = inlined_call_operand.vmem [shape: f32[32,32], index: 0, kind: input, shape index: {}]   ;;  %s299_s3 = inlined_call_operand.vmem [shape: bf16[32,96], index: 3, kind: input, shape index: {}]   ;;  %s300_s1 = inlined_call_operand.vmem [shape: f32[1,32], index: 1, kind: input, shape index: {}]   ;;  %s301_s2 = inlined_call_operand.vmem [shape: f32[1,32], index: 2, kind: input, shape index: {}]   ;;  %s302_s4 = inlined_call_operand.vmem [shape: f32[1,96], index: 4, kind: input, shape index: {}]   ;;  %s303_s5 = inlined_call_operand.vmem [shape: f32[32,96], index: 5, kind: output, shape index: {}]  }
   0x1   :  { %v21_v0 = vld [vmem:[%s298_s0] sm:$0xff]  ;;  %v23_v1 = vld [vmem:[%s298_s0 + $0x10] sm:$0xff]  ;;  %v22_v2 = vld [vmem:[%s298_s0 + $0x8] sm:$0xff] }
   0x2   :  { %v28_v3 = vsel %vm27_vm0, %v21_v0, 0.0  ;;  %v34_v4 = vsel %vm27_vm0, %v23_v1, 0.0  ;;  %v24_v5 = vld [vmem:[%s298_s0 + $0x18] sm:$0xff]  ;;  %v31_v6 = vsel %vm27_vm0, %v22_v2, 0.0  ;;  %v209_v28 = vld [vmem:[%s299_s3] sm:$0xff]   ;;  %v210_v29 = vld [vmem:[%s299_s3 + $0x8] sm:$0xff]  }
   0x3   :  { %29 = vadd.xlane.f32.xlu0 %v28_v3  ;;  %35 = vadd.xlane.f32.xlu1 %v34_v4  ;;  %v37_v7 = vsel %vm27_vm0, %v24_v5, 0.0  ;;  %v190_v44 = vld [vmem:[%s300_s1] ss:$0 sm:$0xff] }
   0x4   :  { %201 = vmatprep.subr.bf16.mxu0 %v209_v28  ;;  %v191_v50 = vld [vmem:[%s301_s2] ss:$0 sm:$0xff] }
   0x5   :  { %202 = vmatpush3.bf16.msra.mxu0 %v209_v28  ;;  %v192_v62 = vld [vmem:[%s302_s4] ss:$0 sm:$0xff] }
   0x6   :  { %203 = vmatprep.subr.bf16.mxu0 %v210_v29 }
   0x7   :  { %32 = vadd.xlane.f32.xlu0 %v31_v6  ;;  %38 = vadd.xlane.f32.xlu1 %v37_v7 }
   0x9   :  { %204 = vmatpush3.bf16.msra.mxu0 %v210_v29 }
  0x90   :  { %v30_v8 = vpop.xlane.xlu0 %29  ;;  %v36_v9 = vpop.xlane.xlu1 %35 }
  0x91   :  { %v41_v10 = vmul.f32 0.03125, %v30_v8  ;;  %v43_v11 = vmul.f32 0.03125, %v36_v9 }
  0x93   :  { %v45_v12 = vsub.f32 %v21_v0, %v41_v10  ;;  %v47_v13 = vsub.f32 %v23_v1, %v43_v11 }
  0x94   :  { %v33_v14 = vpop.xlane.xlu0 %32  ;;  %v39_v15 = vpop.xlane.xlu1 %38 }
  0x95   :  { %v42_v16 = vmul.f32 0.03125, %v33_v14  ;;  %v44_v17 = vmul.f32 0.03125, %v39_v15  ;;  %v49_v18 = vmul.f32 %v45_v12, %v45_v12  ;;  %v51_v19 = vmul.f32 %v47_v13, %v47_v13 }
  0x97   :  { %v46_v20 = vsub.f32 %v22_v2, %v42_v16  ;;  %v48_v21 = vsub.f32 %v24_v5, %v44_v17  ;;  %v53_v22 = vsel %vm27_vm0, %v49_v18, 0.0  ;;  %v59_v23 = vsel %vm27_vm0, %v51_v19, 0.0 }
  0x98   :  { %54 = vadd.xlane.f32.xlu0 %v53_v22 }
  0x99   :  { %v50_v24 = vmul.f32 %v46_v20, %v46_v20  ;;  %v52_v25 = vmul.f32 %v48_v21, %v48_v21 }
  0x9b   :  { %v56_v26 = vsel %vm27_vm0, %v50_v24, 0.0  ;;  %v62_v27 = vsel %vm27_vm0, %v52_v25, 0.0 }
  0x9c   :  { %60 = vadd.xlane.f32.xlu0 %v59_v23  ;;  %57 = vadd.xlane.f32.xlu1 %v56_v26 }
  0xa0   :  { %63 = vadd.xlane.f32.xlu1 %v62_v27 }
 0x125   :  { %v55_v30 = vpop.xlane.xlu0 %54 }
 0x126   :  { %v65_v31 = vmul.f32 0.03125, %v55_v30 }
 0x128   :  { %v69_v32 = vadd.f32 1e-05, %v65_v31 }
 0x129   :  { %v58_v33 = vpop.xlane.xlu1 %57  ;;  %v61_v34 = vpop.xlane.xlu0 %60 }
 0x12a   :  { %211 = vrsqrt.f32 %v69_v32  ;;  %v66_v35 = vmul.f32 0.03125, %v58_v33  ;;  %v67_v36 = vmul.f32 0.03125, %v61_v34 }
 0x12c   :  { %v70_v37 = vadd.f32 1e-05, %v66_v35  ;;  %v71_v38 = vadd.f32 1e-05, %v67_v36 }
 0x12d   :  { %v64_v39 = vpop.xlane.xlu1 %63 }
 0x12e   :  { %213 = vrsqrt.f32 %v70_v37  ;;  %v68_v40 = vmul.f32 0.03125, %v64_v39 }
 0x12f   :  { %215 = vrsqrt.f32 %v71_v38 }
 0x130   :  { %v72_v41 = vadd.f32 1e-05, %v68_v40 }
 0x132   :  { %217 = vrsqrt.f32 %v72_v41 }
 0x134   :  { %v212_v42 = vpop.eup %211 }
 0x135   :  { %v77_v43 = vmul.f32 %v212_v42, %v45_v12 }
 0x137   :  { %v87_v48 = vmul.f32 %v190_v44, %v77_v43 }
 0x138   :  { %v214_v45 = vpop.eup %213 }
 0x139   :  { %v216_v46 = vpop.eup %215  ;;  %v78_v47 = vmul.f32 %v214_v45, %v46_v20  ;;  %v97_v54 = vadd.f32 %v191_v50, %v87_v48 }
 0x13a   :  { %v79_v49 = vmul.f32 %v216_v46, %v47_v13 }
 0x13b   :  { %v88_v51 = vmul.f32 %v190_v44, %v78_v47 }
 0x13c   :  { %v218_v52 = vpop.eup %217  ;;  %v89_v56 = vmul.f32 %v190_v44, %v79_v49 }
 0x13d   :  { %v80_v53 = vmul.f32 %v218_v52, %v48_v21  ;;  %v98_v55 = vadd.f32 %v191_v50, %v88_v51 }
 0x13e   :  { %v99_v59 = vadd.f32 %v191_v50, %v89_v56 }
 0x13f   :  { %v106_v57 = vpack.c.bf16 %v98_v55, %v97_v54  ;;  %v90_v58 = vmul.f32 %v190_v44, %v80_v53 }
 0x141   :  { %205 = vmatprep.mubr.msk.bf16.mxu0 %vm27_vm0, %v106_v57  ;;  %v100_v60 = vadd.f32 %v191_v50, %v90_v58 }
 0x143   :  { %v107_v61 = vpack.c.bf16 %v100_v60, %v99_v59 }
 0x145   :  { %206 = vmatmul.mubr.msk.bf16.vlgmr.msra.gmra.mrb[0].mxu0 %vm27_vm0, %v107_v61 }
 0x218   :  { %v207_v63 = vpop.f32.mrb[0].mxu0 }
 0x219   :  { %v175_v0 = vadd.f32 %v207_v63, %v192_v62  ;;  %v166_v1 = vpop.f32.mrb[1].mxu0 }
 0x21a   :  { %v167_v2 = vadd.f32 %v192_v62, %v166_v1  ;;  %v208_v3 = vpop.f32.mrb[2].mxu0 }
 0x21b   :  { %184 = vst.msk [vmem:[%s303_s5 + $0x10] sm:$0xff] %vm181_vm1, %v175_v0  ;;  %v178_v4 = vadd.f32 %v208_v3, %v192_v62  ;;  %v169_v5 = vpop.f32.mrb[3].mxu0 }
 0x21c   :  { %182 = vst.msk [vmem:[%s303_s5] sm:$0xff] %vm181_vm1, %v167_v2  ;;  %v170_v6 = vadd.f32 %v192_v62, %v169_v5 }
 0x21d   :  { %185 = vst.msk [vmem:[%s303_s5 + $0x18] sm:$0xff] %vm181_vm1, %v178_v4 }
 0x21e   :  { %183 = vst.msk [vmem:[%s303_s5 + $0x8] sm:$0xff] %vm181_vm1, %v170_v6 }

// kernel: cl_forward.39
= control target key start
LH: loop header
LB: loop body
LE: loop exit
PB: predicated region body
PF: predicated region fallthrough
CT: control target
= control target key end

     0   :  { %v4314_v0 = vmov 0.0   ;;  %vm143_vm0 = vcmask 64512   ;;  %vm4315_vm1 = vmmov 0   ;;  %vm1648_vm2 = vcmask 27648   ;;  %s5407_s1 = inlined_call_operand.vmem [shape: f32[32,4,8], index: 1, kind: input, shape index: {}]   ;;  %s5408_s0 = inlined_call_operand.vmem [shape: f32[32,4,8], index: 0, kind: input, shape index: {}]   ;;  %s5409_s2 = inlined_call_operand.vmem [shape: f32[32,4,8], index: 2, kind: input, shape index: {}]   ;;  %s5410_s3 = inlined_call_operand.vmem [shape: f32[32,4,8], index: 3, kind: output, shape index: {}]  }
   0x1   :  { %3800 = vmatprep.subr.bf16.mxu0 %v4314_v0  ;;  %3806 = vmatprep.subr.bf16.mxu1 %v4314_v0  ;;  %v79_v1 = vld [vmem:[%s5407_s1] sm:$0xf]  ;;  %v80_v2 = vld [vmem:[%s5407_s1 + $0x4] sm:$0xf]  ;;  %v81_v5 = vld [vmem:[%s5407_s1 + $0x8] sm:$0xf] }
   0x2   :  { %v111_v3 = vpack.c.bf16 %v79_v1, %v79_v1  ;;  %v112_v4 = vpack.c.bf16 %v80_v2, %v80_v2  ;;  %3802 = vmatprep.mubr.msk.bf16.mxu0 %vm4315_vm1, %v4314_v0  ;;  %3808 = vmatprep.mubr.msk.bf16.mxu1 %vm4315_vm1, %v4314_v0  ;;  %v82_v6 = vld [vmem:[%s5407_s1 + $0xc] sm:$0xf]  ;;  %v15_v9 = vld [vmem:[%s5408_s0] sm:$0xf]  ;;  %v16_v10 = vld [vmem:[%s5408_s0 + $0x4] sm:$0xf]  ;;  %v113_v11 = vpack.c.bf16 %v81_v5, %v81_v5 }
   0x3   :  { %v114_v12 = vpack.c.bf16 %v82_v6, %v82_v6  ;;  %v47_v13 = vpack.c.bf16 %v15_v9, %v15_v9  ;;  %v48_v14 = vpack.c.bf16 %v16_v10, %v16_v10  ;;  %v83_v17 = vld [vmem:[%s5407_s1 + $0x10] sm:$0xf]  ;;  %v84_v18 = vld [vmem:[%s5407_s1 + $0x14] sm:$0xf]  ;;  %v17_v19 = vld [vmem:[%s5408_s0 + $0x8] sm:$0xf] }
   0x4   :  { %v148_v7 = vsel %vm143_vm0, %v111_v3, 0  ;;  %v194_v8 = vsel %vm143_vm0, %v112_v4, 0  ;;  %v240_v15 = vsel %vm143_vm0, %v113_v11, 0  ;;  %v18_v20 = vld [vmem:[%s5408_s0 + $0xc] sm:$0xf]  ;;  %v115_v21 = vpack.c.bf16 %v83_v17, %v83_v17 }
   0x5   :  { %3801 = vmatpush3.bf16.xpose.msra.mxu0 %v148_v7  ;;  %3807 = vmatpush3.bf16.xpose.msra.mxu1 %v194_v8  ;;  %v286_v16 = vsel %vm143_vm0, %v114_v12, 0  ;;  %v116_v22 = vpack.c.bf16 %v84_v18, %v84_v18  ;;  %v49_v23 = vpack.c.bf16 %v17_v19, %v17_v19  ;;  %v50_v24 = vpack.c.bf16 %v18_v20, %v18_v20  ;;  %v85_v27 = vld [vmem:[%s5407_s1 + $0x18] sm:$0xf]  ;;  %v86_v28 = vld [vmem:[%s5407_s1 + $0x1c] sm:$0xf] }
   0x6   :  { %3812 = vmatprep.subr.bf16.mxu0 %v4314_v0  ;;  %3818 = vmatprep.subr.bf16.mxu1 %v4314_v0  ;;  %v332_v25 = vsel %vm143_vm0, %v115_v21, 0  ;;  %v19_v29 = vld [vmem:[%s5408_s0 + $0x10] sm:$0xf]  ;;  %v20_v30 = vld [vmem:[%s5408_s0 + $0x14] sm:$0xf]  ;;  %v117_v31 = vpack.c.bf16 %v85_v27, %v85_v27  ;;  %v118_v32 = vpack.c.bf16 %v86_v28, %v86_v28  ;;  %vm2101_vm3 = vcmask 1041408  }
   0x7   :  { %v378_v26 = vsel %vm143_vm0, %v116_v22, 0  ;;  %v51_v33 = vpack.c.bf16 %v19_v29, %v19_v29  ;;  %v52_v34 = vpack.c.bf16 %v20_v30, %v20_v30  ;;  %v87_v37 = vld [vmem:[%s5407_s1 + $0x20] sm:$0xf]  ;;  %v88_v38 = vld [vmem:[%s5407_s1 + $0x24] sm:$0xf]  ;;  %vm2097_vm4 = vcmask 31744  }
   0x8   :  { %v424_v35 = vsel %vm143_vm0, %v117_v31, 0  ;;  %v470_v36 = vsel %vm143_vm0, %v118_v32, 0  ;;  %v21_v39 = vld [vmem:[%s5408_s0 + $0x18] sm:$0xf]  ;;  %v22_v40 = vld [vmem:[%s5408_s0 + $0x1c] sm:$0xf]  ;;  %v119_v41 = vpack.c.bf16 %v87_v37, %v87_v37  ;;  %v120_v42 = vpack.c.bf16 %v88_v38, %v88_v38 }
   0x9   :  { %v53_v43 = vpack.c.bf16 %v21_v39, %v21_v39  ;;  %v54_v44 = vpack.c.bf16 %v22_v40, %v22_v40  ;;  %v89_v47 = vld [vmem:[%s5407_s1 + $0x28] sm:$0xf]  ;;  %v90_v48 = vld [vmem:[%s5407_s1 + $0x2c] sm:$0xf]  ;;  %v23_v49 = vld [vmem:[%s5408_s0 + $0x20] sm:$0xf] }
   0xa   :  { %v516_v45 = vsel %vm143_vm0, %v119_v41, 0  ;;  %v562_v46 = vsel %vm143_vm0, %v120_v42, 0  ;;  %v24_v50 = vld [vmem:[%s5408_s0 + $0x24] sm:$0xf]  ;;  %v121_v51 = vpack.c.bf16 %v89_v47, %v89_v47  ;;  %v122_v52 = vpack.c.bf16 %v90_v48, %v90_v48  ;;  %v91_v57 = vld [vmem:[%s5407_s1 + $0x30] sm:$0xf] }
   0xb   :  { %v55_v53 = vpack.c.bf16 %v23_v49, %v23_v49  ;;  %v56_v54 = vpack.c.bf16 %v24_v50, %v24_v50  ;;  %v92_v58 = vld [vmem:[%s5407_s1 + $0x34] sm:$0xf]  ;;  %v25_v59 = vld [vmem:[%s5408_s0 + $0x28] sm:$0xf]  ;;  %v26_v60 = vld [vmem:[%s5408_s0 + $0x2c] sm:$0xf]  ;;  %v123_v61 = vpack.c.bf16 %v91_v57, %v91_v57 }
   0xc   :  { %3803 = vmatmul.mubr.msk.bf16.vlgmr.msra.gmra.mrb[0].mxu0 %vm143_vm0, %v47_v13  ;;  %3809 = vmatmul.mubr.msk.bf16.vlgmr.msra.gmra.mrb[0].mxu1 %vm143_vm0, %v48_v14  ;;  %v608_v55 = vsel %vm143_vm0, %v121_v51, 0  ;;  %v654_v56 = vsel %vm143_vm0, %v122_v52, 0  ;;  %v124_v62 = vpack.c.bf16 %v92_v58, %v92_v58  ;;  %v57_v63 = vpack.c.bf16 %v25_v59, %v25_v59  ;;  %v93_v4 = vld [vmem:[%s5407_s1 + $0x38] sm:$0xf]  ;;  %v94_v5 = vld [vmem:[%s5407_s1 + $0x3c] sm:$0xf] }
   0xd   :  { %3813 = vmatpush3.bf16.xpose.msra.mxu0 %v240_v15  ;;  %3819 = vmatpush3.bf16.xpose.msra.mxu1 %v286_v16  ;;  %v58_v1 = vpack.c.bf16 %v26_v60, %v26_v60  ;;  %v700_v2 = vsel %vm143_vm0, %v123_v61, 0  ;;  %v27_v6 = vld [vmem:[%s5408_s0 + $0x30] sm:$0xf]  ;;  %v28_v7 = vld [vmem:[%s5408_s0 + $0x34] sm:$0xf]  ;;  %v125_v8 = vpack.c.bf16 %v93_v4, %v93_v4  ;;  %v126_v9 = vpack.c.bf16 %v94_v5, %v94_v5 }
   0xe   :  { %3814 = vmatprep.mubr.msk.bf16.mxu0 %vm4315_vm1, %v4314_v0  ;;  %3820 = vmatprep.mubr.msk.bf16.mxu1 %vm4315_vm1, %v4314_v0  ;;  %v746_v3 = vsel %vm143_vm0, %v124_v62, 0  ;;  %v59_v10 = vpack.c.bf16 %v27_v6, %v27_v6  ;;  %v60_v11 = vpack.c.bf16 %v28_v7, %v28_v7  ;;  %v95_v14 = vld [vmem:[%s5407_s1 + $0x40] sm:$0xf]  ;;  %v96_v15 = vld [vmem:[%s5407_s1 + $0x44] sm:$0xf]  ;;  %vm3571_vm5 = vcmask 60416  }
   0xf   :  { %3824 = vmatprep.subr.bf16.mxu0 %v4314_v0  ;;  %3830 = vmatprep.subr.bf16.mxu1 %v4314_v0  ;;  %v792_v12 = vsel %vm143_vm0, %v125_v8, 0  ;;  %v838_v13 = vsel %vm143_vm0, %v126_v9, 0  ;;  %v29_v16 = vld [vmem:[%s5408_s0 + $0x38] sm:$0xf]  ;;  %v30_v17 = vld [vmem:[%s5408_s0 + $0x3c] sm:$0xf]  ;;  %v127_v18 = vpack.c.bf16 %v95_v14, %v95_v14  ;;  %v128_v19 = vpack.c.bf16 %v96_v15, %v96_v15 }
  0x10   :  { %v61_v20 = vpack.c.bf16 %v29_v16, %v29_v16  ;;  %v62_v21 = vpack.c.bf16 %v30_v17, %v30_v17  ;;  %v32_v27 = vld [vmem:[%s5408_s0 + $0x44] sm:$0xf]  ;;  %v34_v37 = vld [vmem:[%s5408_s0 + $0x4c] sm:$0xf]  ;;  %v36_v47 = vld [vmem:[%s5408_s0 + $0x54] sm:$0xf] }
  0x11   :  { %v884_v22 = vsel %vm143_vm0, %v127_v18, 0  ;;  %v64_v31 = vpack.c.bf16 %v32_v27, %v32_v27  ;;  %v66_v41 = vpack.c.bf16 %v34_v37, %v34_v37  ;;  %v68_v51 = vpack.c.bf16 %v36_v47, %v36_v47  ;;  %v38_v57 = vld [vmem:[%s5408_s0 + $0x5c] sm:$0xf]  ;;  %v40_v4 = vld [vmem:[%s5408_s0 + $0x64] sm:$0xf] }
  0x12   :  { %v70_v61 = vpack.c.bf16 %v38_v57, %v38_v57  ;;  %v72_v8 = vpack.c.bf16 %v40_v4, %v40_v4  ;;  %v42_v14 = vld [vmem:[%s5408_s0 + $0x6c] sm:$0xf] }
  0x13   :  { %v74_v18 = vpack.c.bf16 %v42_v14, %v42_v14 }
  0x14   :  { %3815 = vmatmul.mubr.msk.bf16.vlgmr.msra.gmra.mrb[4].mxu0 %vm143_vm0, %v49_v23  ;;  %3821 = vmatmul.mubr.msk.bf16.vlgmr.msra.gmra.mrb[4].mxu1 %vm143_vm0, %v50_v24  ;;  %v930_v23 = vsel %vm143_vm0, %v128_v19, 0  ;;  %v97_v24 = vld [vmem:[%s5407_s1 + $0x48] sm:$0xf] }
  0x15   :  { %3825 = vmatpush3.bf16.xpose.msra.mxu0 %v332_v25  ;;  %3831 = vmatpush3.bf16.xpose.msra.mxu1 %v378_v26  ;;  %v98_v25 = vld [vmem:[%s5407_s1 + $0x4c] sm:$0xf]  ;;  %v31_v26 = vld [vmem:[%s5408_s0 + $0x40] sm:$0xf]  ;;  %v129_v28 = vpack.c.bf16 %v97_v24, %v97_v24  ;;  %v44_v24 = vld [vmem:[%s5408_s0 + $0x74] sm:$0xf] }
  0x16   :  { %3826 = vmatprep.mubr.msk.bf16.mxu0 %vm4315_vm1, %v4314_v0  ;;  %3832 = vmatprep.mubr.msk.bf16.mxu1 %vm4315_vm1, %v4314_v0  ;;  %v130_v29 = vpack.c.bf16 %v98_v25, %v98_v25  ;;  %v63_v30 = vpack.c.bf16 %v31_v26, %v31_v26 }
  0x17   :  { %3836 = vmatprep.subr.bf16.mxu0 %v4314_v0  ;;  %3842 = vmatprep.subr.bf16.mxu1 %v4314_v0  ;;  %v976_v32 = vsel %vm143_vm0, %v129_v28, 0  ;;  %v76_v28 = vpack.c.bf16 %v44_v24, %v44_v24 }
  0x1c   :  { %3827 = vmatmul.mubr.msk.bf16.vlgmr.msra.gmra.mrb[8].mxu0 %vm143_vm0, %v51_v33  ;;  %3833 = vmatmul.mubr.msk.bf16.vlgmr.msra.gmra.mrb[8].mxu1 %vm143_vm0, %v52_v34  ;;  %v1022_v33 = vsel %vm143_vm0, %v130_v29, 0  ;;  %v99_v34 = vld [vmem:[%s5407_s1 + $0x50] sm:$0xf] }
  0x1d   :  { %3837 = vmatpush3.bf16.xpose.msra.mxu0 %v424_v35  ;;  %3843 = vmatpush3.bf16.xpose.msra.mxu1 %v470_v36  ;;  %v100_v35 = vld [vmem:[%s5407_s1 + $0x54] sm:$0xf]  ;;  %v33_v36 = vld [vmem:[%s5408_s0 + $0x48] sm:$0xf]  ;;  %v131_v38 = vpack.c.bf16 %v99_v34, %v99_v34 }
  0x1e   :  { %3838 = vmatprep.mubr.msk.bf16.mxu0 %vm4315_vm1, %v4314_v0  ;;  %3844 = vmatprep.mubr.msk.bf16.mxu1 %vm4315_vm1, %v4314_v0  ;;  %v132_v39 = vpack.c.bf16 %v100_v35, %v100_v35  ;;  %v65_v40 = vpack.c.bf16 %v33_v36, %v33_v36 }
  0x1f   :  { %3848 = vmatprep.subr.bf16.mxu0 %v4314_v0  ;;  %3854 = vmatprep.subr.bf16.mxu1 %v4314_v0  ;;  %v1068_v42 = vsel %vm143_vm0, %v131_v38, 0 }
  0x24   :  { %3839 = vmatmul.mubr.msk.bf16.vlgmr.msra.gmra.mrb[12].mxu0 %vm143_vm0, %v53_v43  ;;  %3845 = vmatmul.mubr.msk.bf16.vlgmr.msra.gmra.mrb[12].mxu1 %vm143_vm0, %v54_v44  ;;  %v1114_v43 = vsel %vm143_vm0, %v132_v39, 0  ;;  %v101_v44 = vld [vmem:[%s5407_s1 + $0x58] sm:$0xf] }
  0x25   :  { %3849 = vmatpush3.bf16.xpose.msra.mxu0 %v516_v45  ;;  %3855 = vmatpush3.bf16.xpose.msra.mxu1 %v562_v46  ;;  %v102_v45 = vld [vmem:[%s5407_s1 + $0x5c] sm:$0xf]  ;;  %v35_v46 = vld [vmem:[%s5408_s0 + $0x50] sm:$0xf]  ;;  %v133_v48 = vpack.c.bf16 %v101_v44, %v101_v44 }
  0x26   :  { %3850 = vmatprep.mubr.msk.bf16.mxu0 %vm4315_vm1, %v4314_v0  ;;  %3856 = vmatprep.mubr.msk.bf16.mxu1 %vm4315_vm1, %v4314_v0  ;;  %v134_v49 = vpack.c.bf16 %v102_v45, %v102_v45  ;;  %v67_v50 = vpack.c.bf16 %v35_v46, %v35_v46 }
  0x27   :  { %3860 = vmatprep.subr.bf16.mxu0 %v4314_v0  ;;  %3866 = vmatprep.subr.bf16.mxu1 %v4314_v0  ;;  %v1160_v52 = vsel %vm143_vm0, %v133_v48, 0 }
  0x2c   :  { %3851 = vmatmul.mubr.msk.bf16.vlgmr.msra.gmra.mrb[16].mxu0 %vm143_vm0, %v55_v53  ;;  %3857 = vmatmul.mubr.msk.bf16.vlgmr.msra.gmra.mrb[16].mxu1 %vm143_vm0, %v56_v54  ;;  %v1206_v53 = vsel %vm143_vm0, %v134_v49, 0  ;;  %v103_v54 = vld [vmem:[%s5407_s1 + $0x60] sm:$0xf] }
  0x2d   :  { %3861 = vmatpush3.bf16.xpose.msra.mxu0 %v608_v55  ;;  %3867 = vmatpush3.bf16.xpose.msra.mxu1 %v654_v56  ;;  %v104_v55 = vld [vmem:[%s5407_s1 + $0x64] sm:$0xf]  ;;  %v37_v56 = vld [vmem:[%s5408_s0 + $0x58] sm:$0xf]  ;;  %v135_v58 = vpack.c.bf16 %v103_v54, %v103_v54 }
  0x2e   :  { %3862 = vmatprep.mubr.msk.bf16.mxu0 %vm4315_vm1, %v4314_v0  ;;  %3868 = vmatprep.mubr.msk.bf16.mxu1 %vm4315_vm1, %v4314_v0  ;;  %v136_v59 = vpack.c.bf16 %v104_v55, %v104_v55  ;;  %v69_v60 = vpack.c.bf16 %v37_v56, %v37_v56 }
  0x2f   :  { %3872 = vmatprep.subr.bf16.mxu0 %v4314_v0  ;;  %3878 = vmatprep.subr.bf16.mxu1 %v4314_v0  ;;  %v1252_v62 = vsel %vm143_vm0, %v135_v58, 0 }
  0x34   :  { %3863 = vmatmul.mubr.msk.bf16.vlgmr.msra.gmra.mrb[20].mxu0 %vm143_vm0, %v57_v63  ;;  %3869 = vmatmul.mubr.msk.bf16.vlgmr.msra.gmra.mrb[20].mxu1 %vm143_vm0, %v58_v1  ;;  %v1298_v63 = vsel %vm143_vm0, %v136_v59, 0  ;;  %v105_v1 = vld [vmem:[%s5407_s1 + $0x68] sm:$0xf] }
  0x35   :  { %3873 = vmatpush3.bf16.xpose.msra.mxu0 %v700_v2  ;;  %3879 = vmatpush3.bf16.xpose.msra.mxu1 %v746_v3  ;;  %v106_v2 = vld [vmem:[%s5407_s1 + $0x6c] sm:$0xf]  ;;  %v39_v3 = vld [vmem:[%s5408_s0 + $0x60] sm:$0xf]  ;;  %v137_v5 = vpack.c.bf16 %v105_v1, %v105_v1 }
  0x36   :  { %3874 = vmatprep.mubr.msk.bf16.mxu0 %vm4315_vm1, %v4314_v0  ;;  %3880 = vmatprep.mubr.msk.bf16.mxu1 %vm4315_vm1, %v4314_v0  ;;  %v138_v6 = vpack.c.bf16 %v106_v2, %v106_v2  ;;  %v71_v7 = vpack.c.bf16 %v39_v3, %v39_v3 }
  0x37   :  { %3884 = vmatprep.subr.bf16.mxu0 %v4314_v0  ;;  %3890 = vmatprep.subr.bf16.mxu1 %v4314_v0  ;;  %v1344_v9 = vsel %vm143_vm0, %v137_v5, 0 }
  0x3c   :  { %3875 = vmatmul.mubr.msk.bf16.vlgmr.msra.gmra.mrb[24].mxu0 %vm143_vm0, %v59_v10  ;;  %3881 = vmatmul.mubr.msk.bf16.vlgmr.msra.gmra.mrb[24].mxu1 %vm143_vm0, %v60_v11  ;;  %v1390_v10 = vsel %vm143_vm0, %v138_v6, 0  ;;  %v107_v11 = vld [vmem:[%s5407_s1 + $0x70] sm:$0xf] }
  0x3d   :  { %3885 = vmatpush3.bf16.xpose.msra.mxu0 %v792_v12  ;;  %3891 = vmatpush3.bf16.xpose.msra.mxu1 %v838_v13  ;;  %v108_v12 = vld [vmem:[%s5407_s1 + $0x74] sm:$0xf]  ;;  %v41_v13 = vld [vmem:[%s5408_s0 + $0x68] sm:$0xf]  ;;  %v139_v15 = vpack.c.bf16 %v107_v11, %v107_v11 }
  0x3e   :  { %3886 = vmatprep.mubr.msk.bf16.mxu0 %vm4315_vm1, %v4314_v0  ;;  %3892 = vmatprep.mubr.msk.bf16.mxu1 %vm4315_vm1, %v4314_v0  ;;  %v140_v16 = vpack.c.bf16 %v108_v12, %v108_v12  ;;  %v73_v17 = vpack.c.bf16 %v41_v13, %v41_v13 }
  0x3f   :  { %3896 = vmatprep.subr.bf16.mxu0 %v4314_v0  ;;  %3902 = vmatprep.subr.bf16.mxu1 %v4314_v0  ;;  %v1436_v19 = vsel %vm143_vm0, %v139_v15, 0 }
  0x44   :  { %3887 = vmatmul.mubr.msk.bf16.vlgmr.msra.gmra.mrb[28].mxu0 %vm143_vm0, %v61_v20  ;;  %3893 = vmatmul.mubr.msk.bf16.vlgmr.msra.gmra.mrb[28].mxu1 %vm143_vm0, %v62_v21  ;;  %v1482_v20 = vsel %vm143_vm0, %v140_v16, 0  ;;  %v109_v21 = vld [vmem:[%s5407_s1 + $0x78] sm:$0xf] }
  0x45   :  { %3897 = vmatpush3.bf16.xpose.msra.mxu0 %v884_v22  ;;  %3903 = vmatpush3.bf16.xpose.msra.mxu1 %v930_v23  ;;  %v110_v22 = vld [vmem:[%s5407_s1 + $0x7c] sm:$0xf]  ;;  %v43_v23 = vld [vmem:[%s5408_s0 + $0x70] sm:$0xf]  ;;  %v141_v25 = vpack.c.bf16 %v109_v21, %v109_v21 }
  0x46   :  { %3898 = vmatprep.mubr.msk.bf16.mxu0 %vm4315_vm1, %v4314_v0  ;;  %3904 = vmatprep.mubr.msk.bf16.mxu1 %vm4315_vm1, %v4314_v0  ;;  %v142_v26 = vpack.c.bf16 %v110_v22, %v110_v22  ;;  %v75_v27 = vpack.c.bf16 %v43_v23, %v43_v23 }
  0x47   :  { %3908 = vmatprep.subr.bf16.mxu0 %v4314_v0  ;;  %3914 = vmatprep.subr.bf16.mxu1 %v4314_v0  ;;  %v1528_v29 = vsel %vm143_vm0, %v141_v25, 0 }
  0x4c   :  { %3899 = vmatmul.mubr.msk.bf16.vlgmr.msra.gmra.mrb[32].mxu0 %vm143_vm0, %v63_v30  ;;  %3905 = vmatmul.mubr.msk.bf16.vlgmr.msra.gmra.mrb[32].mxu1 %vm143_vm0, %v64_v31  ;;  %v1574_v30 = vsel %vm143_vm0, %v142_v26, 0  ;;  %v45_v31 = vld [vmem:[%s5408_s0 + $0x78] sm:$0xf] }
  0x4d   :  { %3909 = vmatpush3.bf16.xpose.msra.mxu0 %v976_v32  ;;  %3915 = vmatpush3.bf16.xpose.msra.mxu1 %v1022_v33  ;;  %v46_v32 = vld [vmem:[%s5408_s0 + $0x7c] sm:$0xf]  ;;  %v77_v33 = vpack.c.bf16 %v45_v31, %v45_v31 }
  0x4e   :  { %3910 = vmatprep.mubr.msk.bf16.mxu0 %vm4315_vm1, %v4314_v0  ;;  %3916 = vmatprep.mubr.msk.bf16.mxu1 %vm4315_vm1, %v4314_v0  ;;  %v78_v34 = vpack.c.bf16 %v46_v32, %v46_v32 }
  0x4f   :  { %3920 = vmatprep.subr.bf16.mxu0 %v4314_v0  ;;  %3926 = vmatprep.subr.bf16.mxu1 %v4314_v0 }
  0x54   :  { %3911 = vmatmul.mubr.msk.bf16.vlgmr.msra.gmra.mrb[36].mxu0 %vm143_vm0, %v65_v40  ;;  %3917 = vmatmul.mubr.msk.bf16.vlgmr.msra.gmra.mrb[36].mxu1 %vm143_vm0, %v66_v41 }
  0x55   :  { %3921 = vmatpush3.bf16.xpose.msra.mxu0 %v1068_v42  ;;  %3927 = vmatpush3.bf16.xpose.msra.mxu1 %v1114_v43 }
  0x56   :  { %3922 = vmatprep.mubr.msk.bf16.mxu0 %vm4315_vm1, %v4314_v0  ;;  %3928 = vmatprep.mubr.msk.bf16.mxu1 %vm4315_vm1, %v4314_v0 }
  0x57   :  { %3932 = vmatprep.subr.bf16.mxu0 %v4314_v0  ;;  %3938 = vmatprep.subr.bf16.mxu1 %v4314_v0 }
  0x5c   :  { %3923 = vmatmul.mubr.msk.bf16.vlgmr.msra.gmra.mrb[40].mxu0 %vm143_vm0, %v67_v50  ;;  %3929 = vmatmul.mubr.msk.bf16.vlgmr.msra.gmra.mrb[40].mxu1 %vm143_vm0, %v68_v51 }
  0x5d   :  { %3933 = vmatpush3.bf16.xpose.msra.mxu0 %v1160_v52  ;;  %3939 = vmatpush3.bf16.xpose.msra.mxu1 %v1206_v53 }
  0x5e   :  { %3934 = vmatprep.mubr.msk.bf16.mxu0 %vm4315_vm1, %v4314_v0  ;;  %3940 = vmatprep.mubr.msk.bf16.mxu1 %vm4315_vm1, %v4314_v0 }
  0x5f   :  { %3944 = vmatprep.subr.bf16.mxu0 %v4314_v0  ;;  %3950 = vmatprep.subr.bf16.mxu1 %v4314_v0 }
  0x64   :  { %3935 = vmatmul.mubr.msk.bf16.vlgmr.msra.gmra.mrb[44].mxu0 %vm143_vm0, %v69_v60  ;;  %3941 = vmatmul.mubr.msk.bf16.vlgmr.msra.gmra.mrb[44].mxu1 %vm143_vm0, %v70_v61 }
  0x65   :  { %3945 = vmatpush3.bf16.xpose.msra.mxu0 %v1252_v62  ;;  %3951 = vmatpush3.bf16.xpose.msra.mxu1 %v1298_v63 }
  0x66   :  { %3946 = vmatprep.mubr.msk.bf16.mxu0 %vm4315_vm1, %v4314_v0  ;;  %3956 = vmatprep.subr.bf16.mxu0 %v4314_v0 }
  0x67   :  { %3952 = vmatprep.mubr.msk.bf16.mxu1 %vm4315_vm1, %v4314_v0  ;;  %3962 = vmatprep.subr.bf16.mxu1 %v4314_v0 }
  0x6c   :  { %3947 = vmatmul.mubr.msk.bf16.vlgmr.msra.gmra.mrb[48].mxu0 %vm143_vm0, %v71_v7  ;;  %3953 = vmatmul.mubr.msk.bf16.vlgmr.msra.gmra.mrb[48].mxu1 %vm143_vm0, %v72_v8 }
  0x6d   :  { %3957 = vmatpush3.bf16.xpose.msra.mxu0 %v1344_v9  ;;  %3963 = vmatpush3.bf16.xpose.msra.mxu1 %v1390_v10 }
  0x6e   :  { %3958 = vmatprep.mubr.msk.bf16.mxu0 %vm4315_vm1, %v4314_v0  ;;  %3968 = vmatprep.subr.bf16.mxu0 %v4314_v0 }
  0x6f   :  { %3964 = vmatprep.mubr.msk.bf16.mxu1 %vm4315_vm1, %v4314_v0  ;;  %3974 = vmatprep.subr.bf16.mxu1 %v4314_v0 }
  0x74   :  { %3959 = vmatmul.mubr.msk.bf16.vlgmr.msra.gmra.mrb[52].mxu0 %vm143_vm0, %v73_v17  ;;  %3965 = vmatmul.mubr.msk.bf16.vlgmr.msra.gmra.mrb[52].mxu1 %vm143_vm0, %v74_v18 }
  0x75   :  { %3969 = vmatpush3.bf16.xpose.msra.mxu0 %v1436_v19  ;;  %3975 = vmatpush3.bf16.xpose.msra.mxu1 %v1482_v20 }
  0x76   :  { %3970 = vmatprep.mubr.msk.bf16.mxu0 %vm4315_vm1, %v4314_v0  ;;  %3980 = vmatprep.subr.bf16.mxu0 %v4314_v0 }
  0x77   :  { %3976 = vmatprep.mubr.msk.bf16.mxu1 %vm4315_vm1, %v4314_v0  ;;  %3986 = vmatprep.subr.bf16.mxu1 %v4314_v0 }
  0x7c   :  { %3971 = vmatmul.mubr.msk.bf16.vlgmr.msra.gmra.mrb[56].mxu0 %vm143_vm0, %v75_v27  ;;  %3977 = vmatmul.mubr.msk.bf16.vlgmr.msra.gmra.mrb[56].mxu1 %vm143_vm0, %v76_v28 }
  0x7d   :  { %3981 = vmatpush3.bf16.xpose.msra.mxu0 %v1528_v29  ;;  %3987 = vmatpush3.bf16.xpose.msra.mxu1 %v1574_v30 }
  0x7e   :  { %3982 = vmatprep.mubr.msk.bf16.mxu0 %vm4315_vm1, %v4314_v0  ;;  %3988 = vmatprep.mubr.msk.bf16.mxu1 %vm4315_vm1, %v4314_v0 }
  0x7f   :  { %3992 = vmatprep.subr.bf16.mxu0 %v4314_v0  ;;  %3998 = vmatprep.subr.bf16.mxu1 %v4314_v0 }
  0x84   :  { %3983 = vmatmul.mubr.msk.bf16.vlgmr.msra.gmra.mrb[60].mxu0 %vm143_vm0, %v77_v33  ;;  %3989 = vmatmul.mubr.msk.bf16.vlgmr.msra.gmra.mrb[60].mxu1 %vm143_vm0, %v78_v34 }
  0x85   :  { %3994 = vmatprep.mubr.msk.bf16.mxu0 %vm4315_vm1, %v4314_v0  ;;  %4000 = vmatprep.mubr.msk.bf16.mxu1 %vm4315_vm1, %v4314_v0 }
  0xdf   :  { %v184_v35 = vpop.f32.mrb[0].mxu0  ;;  %v230_v36 = vpop.f32.mrb[0].mxu1 }
  0xe0   :  { %v4694_v37 = vmul.f32 0.35355338, %v184_v35  ;;  %v3804_v38 = vpop.f32.mrb[1].mxu0  ;;  %v4696_v39 = vmul.f32 0.35355338, %v230_v36  ;;  %v3810_v40 = vpop.f32.mrb[1].mxu1 }
  0xe1   :  { %v187_v41 = vpop.f32.mrb[2].mxu0  ;;  %v233_v42 = vpop.f32.mrb[2].mxu1 }
  0xe2   :  { %v3805_v43 = vpop.f32.mrb[3].mxu0  ;;  %v1649_v44 = vsel %vm1648_vm2, %v4694_v37, -inf  ;;  %v3811_v45 = vpop.f32.mrb[3].mxu1  ;;  %v1652_v46 = vsel %vm1648_vm2, %v4696_v39, -inf }
  0xe3   :  { %1650 = vmax.xlane.f32.xlu0 %v1649_v44 }
  0xe7   :  { %1653 = vmax.xlane.f32.xlu0 %v1652_v46  ;;  %v276_v47 = vpop.f32.mrb[4].mxu0  ;;  %v322_v48 = vpop.f32.mrb[4].mxu1 }
  0xe8   :  { %v4702_v49 = vmul.f32 0.35355338, %v276_v47  ;;  %v3816_v50 = vpop.f32.mrb[5].mxu0  ;;  %v4704_v51 = vmul.f32 0.35355338, %v322_v48  ;;  %v3822_v52 = vpop.f32.mrb[5].mxu1 }
  0xe9   :  { %v279_v53 = vpop.f32.mrb[6].mxu0  ;;  %v325_v54 = vpop.f32.mrb[6].mxu1 }
  0xea   :  { %v3817_v55 = vpop.f32.mrb[7].mxu0  ;;  %v1655_v56 = vsel %vm1648_vm2, %v4702_v49, -inf  ;;  %v3823_v57 = vpop.f32.mrb[7].mxu1  ;;  %v1658_v58 = vsel %vm1648_vm2, %v4704_v51, -inf }
  0xeb   :  { %1656 = vmax.xlane.f32.xlu1 %v1655_v56 }
  0xef   :  { %v414_v59 = vpop.f32.mrb[8].mxu1  ;;  %1659 = vmax.xlane.f32.xlu1 %v1658_v58  ;;  %v368_v60 = vpop.f32.mrb[8].mxu0 }
  0xf0   :  { %v4710_v61 = vmul.f32 0.35355338, %v414_v59  ;;  %v4712_v62 = vmul.f32 0.35355338, %v368_v60  ;;  %v3828_v63 = vpop.f32.mrb[9].mxu0  ;;  %v3834_v1 = vpop.f32.mrb[9].mxu1 }
  0xf1   :  { %v417_v2 = vpop.f32.mrb[10].mxu1  ;;  %v371_v3 = vpop.f32.mrb[10].mxu0 }
  0xf2   :  { %v1664_v4 = vsel %vm1648_vm2, %v4710_v61, -inf  ;;  %v1661_v5 = vsel %vm1648_vm2, %v4712_v62, -inf  ;;  %v3829_v6 = vpop.f32.mrb[11].mxu0  ;;  %v3835_v7 = vpop.f32.mrb[11].mxu1 }
  0xf3   :  { %1665 = vmax.xlane.f32.xlu1 %v1664_v4  ;;  %1662 = vmax.xlane.f32.xlu0 %v1661_v5 }
  0xf7   :  { %v460_v8 = vpop.f32.mrb[12].mxu0  ;;  %v506_v9 = vpop.f32.mrb[12].mxu1 }
  0xf8   :  { %v4718_v10 = vmul.f32 0.35355338, %v460_v8  ;;  %v4720_v11 = vmul.f32 0.35355338, %v506_v9  ;;  %v3840_v12 = vpop.f32.mrb[13].mxu0  ;;  %v3846_v13 = vpop.f32.mrb[13].mxu1 }
  0xf9   :  { %v509_v14 = vpop.f32.mrb[14].mxu1  ;;  %v463_v15 = vpop.f32.mrb[14].mxu0 }
  0xfa   :  { %v1670_v16 = vsel %vm1648_vm2, %v4720_v11, -inf  ;;  %v1667_v17 = vsel %vm1648_vm2, %v4718_v10, -inf  ;;  %v3841_v18 = vpop.f32.mrb[15].mxu0  ;;  %v3847_v19 = vpop.f32.mrb[15].mxu1 }
  0xfb   :  { %1671 = vmax.xlane.f32.xlu1 %v1670_v16  ;;  %1668 = vmax.xlane.f32.xlu0 %v1667_v17 }
  0xff   :  { %v552_v20 = vpop.f32.mrb[16].mxu0  ;;  %v598_v21 = vpop.f32.mrb[16].mxu1 }
 0x100   :  { %v4726_v22 = vmul.f32 0.35355338, %v552_v20  ;;  %v4728_v23 = vmul.f32 0.35355338, %v598_v21  ;;  %v3852_v24 = vpop.f32.mrb[17].mxu0  ;;  %v3858_v25 = vpop.f32.mrb[17].mxu1 }
 0x101   :  { %v555_v26 = vpop.f32.mrb[18].mxu0  ;;  %v601_v27 = vpop.f32.mrb[18].mxu1 }
 0x102   :  { %v1676_v28 = vsel %vm1648_vm2, %v4728_v23, -inf  ;;  %v1673_v29 = vsel %vm1648_vm2, %v4726_v22, -inf  ;;  %v3853_v30 = vpop.f32.mrb[19].mxu0  ;;  %v3859_v31 = vpop.f32.mrb[19].mxu1 }
 0x103   :  { %1677 = vmax.xlane.f32.xlu1 %v1676_v28  ;;  %1674 = vmax.xlane.f32.xlu0 %v1673_v29 }
 0x107   :  { %v644_v32 = vpop.f32.mrb[20].mxu0  ;;  %v690_v33 = vpop.f32.mrb[20].mxu1 }
 0x108   :  { %v4734_v34 = vmul.f32 0.35355338, %v644_v32  ;;  %v4736_v35 = vmul.f32 0.35355338, %v690_v33  ;;  %v3864_v36 = vpop.f32.mrb[21].mxu0  ;;  %v3870_v38 = vpop.f32.mrb[21].mxu1 }
 0x109   :  { %v647_v40 = vpop.f32.mrb[22].mxu0  ;;  %v693_v41 = vpop.f32.mrb[22].mxu1 }
 0x10a   :  { %v1682_v42 = vsel %vm1648_vm2, %v4736_v35, -inf  ;;  %v1679_v43 = vsel %vm1648_vm2, %v4734_v34, -inf  ;;  %v3865_v44 = vpop.f32.mrb[23].mxu0  ;;  %v3871_v45 = vpop.f32.mrb[23].mxu1 }
 0x10b   :  { %1683 = vmax.xlane.f32.xlu1 %v1682_v42  ;;  %1680 = vmax.xlane.f32.xlu0 %v1679_v43 }
 0x10f   :  { %v736_v46 = vpop.f32.mrb[24].mxu0  ;;  %v782_v47 = vpop.f32.mrb[24].mxu1 }
 0x110   :  { %v4742_v48 = vmul.f32 0.35355338, %v736_v46  ;;  %v4744_v50 = vmul.f32 0.35355338, %v782_v47  ;;  %v3876_v52 = vpop.f32.mrb[25].mxu0  ;;  %v3882_v53 = vpop.f32.mrb[25].mxu1 }
 0x111   :  { %v739_v54 = vpop.f32.mrb[26].mxu0  ;;  %v785_v55 = vpop.f32.mrb[26].mxu1 }
 0x112   :  { %v1688_v56 = vsel %vm1648_vm2, %v4744_v50, -inf  ;;  %v1685_v57 = vsel %vm1648_vm2, %v4742_v48, -inf  ;;  %v3877_v58 = vpop.f32.mrb[27].mxu0  ;;  %v3883_v59 = vpop.f32.mrb[27].mxu1 }
 0x113   :  { %1689 = vmax.xlane.f32.xlu1 %v1688_v56  ;;  %1686 = vmax.xlane.f32.xlu0 %v1685_v57 }
 0x117   :  { %v828_v60 = vpop.f32.mrb[28].mxu0  ;;  %v874_v63 = vpop.f32.mrb[28].mxu1 }
 0x118   :  { %v4750_v1 = vmul.f32 0.35355338, %v828_v60  ;;  %v4752_v2 = vmul.f32 0.35355338, %v874_v63  ;;  %v3888_v3 = vpop.f32.mrb[29].mxu0  ;;  %v3894_v4 = vpop.f32.mrb[29].mxu1 }
 0x119   :  { %v831_v5 = vpop.f32.mrb[30].mxu0  ;;  %v877_v6 = vpop.f32.mrb[30].mxu1 }
 0x11a   :  { %v1694_v7 = vsel %vm1648_vm2, %v4752_v2, -inf  ;;  %v1691_v8 = vsel %vm1648_vm2, %v4750_v1, -inf  ;;  %v3889_v9 = vpop.f32.mrb[31].mxu0  ;;  %v3895_v12 = vpop.f32.mrb[31].mxu1 }
 0x11b   :  { %1695 = vmax.xlane.f32.xlu1 %v1694_v7  ;;  %1692 = vmax.xlane.f32.xlu0 %v1691_v8 }
 0x11f   :  { %v920_v13 = vpop.f32.mrb[32].mxu0  ;;  %v966_v14 = vpop.f32.mrb[32].mxu1 }
 0x120   :  { %v4758_v15 = vmul.f32 0.35355338, %v920_v13  ;;  %v4760_v16 = vmul.f32 0.35355338, %v966_v14  ;;  %v3900_v17 = vpop.f32.mrb[33].mxu0  ;;  %v3906_v18 = vpop.f32.mrb[33].mxu1 }
 0x121   :  { %v923_v19 = vpop.f32.mrb[34].mxu0  ;;  %v969_v20 = vpop.f32.mrb[34].mxu1 }
 0x122   :  { %v1700_v21 = vsel %vm1648_vm2, %v4760_v16, -inf  ;;  %v1697_v24 = vsel %vm1648_vm2, %v4758_v15, -inf  ;;  %v3901_v25 = vpop.f32.mrb[35].mxu0  ;;  %v3907_v26 = vpop.f32.mrb[35].mxu1 }
 0x123   :  { %1701 = vmax.xlane.f32.xlu1 %v1700_v21  ;;  %1698 = vmax.xlane.f32.xlu0 %v1697_v24 }
 0x127   :  { %v1012_v27 = vpop.f32.mrb[36].mxu0  ;;  %v1058_v28 = vpop.f32.mrb[36].mxu1 }
 0x128   :  { %v4766_v29 = vmul.f32 0.35355338, %v1012_v27  ;;  %v4768_v30 = vmul.f32 0.35355338, %v1058_v28  ;;  %v3912_v31 = vpop.f32.mrb[37].mxu0  ;;  %v3918_v32 = vpop.f32.mrb[37].mxu1 }
 0x129   :  { %v1015_v33 = vpop.f32.mrb[38].mxu0  ;;  %v1061_v36 = vpop.f32.mrb[38].mxu1 }
 0x12a   :  { %v1706_v38 = vsel %vm1648_vm2, %v4768_v30, -inf  ;;  %v1703_v40 = vsel %vm1648_vm2, %v4766_v29, -inf  ;;  %v3913_v41 = vpop.f32.mrb[39].mxu0  ;;  %v3919_v42 = vpop.f32.mrb[39].mxu1 }
 0x12b   :  { %1707 = vmax.xlane.f32.xlu1 %v1706_v38  ;;  %1704 = vmax.xlane.f32.xlu0 %v1703_v40 }
 0x12f   :  { %v1104_v43 = vpop.f32.mrb[40].mxu0  ;;  %v1150_v44 = vpop.f32.mrb[40].mxu1 }
 0x130   :  { %v4774_v45 = vmul.f32 0.35355338, %v1104_v43  ;;  %v4776_v46 = vmul.f32 0.35355338, %v1150_v44  ;;  %v3924_v47 = vpop.f32.mrb[41].mxu0  ;;  %v3930_v52 = vpop.f32.mrb[41].mxu1 }
 0x131   :  { %v1107_v53 = vpop.f32.mrb[42].mxu0  ;;  %v1153_v54 = vpop.f32.mrb[42].mxu1 }
 0x132   :  { %v1712_v55 = vsel %vm1648_vm2, %v4776_v46, -inf  ;;  %v1709_v56 = vsel %vm1648_vm2, %v4774_v45, -inf  ;;  %v3925_v57 = vpop.f32.mrb[43].mxu0  ;;  %v3931_v58 = vpop.f32.mrb[43].mxu1 }
 0x133   :  { %1713 = vmax.xlane.f32.xlu1 %v1712_v55  ;;  %1710 = vmax.xlane.f32.xlu0 %v1709_v56 }
 0x137   :  { %v1196_v59 = vpop.f32.mrb[44].mxu0  ;;  %v1242_v60 = vpop.f32.mrb[44].mxu1 }
 0x138   :  { %v4782_v63 = vmul.f32 0.35355338, %v1196_v59  ;;  %v4784_v3 = vmul.f32 0.35355338, %v1242_v60  ;;  %v3942_v4 = vpop.f32.mrb[45].mxu1  ;;  %v3936_v5 = vpop.f32.mrb[45].mxu0 }
 0x139   :  { %v1199_v6 = vpop.f32.mrb[46].mxu0  ;;  %v1245_v7 = vpop.f32.mrb[46].mxu1 }
 0x13a   :  { %v1718_v8 = vsel %vm1648_vm2, %v4784_v3, -inf  ;;  %v1715_v9 = vsel %vm1648_vm2, %v4782_v63, -inf  ;;  %v3937_v12 = vpop.f32.mrb[47].mxu0  ;;  %v3943_v13 = vpop.f32.mrb[47].mxu1 }
 0x13b   :  { %1719 = vmax.xlane.f32.xlu1 %v1718_v8  ;;  %1716 = vmax.xlane.f32.xlu0 %v1715_v9 }
 0x13f   :  { %v1288_v14 = vpop.f32.mrb[48].mxu0  ;;  %v1334_v17 = vpop.f32.mrb[48].mxu1 }
 0x140   :  { %v3948_v18 = vpop.f32.mrb[49].mxu0  ;;  %v3954_v19 = vpop.f32.mrb[49].mxu1 }
 0x141   :  { %v1337_v20 = vpop.f32.mrb[50].mxu1  ;;  %v1291_v21 = vpop.f32.mrb[50].mxu0 }
 0x142   :  { %v3949_v24 = vpop.f32.mrb[51].mxu0  ;;  %v3955_v25 = vpop.f32.mrb[51].mxu1 }
 0x143   :  { %v4804_v24 = vmul.f32 0.35355338, %v1288_v14 }
 0x147   :  { %v1380_v26 = vpop.f32.mrb[52].mxu0  ;;  %v4790_v27 = vpop.f32.mrb[52].mxu1 }
 0x148   :  { %v3960_v28 = vpop.f32.mrb[53].mxu0  ;;  %v3966_v31 = vpop.f32.mrb[53].mxu1 }
 0x149   :  { %v1429_v32 = vpop.f32.mrb[54].mxu1  ;;  %v1383_v33 = vpop.f32.mrb[54].mxu0 }
 0x14a   :  { %v3961_v36 = vpop.f32.mrb[55].mxu0  ;;  %v3967_v38 = vpop.f32.mrb[55].mxu1  ;;  %v4812_v33 = vmul.f32 0.35355338, %v1334_v17 }
 0x14f   :  { %v4792_v40 = vpop.f32.mrb[56].mxu0  ;;  %v4794_v41 = vpop.f32.mrb[56].mxu1 }
 0x150   :  { %v3972_v42 = vpop.f32.mrb[57].mxu0  ;;  %v3978_v43 = vpop.f32.mrb[57].mxu1 }
 0x151   :  { %v1521_v44 = vpop.f32.mrb[58].mxu1  ;;  %v1475_v47 = vpop.f32.mrb[58].mxu0 }
 0x152   :  { %v3973_v52 = vpop.f32.mrb[59].mxu0  ;;  %v3979_v53 = vpop.f32.mrb[59].mxu1 }
 0x157   :  { %v4796_v54 = vpop.f32.mrb[60].mxu0  ;;  %v4798_v55 = vpop.f32.mrb[60].mxu1 }
 0x158   :  { %v3984_v56 = vpop.f32.mrb[61].mxu0  ;;  %v3990_v57 = vpop.f32.mrb[61].mxu1 }
 0x159   :  { %v1613_v58 = vpop.f32.mrb[62].mxu1  ;;  %v1567_v59 = vpop.f32.mrb[62].mxu0  ;;  %v4831_v56 = vmul.f32 0.35355338, %v4790_v27 }
 0x15a   :  { %v3985_v60 = vpop.f32.mrb[63].mxu0  ;;  %v3991_v4 = vpop.f32.mrb[63].mxu1 }
 0x170   :  { %v1651_v5 = vpop.xlane.xlu0 %1650 }
 0x171   :  { %v1745_v6 = vsub.f32 %v4694_v37, %v1651_v5 }
 0x173   :  { %v1777_v7 = vmul.f32 1.442695, %v1745_v6 }
 0x174   :  { %v1654_v8 = vpop.xlane.xlu0 %1653 }
 0x175   :  { %4186 = vpow2.f32 %v1777_v7  ;;  %v1746_v9 = vsub.f32 %v4696_v39, %v1654_v8 }
 0x177   :  { %v1779_v12 = vmul.f32 1.442695, %v1746_v9 }
 0x178   :  { %v1657_v13 = vpop.xlane.xlu1 %1656 }
 0x179   :  { %4188 = vpow2.f32 %v1779_v12  ;;  %v1747_v18 = vsub.f32 %v4702_v49, %v1657_v13  ;;  %v4853_v12 = vmul.f32 0.35355338, %v4794_v41 }
 0x17b   :  { %v1781_v19 = vmul.f32 1.442695, %v1747_v18 }
 0x17c   :  { %v1660_v20 = vpop.xlane.xlu1 %1659 }
 0x17d   :  { %4190 = vpow2.f32 %v1781_v19  ;;  %v1748_v21 = vsub.f32 %v4704_v51, %v1660_v20  ;;  %v1721_v51 = vsel %vm1648_vm2, %v4804_v24, -inf }
 0x17f   :  { %v4806_v25 = vpop.eup %4186  ;;  %v1783_v37 = vmul.f32 1.442695, %v1748_v21 }
 0x180   :  { %v1666_v28 = vpop.xlane.xlu1 %1665  ;;  %v1663_v31 = vpop.xlane.xlu0 %1662  ;;  %v1841_v39 = vsel %vm1648_vm2, %v4806_v25, 0.0 }
 0x181   :  { %4192 = vpow2.f32 %v1783_v37  ;;  %v1750_v32 = vsub.f32 %v4710_v61, %v1666_v28  ;;  %v1749_v49 = vsub.f32 %v4712_v62, %v1663_v31  ;;  %1842 = vadd.xlane.f32.xlu0 %v1841_v39  ;;  %v1724_v61 = vsel %vm1648_vm2, %v4812_v33, -inf  ;;  %v2033_v37 = vld [vmem:[%s5409_s2] sm:$0xf] }
 0x182   :  { %v4822_v62 = vmul.f32 0.35355338, %v1380_v26 }
 0x183   :  { %v4816_v14 = vpop.eup %4188  ;;  %v1787_v36 = vmul.f32 1.442695, %v1750_v32  ;;  %v1785_v38 = vmul.f32 1.442695, %v1749_v49  ;;  %v4876_v49 = vmul.f32 0.35355338, %v4798_v55 }
 0x184   :  { %v1844_v42 = vsel %vm1648_vm2, %v4816_v14, 0.0  ;;  %v1727_v26 = vsel %vm1648_vm2, %v4822_v62, -inf }
 0x185   :  { %1845 = vadd.xlane.f32.xlu1 %v1844_v42  ;;  %1722 = vmax.xlane.f32.xlu0 %v1721_v51  ;;  %4194 = vpow2.f32 %v1785_v38 }
 0x186   :  { %4196 = vpow2.f32 %v1787_v36 }
 0x187   :  { %v4824_v17 = vpop.eup %4190 }
 0x188   :  { %v1672_v43 = vpop.xlane.xlu1 %1671  ;;  %v1669_v44 = vpop.xlane.xlu0 %1668  ;;  %v1847_v47 = vsel %vm1648_vm2, %v4824_v17, 0.0 }
 0x189   :  { %v1752_v52 = vsub.f32 %v4720_v11, %v1672_v43  ;;  %v1751_v53 = vsub.f32 %v4718_v10, %v1669_v44  ;;  %1725 = vmax.xlane.f32.xlu1 %v1724_v61  ;;  %1848 = vadd.xlane.f32.xlu0 %v1847_v47  ;;  %v1730_v10 = vsel %vm1648_vm2, %v4831_v56, -inf  ;;  %v4842_v11 = vmul.f32 0.35355338, %v4792_v40 }
 0x18a   :  { %v1742_v61 = vsel %vm1648_vm2, %v4876_v49, -inf }
 0x18b   :  { %v4835_v57 = vpop.eup %4192  ;;  %v1791_v58 = vmul.f32 1.442695, %v1752_v52  ;;  %v1789_v59 = vmul.f32 1.442695, %v1751_v53  ;;  %v1733_v18 = vsel %vm1648_vm2, %v4842_v11, -inf }
 0x18c   :  { %v1850_v60 = vsel %vm1648_vm2, %v4835_v57, 0.0 }
 0x18d   :  { %1851 = vadd.xlane.f32.xlu1 %v1850_v60  ;;  %1728 = vmax.xlane.f32.xlu0 %v1727_v26  ;;  %4198 = vpow2.f32 %v1789_v59 }
 0x18e   :  { %4200 = vpow2.f32 %v1791_v58 }
 0x18f   :  { %v4844_v27 = vpop.eup %4194 }
 0x190   :  { %v1678_v4 = vpop.xlane.xlu1 %1677  ;;  %v1675_v5 = vpop.xlane.xlu0 %1674  ;;  %v1853_v9 = vsel %vm1648_vm2, %v4844_v27, 0.0 }
 0x191   :  { %v4846_v6 = vpop.eup %4196  ;;  %v1754_v7 = vsub.f32 %v4728_v23, %v1678_v4  ;;  %v1753_v8 = vsub.f32 %v4726_v22, %v1675_v5  ;;  %1731 = vmax.xlane.f32.xlu1 %v1730_v10  ;;  %1854 = vadd.xlane.f32.xlu0 %v1853_v9  ;;  %v1736_v22 = vsel %vm1648_vm2, %v4853_v12, -inf  ;;  %v4862_v23 = vmul.f32 0.35355338, %v4796_v54 }
 0x192   :  { %v1856_v19 = vsel %vm1648_vm2, %v4846_v6, 0.0  ;;  %v2065_v54 = vpack.c.bf16 %v2033_v37, %v2033_v37 }
 0x193   :  { %v1795_v40 = vmul.f32 1.442695, %v1754_v7  ;;  %v1793_v13 = vmul.f32 1.442695, %v1753_v8  ;;  %v1739_v38 = vsel %vm1648_vm2, %v4862_v23, -inf }
 0x194   :  { %v2103_v42 = vsel %vm2101_vm3, %v2065_v54, 0 }
 0x195   :  { %1857 = vadd.xlane.f32.xlu1 %v1856_v19  ;;  %4202 = vpow2.f32 %v1793_v13  ;;  %1734 = vmax.xlane.f32.xlu0 %v1733_v18 }
 0x196   :  { %4204 = vpow2.f32 %v1795_v40  ;;  %3993 = vmatpush3.bf16.msra.mxu0 %v2103_v42 }
 0x197   :  { %v4864_v41 = vpop.eup %4198  ;;  %4004 = vmatprep.subr.bf16.mxu0 %v4314_v0 }
 0x198   :  { %v1684_v20 = vpop.xlane.xlu1 %1683  ;;  %v1681_v21 = vpop.xlane.xlu0 %1680  ;;  %v1859_v32 = vsel %vm1648_vm2, %v4864_v41, 0.0 }
 0x199   :  { %v4869_v28 = vpop.eup %4200  ;;  %v1756_v31 = vsub.f32 %v4736_v35, %v1684_v20  ;;  %v1755_v39 = vsub.f32 %v4734_v34, %v1681_v21  ;;  %1737 = vmax.xlane.f32.xlu1 %v1736_v22  ;;  %1860 = vadd.xlane.f32.xlu0 %v1859_v32  ;;  %v2034_v35 = vld [vmem:[%s5409_s2 + $0x4] sm:$0xf] }
 0x19a   :  { %v1862_v34 = vsel %vm1648_vm2, %v4869_v28, 0.0  ;;  %v2066_v55 = vpack.c.bf16 %v2034_v35, %v2034_v35 }
 0x19b   :  { %v1799_v51 = vmul.f32 1.442695, %v1756_v31  ;;  %v1797_v36 = vmul.f32 1.442695, %v1755_v39 }
 0x19c   :  { %v2149_v43 = vsel %vm2101_vm3, %v2066_v55, 0 }
 0x19d   :  { %4206 = vpow2.f32 %v1799_v51  ;;  %1863 = vadd.xlane.f32.xlu1 %v1862_v34  ;;  %1740 = vmax.xlane.f32.xlu0 %v1739_v38 }
 0x19e   :  { %4208 = vpow2.f32 %v1797_v36  ;;  %3999 = vmatpush3.bf16.msra.mxu1 %v2149_v43 }
 0x19f   :  { %v4890_v44 = vpop.eup %4202  ;;  %4010 = vmatprep.subr.bf16.mxu1 %v4314_v0 }
 0x1a0   :  { %v1690_v47 = vpop.xlane.xlu1 %1689  ;;  %v1687_v52 = vpop.xlane.xlu0 %1686  ;;  %v1865_v59 = vsel %vm1648_vm2, %v4890_v44, 0.0 }
 0x1a1   :  { %v4892_v53 = vpop.eup %4204  ;;  %v1758_v26 = vsub.f32 %v4744_v50, %v1690_v47  ;;  %v1757_v58 = vsub.f32 %v4742_v48, %v1687_v52  ;;  %1743 = vmax.xlane.f32.xlu1 %v1742_v61  ;;  %1866 = vadd.xlane.f32.xlu0 %v1865_v59 }
 0x1a2   :  { %v1868_v4 = vsel %vm1648_vm2, %v4892_v53, 0.0 }
 0x1a3   :  { %v1803_v60 = vmul.f32 1.442695, %v1758_v26  ;;  %v1801_v10 = vmul.f32 1.442695, %v1757_v58 }
 0x1a5   :  { %4210 = vpow2.f32 %v1803_v60  ;;  %1869 = vadd.xlane.f32.xlu1 %v1868_v4 }
 0x1a6   :  { %4212 = vpow2.f32 %v1801_v10 }
 0x1a7   :  { %v4901_v5 = vpop.eup %4206 }
 0x1a8   :  { %v4903_v50 = vpop.eup %4208  ;;  %v1696_v48 = vpop.xlane.xlu1 %1695  ;;  %v1874_v8 = vsel %vm1648_vm2, %v4901_v5, 0.0 }
 0x1a9   :  { %v1693_v7 = vpop.xlane.xlu0 %1692  ;;  %v1760_v9 = vsub.f32 %v4752_v2, %v1696_v48  ;;  %1875 = vadd.xlane.f32.xlu1 %v1874_v8  ;;  %v1871_v13 = vsel %vm1648_vm2, %v4903_v50, 0.0 }
 0x1aa   :  { %v1759_v40 = vsub.f32 %v4750_v1, %v1693_v7  ;;  %1872 = vadd.xlane.f32.xlu0 %v1871_v13 }
 0x1ab   :  { %v1807_v18 = vmul.f32 1.442695, %v1760_v9 }
 0x1ac   :  { %v1805_v19 = vmul.f32 1.442695, %v1759_v40 }
 0x1ad   :  { %4214 = vpow2.f32 %v1807_v18 }
 0x1ae   :  { %4216 = vpow2.f32 %v1805_v19 }
 0x1af   :  { %v4911_v22 = vpop.eup %4210 }
 0x1b0   :  { %v4913_v20 = vpop.eup %4212  ;;  %v1702_v21 = vpop.xlane.xlu1 %1701  ;;  %v1880_v2 = vsel %vm1648_vm2, %v4911_v22, 0.0 }
 0x1b1   :  { %v1699_v37 = vpop.xlane.xlu0 %1698  ;;  %v1762_v1 = vsub.f32 %v4760_v16, %v1702_v21  ;;  %1881 = vadd.xlane.f32.xlu1 %v1880_v2  ;;  %v1877_v39 = vsel %vm1648_vm2, %v4913_v20, 0.0 }
 0x1b2   :  { %v1761_v31 = vsub.f32 %v4758_v15, %v1699_v37  ;;  %1878 = vadd.xlane.f32.xlu0 %v1877_v39 }
 0x1b3   :  { %v1811_v32 = vmul.f32 1.442695, %v1762_v1 }
 0x1b4   :  { %v1809_v54 = vmul.f32 1.442695, %v1761_v31 }
 0x1b5   :  { %4218 = vpow2.f32 %v1811_v32 }
 0x1b6   :  { %4220 = vpow2.f32 %v1809_v54 }
 0x1b7   :  { %v4921_v51 = vpop.eup %4214 }
 0x1b8   :  { %v4923_v36 = vpop.eup %4216  ;;  %v1708_v38 = vpop.xlane.xlu1 %1707  ;;  %v1886_v16 = vsel %vm1648_vm2, %v4921_v51, 0.0 }
 0x1b9   :  { %v1705_v42 = vpop.xlane.xlu0 %1704  ;;  %v1764_v15 = vsub.f32 %v4768_v30, %v1708_v38  ;;  %1887 = vadd.xlane.f32.xlu1 %v1886_v16  ;;  %v1883_v35 = vsel %vm1648_vm2, %v4923_v36, 0.0  ;;  %v2035_v16 = vld [vmem:[%s5409_s2 + $0x8] sm:$0xf] }
 0x1ba   :  { %v1763_v34 = vsub.f32 %v4766_v29, %v1705_v42  ;;  %1884 = vadd.xlane.f32.xlu0 %v1883_v35 }
 0x1bb   :  { %v1815_v55 = vmul.f32 1.442695, %v1764_v15 }
 0x1bc   :  { %v1813_v61 = vmul.f32 1.442695, %v1763_v34 }
 0x1bd   :  { %4222 = vpow2.f32 %v1815_v55  ;;  %v2067_v55 = vpack.c.bf16 %v2035_v16, %v2035_v16 }
 0x1be   :  { %4224 = vpow2.f32 %v1813_v61 }
 0x1bf   :  { %v4931_v43 = vpop.eup %4218 }
 0x1c0   :  { %v4933_v47 = vpop.eup %4220  ;;  %v1714_v52 = vpop.xlane.xlu1 %1713  ;;  %v1892_v30 = vsel %vm1648_vm2, %v4931_v43, 0.0 }
 0x1c1   :  { %v1711_v26 = vpop.xlane.xlu0 %1710  ;;  %v1766_v29 = vsub.f32 %v4776_v46, %v1714_v52  ;;  %1893 = vadd.xlane.f32.xlu1 %v1892_v30  ;;  %v1889_v59 = vsel %vm1648_vm2, %v4933_v47, 0.0 }
 0x1c2   :  { %v1765_v58 = vsub.f32 %v4774_v45, %v1711_v26  ;;  %1890 = vadd.xlane.f32.xlu0 %v1889_v59  ;;  %v2036_v26 = vld [vmem:[%s5409_s2 + $0xc] sm:$0xf] }
 0x1c3   :  { %v1819_v60 = vmul.f32 1.442695, %v1766_v29 }
 0x1c4   :  { %v1817_v10 = vmul.f32 1.442695, %v1765_v58 }
 0x1c5   :  { %4226 = vpow2.f32 %v1819_v60  ;;  %v2068_v60 = vpack.c.bf16 %v2036_v26, %v2036_v26 }
 0x1c6   :  { %4228 = vpow2.f32 %v1817_v10 }
 0x1c7   :  { %v4941_v4 = vpop.eup %4222 }
 0x1c8   :  { %v4943_v48 = vpop.eup %4224  ;;  %v1720_v7 = vpop.xlane.xlu1 %1719  ;;  %v1898_v46 = vsel %vm1648_vm2, %v4941_v4, 0.0 }
 0x1c9   :  { %v1717_v8 = vpop.xlane.xlu0 %1716  ;;  %v1768_v45 = vsub.f32 %v4784_v3, %v1720_v7  ;;  %1899 = vadd.xlane.f32.xlu1 %v1898_v46  ;;  %v1895_v40 = vsel %vm1648_vm2, %v4943_v48, 0.0 }
 0x1ca   :  { %v1767_v9 = vsub.f32 %v4782_v63, %v1717_v8  ;;  %1896 = vadd.xlane.f32.xlu0 %v1895_v40  ;;  %v2241_v40 = vsel %vm2101_vm3, %v2068_v60, 0 }
 0x1cb   :  { %v1823_v13 = vmul.f32 1.442695, %v1768_v45 }
 0x1cc   :  { %v1821_v18 = vmul.f32 1.442695, %v1767_v9 }
 0x1cd   :  { %4230 = vpow2.f32 %v1823_v13 }
 0x1ce   :  { %4232 = vpow2.f32 %v1821_v18 }
 0x1cf   :  { %v4951_v19 = vpop.eup %4226 }
 0x1d0   :  { %v4953_v21 = vpop.eup %4228  ;;  %v1904_v37 = vsel %vm1648_vm2, %v4951_v19, 0.0 }
 0x1d1   :  { %1905 = vadd.xlane.f32.xlu1 %v1904_v37  ;;  %v1901_v63 = vsel %vm1648_vm2, %v4953_v21, 0.0  ;;  %v2038_v37 = vld [vmem:[%s5409_s2 + $0x14] sm:$0xf] }
 0x1d2   :  { %1902 = vadd.xlane.f32.xlu0 %v1901_v63 }
 0x1d7   :  { %v4959_v3 = vpop.eup %4230 }
 0x1d8   :  { %v4961_v2 = vpop.eup %4232  ;;  %v1910_v1 = vsel %vm1648_vm2, %v4959_v3, 0.0 }
 0x1d9   :  { %1911 = vadd.xlane.f32.xlu1 %v1910_v1  ;;  %v1907_v31 = vsel %vm1648_vm2, %v4961_v2, 0.0 }
 0x1da   :  { %1908 = vadd.xlane.f32.xlu0 %v1907_v31 }
 0x20e   :  { %v1843_v39 = vpop.xlane.xlu0 %1842 }
 0x20f   :  { %4234 = vrcp.f32 %v1843_v39 }
 0x212   :  { %v1846_v32 = vpop.xlane.xlu1 %1845  ;;  %v1723_v54 = vpop.xlane.xlu0 %1722 }
 0x213   :  { %4236 = vrcp.f32 %v1846_v32  ;;  %v1769_v38 = vsub.f32 %v4804_v24, %v1723_v54  ;;  %v2070_v54 = vpack.c.bf16 %v2038_v37, %v2038_v37  ;;  %v2041_v37 = vld [vmem:[%s5409_s2 + $0x20] sm:$0xf] }
 0x215   :  { %v1825_v42 = vmul.f32 1.442695, %v1769_v38  ;;  %v2333_v26 = vsel %vm2101_vm3, %v2070_v54, 0 }
 0x216   :  { %v1726_v15 = vpop.xlane.xlu1 %1725  ;;  %v1849_v34 = vpop.xlane.xlu0 %1848 }
 0x217   :  { %4238 = vpow2.f32 %v1825_v42  ;;  %v1770_v35 = vsub.f32 %v4812_v33, %v1726_v15  ;;  %v2195_v33 = vsel %vm2101_vm3, %v2067_v55, 0 }
 0x218   :  { %4240 = vrcp.f32 %v1849_v34 }
 0x219   :  { %v4235_v61 = vpop.eup %4234  ;;  %v1827_v52 = vmul.f32 1.442695, %v1770_v35 }
 0x21a   :  { %v1969_v24 = vmul.f32 %v4235_v61, %v4806_v25  ;;  %v1852_v30 = vpop.xlane.xlu1 %1851  ;;  %v1729_v29 = vpop.xlane.xlu0 %1728  ;;  %v2037_v25 = vld [vmem:[%s5409_s2 + $0x10] sm:$0xf] }
 0x21b   :  { %4242 = vpow2.f32 %v1827_v52  ;;  %v1771_v58 = vsub.f32 %v4822_v62, %v1729_v29  ;;  %v2069_v18 = vpack.c.bf16 %v2037_v25, %v2037_v25 }
 0x21c   :  { %4244 = vrcp.f32 %v1852_v30  ;;  %v2001_v59 = vpack.c.bf16 %v1969_v24, %v1969_v24 }
 0x21d   :  { %v4237_v10 = vpop.eup %4236  ;;  %v1829_v7 = vmul.f32 1.442695, %v1771_v58  ;;  %v2287_v16 = vsel %vm2101_vm3, %v2069_v18, 0 }
 0x21e   :  { %v1970_v8 = vmul.f32 %v4237_v10, %v4816_v14  ;;  %v1732_v46 = vpop.xlane.xlu1 %1731  ;;  %3995 = vmatmul.mubr.msk.bf16.vlgmr.msra.gmra.mrb[64].mxu0 %vm2097_vm4, %v2001_v59  ;;  %v1855_v45 = vpop.xlane.xlu0 %1854 }
 0x21f   :  { %4246 = vpow2.f32 %v1829_v7  ;;  %v1772_v62 = vsub.f32 %v4831_v56, %v1732_v46  ;;  %4005 = vmatpush3.bf16.msra.mxu0 %v2195_v33  ;;  %4006 = vmatprep.mubr.msk.bf16.mxu0 %vm4315_vm1, %v4314_v0  ;;  %v2040_v33 = vld [vmem:[%s5409_s2 + $0x1c] sm:$0xf] }
 0x220   :  { %4248 = vrcp.f32 %v1855_v45  ;;  %v2002_v9 = vpack.c.bf16 %v1970_v8, %v1970_v8  ;;  %4016 = vmatprep.subr.bf16.mxu0 %v4314_v0 }
 0x221   :  { %v4988_v14 = vpop.eup %4238  ;;  %v1831_v13 = vmul.f32 1.442695, %v1772_v62 }
 0x222   :  { %v4241_v56 = vpop.eup %4240  ;;  %4001 = vmatmul.mubr.msk.bf16.vlgmr.msra.gmra.mrb[64].mxu1 %vm2097_vm4, %v2002_v9  ;;  %v1858_v63 = vpop.xlane.xlu1 %1857  ;;  %v1913_v1 = vsel %vm1648_vm2, %v4988_v14, 0.0 }
 0x223   :  { %v1971_v31 = vmul.f32 %v4241_v56, %v4824_v17  ;;  %4250 = vpow2.f32 %v1831_v13  ;;  %v1735_v39 = vpop.xlane.xlu0 %1734  ;;  %1914 = vadd.xlane.f32.xlu0 %v1913_v1  ;;  %4011 = vmatpush3.bf16.msra.mxu1 %v2241_v40 }
 0x224   :  { %4252 = vrcp.f32 %v1858_v63  ;;  %v1773_v32 = vsub.f32 %v4842_v11, %v1735_v39  ;;  %4012 = vmatprep.mubr.msk.bf16.mxu1 %vm4315_vm1, %v4314_v0  ;;  %4022 = vmatprep.subr.bf16.mxu1 %v4314_v0  ;;  %v2039_v11 = vld [vmem:[%s5409_s2 + $0x18] sm:$0xf]  ;;  %v2042_v39 = vld [vmem:[%s5409_s2 + $0x24] sm:$0xf] }
 0x225   :  { %v5001_v38 = vpop.eup %4242  ;;  %v2003_v42 = vpack.c.bf16 %v1971_v31, %v1971_v31  ;;  %v2073_v31 = vpack.c.bf16 %v2041_v37, %v2041_v37 }
 0x226   :  { %v4245_v15 = vpop.eup %4244  ;;  %v1833_v17 = vmul.f32 1.442695, %v1773_v32  ;;  %v1738_v34 = vpop.xlane.xlu1 %1737  ;;  %v1916_v35 = vsel %vm1648_vm2, %v5001_v38, 0.0 }
 0x227   :  { %v1972_v55 = vmul.f32 %v4245_v15, %v4835_v57  ;;  %v1774_v61 = vsub.f32 %v4853_v12, %v1738_v34  ;;  %4007 = vmatmul.mubr.msk.bf16.vlgmr.msra.gmra.mrb[68].mxu0 %vm2097_vm4, %v2003_v42  ;;  %v1861_v52 = vpop.xlane.xlu0 %1860  ;;  %1917 = vadd.xlane.f32.xlu1 %v1916_v35  ;;  %v2071_v57 = vpack.c.bf16 %v2039_v11, %v2039_v11 }
 0x228   :  { %4254 = vpow2.f32 %v1833_v17  ;;  %4017 = vmatpush3.bf16.msra.mxu0 %v2287_v16  ;;  %4018 = vmatprep.mubr.msk.bf16.mxu0 %vm4315_vm1, %v4314_v0  ;;  %v2074_v15 = vpack.c.bf16 %v2042_v39, %v2042_v39 }
 0x229   :  { %v5015_v24 = vpop.eup %4246  ;;  %v1835_v30 = vmul.f32 1.442695, %v1774_v61  ;;  %4256 = vrcp.f32 %v1861_v52  ;;  %v2004_v29 = vpack.c.bf16 %v1972_v55, %v1972_v55  ;;  %4028 = vmatprep.subr.bf16.mxu0 %v4314_v0  ;;  %v2379_v25 = vsel %vm2101_vm3, %v2071_v57, 0  ;;  %v2043_v52 = vld [vmem:[%s5409_s2 + $0x28] sm:$0xf] }
 0x22a   :  { %v4249_v12 = vpop.eup %4248  ;;  %v1864_v58 = vpop.xlane.xlu1 %1863  ;;  %v1919_v59 = vsel %vm1648_vm2, %v5015_v24, 0.0  ;;  %v2471_v55 = vsel %vm2101_vm3, %v2073_v31, 0  ;;  %v2044_v57 = vld [vmem:[%s5409_s2 + $0x2c] sm:$0xf] }
 0x22b   :  { %v1973_v60 = vmul.f32 %v4249_v12, %v4844_v27  ;;  %4258 = vpow2.f32 %v1835_v30  ;;  %4013 = vmatmul.mubr.msk.bf16.vlgmr.msra.gmra.mrb[68].mxu1 %vm2097_vm4, %v2004_v29  ;;  %v1741_v10 = vpop.xlane.xlu0 %1740  ;;  %1920 = vadd.xlane.f32.xlu0 %v1919_v59  ;;  %v2072_v27 = vpack.c.bf16 %v2040_v33, %v2040_v33  ;;  %v2517_v30 = vsel %vm2101_vm3, %v2074_v15, 0 }
 0x22c   :  { %4260 = vrcp.f32 %v1864_v58  ;;  %v1775_v7 = vsub.f32 %v4862_v23, %v1741_v10  ;;  %4023 = vmatpush3.bf16.msra.mxu1 %v2333_v26  ;;  %4024 = vmatprep.mubr.msk.bf16.mxu1 %vm4315_vm1, %v4314_v0 }
 0x22d   :  { %v5028_v8 = vpop.eup %4250  ;;  %v2005_v46 = vpack.c.bf16 %v1973_v60, %v1973_v60  ;;  %4034 = vmatprep.subr.bf16.mxu1 %v4314_v0  ;;  %v2076_v60 = vpack.c.bf16 %v2044_v57, %v2044_v57 }
 0x22e   :  { %v4253_v62 = vpop.eup %4252  ;;  %v1837_v45 = vmul.f32 1.442695, %v1775_v7  ;;  %v1744_v9 = vpop.xlane.xlu1 %1743  ;;  %v1922_v40 = vsel %vm1648_vm2, %v5028_v8, 0.0 }
 0x22f   :  { %v1974_v23 = vmul.f32 %v4253_v62, %v4846_v6  ;;  %v1776_v13 = vsub.f32 %v4876_v49, %v1744_v9  ;;  %4019 = vmatmul.mubr.msk.bf16.vlgmr.msra.gmra.mrb[72].mxu0 %vm2097_vm4, %v2005_v46  ;;  %v1867_v18 = vpop.xlane.xlu0 %1866  ;;  %1923 = vadd.xlane.f32.xlu1 %v1922_v40  ;;  %v2425_v6 = vsel %vm2101_vm3, %v2072_v27, 0 }
 0x230   :  { %4262 = vpow2.f32 %v1837_v45  ;;  %4029 = vmatpush3.bf16.msra.mxu0 %v2379_v25  ;;  %4030 = vmatprep.mubr.msk.bf16.mxu0 %vm4315_vm1, %v4314_v0  ;;  %v2045_v45 = vld [vmem:[%s5409_s2 + $0x30] sm:$0xf] }
 0x231   :  { %v1839_v56 = vmul.f32 1.442695, %v1776_v13  ;;  %4264 = vrcp.f32 %v1867_v18  ;;  %v2006_v63 = vpack.c.bf16 %v1974_v23, %v1974_v23  ;;  %4040 = vmatprep.subr.bf16.mxu0 %v4314_v0  ;;  %v2609_v23 = vsel %vm2101_vm3, %v2076_v60, 0  ;;  %v2046_v18 = vld [vmem:[%s5409_s2 + $0x34] sm:$0xf] }
 0x232   :  { %v5044_v49 = vpop.eup %4254  ;;  %v1870_v1 = vpop.xlane.xlu1 %1869 }
 0x233   :  { %v4257_v32 = vpop.eup %4256  ;;  %4266 = vpow2.f32 %v1839_v56  ;;  %4025 = vmatmul.mubr.msk.bf16.vlgmr.msra.gmra.mrb[72].mxu1 %vm2097_vm4, %v2006_v63  ;;  %v1925_v54 = vsel %vm1648_vm2, %v5044_v49, 0.0 }
 0x234   :  { %v1975_v42 = vmul.f32 %v4257_v32, %v4864_v41  ;;  %4268 = vrcp.f32 %v1870_v1  ;;  %1926 = vadd.xlane.f32.xlu0 %v1925_v54  ;;  %4035 = vmatpush3.bf16.msra.mxu1 %v2425_v6  ;;  %v2078_v6 = vpack.c.bf16 %v2046_v18, %v2046_v18 }
 0x235   :  { %v5053_v16 = vpop.eup %4258  ;;  %4036 = vmatprep.mubr.msk.bf16.mxu1 %vm4315_vm1, %v4314_v0  ;;  %4046 = vmatprep.subr.bf16.mxu1 %v4314_v0 }
 0x236   :  { %v4261_v17 = vpop.eup %4260  ;;  %v1876_v34 = vpop.xlane.xlu1 %1875  ;;  %v2007_v35 = vpack.c.bf16 %v1975_v42, %v1975_v42  ;;  %v1928_v11 = vsel %vm1648_vm2, %v5053_v16, 0.0 }
 0x237   :  { %v1976_v41 = vmul.f32 %v4261_v17, %v4869_v28  ;;  %4270 = vrcp.f32 %v1876_v34  ;;  %v1873_v61 = vpop.xlane.xlu0 %1872  ;;  %1929 = vadd.xlane.f32.xlu1 %v1928_v11  ;;  %v2075_v28 = vpack.c.bf16 %v2043_v52, %v2043_v52  ;;  %v2048_v17 = vld [vmem:[%s5409_s2 + $0x3c] sm:$0xf] }
 0x238   :  { %4031 = vmatmul.mubr.msk.bf16.vlgmr.msra.gmra.mrb[76].mxu0 %vm2097_vm4, %v2007_v35  ;;  %4272 = vrcp.f32 %v1873_v61 }
 0x239   :  { %v2008_v26 = vpack.c.bf16 %v1976_v41, %v1976_v41  ;;  %4041 = vmatpush3.bf16.msra.mxu0 %v2471_v55  ;;  %4042 = vmatprep.mubr.msk.bf16.mxu0 %vm4315_vm1, %v4314_v0  ;;  %v2563_v27 = vsel %vm2101_vm3, %v2075_v28, 0  ;;  %v2080_v55 = vpack.c.bf16 %v2048_v17, %v2048_v17 }
 0x23a   :  { %v5069_v29 = vpop.eup %4262  ;;  %4052 = vmatprep.subr.bf16.mxu0 %v4314_v0 }
 0x23b   :  { %v4265_v12 = vpop.eup %4264  ;;  %4037 = vmatmul.mubr.msk.bf16.vlgmr.msra.gmra.mrb[76].mxu1 %vm2097_vm4, %v2008_v26  ;;  %v1931_v58 = vsel %vm1648_vm2, %v5069_v29, 0.0 }
 0x23c   :  { %v1977_v59 = vmul.f32 %v4265_v12, %v4890_v44  ;;  %1932 = vadd.xlane.f32.xlu0 %v1931_v58  ;;  %4047 = vmatpush3.bf16.msra.mxu1 %v2517_v30  ;;  %v2050_v12 = vld [vmem:[%s5409_s2 + $0x44] sm:$0xf] }
 0x23d   :  { %v5079_v33 = vpop.eup %4266  ;;  %4048 = vmatprep.mubr.msk.bf16.mxu1 %vm4315_vm1, %v4314_v0  ;;  %4058 = vmatprep.subr.bf16.mxu1 %v4314_v0 }
 0x23e   :  { %v4269_v10 = vpop.eup %4268  ;;  %v1882_v7 = vpop.xlane.xlu1 %1881  ;;  %v2009_v46 = vpack.c.bf16 %v1977_v59, %v1977_v59  ;;  %v1934_v25 = vsel %vm1648_vm2, %v5079_v33, 0.0 }
 0x23f   :  { %v1978_v44 = vmul.f32 %v4269_v10, %v4892_v53  ;;  %4274 = vrcp.f32 %v1882_v7  ;;  %v1879_v62 = vpop.xlane.xlu0 %1878  ;;  %1935 = vadd.xlane.f32.xlu1 %v1934_v25  ;;  %v2077_v53 = vpack.c.bf16 %v2045_v45, %v2045_v45  ;;  %v2082_v10 = vpack.c.bf16 %v2050_v12, %v2050_v12 }
 0x240   :  { %4043 = vmatmul.mubr.msk.bf16.vlgmr.msra.gmra.mrb[80].mxu0 %vm2097_vm4, %v2009_v46  ;;  %4276 = vrcp.f32 %v1879_v62 }
 0x241   :  { %v4271_v9 = vpop.eup %4270  ;;  %v2010_v40 = vpack.c.bf16 %v1978_v44, %v1978_v44  ;;  %4053 = vmatpush3.bf16.msra.mxu0 %v2563_v27  ;;  %4054 = vmatprep.mubr.msk.bf16.mxu0 %vm4315_vm1, %v4314_v0  ;;  %v2655_v31 = vsel %vm2101_vm3, %v2077_v53, 0 }
 0x242   :  { %v4273_v13 = vpop.eup %4272  ;;  %4064 = vmatprep.subr.bf16.mxu0 %v4314_v0  ;;  %v1980_v56 = vmul.f32 %v4271_v9, %v4901_v5  ;;  %v2701_v5 = vsel %vm2101_vm3, %v2078_v6, 0  ;;  %v2052_v9 = vld [vmem:[%s5409_s2 + $0x4c] sm:$0xf] }
 0x243   :  { %v1979_v37 = vmul.f32 %v4273_v13, %v4903_v50  ;;  %4049 = vmatmul.mubr.msk.bf16.vlgmr.msra.gmra.mrb[80].mxu1 %vm2097_vm4, %v2010_v40  ;;  %v2047_v50 = vld [vmem:[%s5409_s2 + $0x38] sm:$0xf]  ;;  %v2084_v53 = vpack.c.bf16 %v2052_v9, %v2052_v9 }
 0x244   :  { %4059 = vmatpush3.bf16.msra.mxu1 %v2609_v23  ;;  %4060 = vmatprep.mubr.msk.bf16.mxu1 %vm4315_vm1, %v4314_v0  ;;  %v2012_v54 = vpack.c.bf16 %v1980_v56, %v1980_v56  ;;  %v2079_v15 = vpack.c.bf16 %v2047_v50, %v2047_v50 }
 0x245   :  { %v2011_v63 = vpack.c.bf16 %v1979_v37, %v1979_v37  ;;  %4070 = vmatprep.subr.bf16.mxu1 %v4314_v0 }
 0x246   :  { %v1888_v1 = vpop.xlane.xlu1 %1887  ;;  %v2747_v61 = vsel %vm2101_vm3, %v2079_v15, 0 }
 0x247   :  { %4278 = vrcp.f32 %v1888_v1  ;;  %v1885_v39 = vpop.xlane.xlu0 %1884 }
 0x248   :  { %4055 = vmatmul.mubr.msk.bf16.vlgmr.msra.gmra.mrb[84].mxu0 %vm2097_vm4, %v2011_v63  ;;  %4280 = vrcp.f32 %v1885_v39  ;;  %v2054_v39 = vld [vmem:[%s5409_s2 + $0x54] sm:$0xf] }
 0x249   :  { %v4275_v32 = vpop.eup %4274  ;;  %4065 = vmatpush3.bf16.msra.mxu0 %v2655_v31  ;;  %4066 = vmatprep.mubr.msk.bf16.mxu0 %vm4315_vm1, %v4314_v0 }
 0x24a   :  { %v4277_v42 = vpop.eup %4276  ;;  %4076 = vmatprep.subr.bf16.mxu0 %v4314_v0  ;;  %v1982_v35 = vmul.f32 %v4275_v32, %v4911_v22  ;;  %v2793_v22 = vsel %vm2101_vm3, %v2080_v55, 0 }
 0x24b   :  { %v1981_v34 = vmul.f32 %v4277_v42, %v4913_v20  ;;  %4061 = vmatmul.mubr.msk.bf16.vlgmr.msra.gmra.mrb[84].mxu1 %vm2097_vm4, %v2012_v54  ;;  %v2049_v20 = vld [vmem:[%s5409_s2 + $0x40] sm:$0xf] }
 0x24c   :  { %4071 = vmatpush3.bf16.msra.mxu1 %v2701_v5  ;;  %4072 = vmatprep.mubr.msk.bf16.mxu1 %vm4315_vm1, %v4314_v0  ;;  %v2014_v30 = vpack.c.bf16 %v1982_v35, %v1982_v35  ;;  %v2081_v57 = vpack.c.bf16 %v2049_v20, %v2049_v20  ;;  %v2086_v5 = vpack.c.bf16 %v2054_v39, %v2054_v39 }
 0x24d   :  { %v2013_v11 = vpack.c.bf16 %v1981_v34, %v1981_v34  ;;  %4082 = vmatprep.subr.bf16.mxu1 %v4314_v0 }
 0x24e   :  { %v1894_v41 = vpop.xlane.xlu1 %1893  ;;  %v2839_v46 = vsel %vm2101_vm3, %v2081_v57, 0 }
 0x24f   :  { %4282 = vrcp.f32 %v1894_v41  ;;  %v1891_v52 = vpop.xlane.xlu0 %1890  ;;  %v2056_v41 = vld [vmem:[%s5409_s2 + $0x5c] sm:$0xf] }
 0x250   :  { %4067 = vmatmul.mubr.msk.bf16.vlgmr.msra.gmra.mrb[88].mxu0 %vm2097_vm4, %v2013_v11  ;;  %4284 = vrcp.f32 %v1891_v52 }
 0x251   :  { %v4279_v26 = vpop.eup %4278  ;;  %4077 = vmatpush3.bf16.msra.mxu0 %v2747_v61  ;;  %4078 = vmatprep.mubr.msk.bf16.mxu0 %vm4315_vm1, %v4314_v0 }
 0x252   :  { %v4281_v28 = vpop.eup %4280  ;;  %4088 = vmatprep.subr.bf16.mxu0 %v4314_v0  ;;  %v1984_v59 = vmul.f32 %v4279_v26, %v4921_v51  ;;  %v2885_v51 = vsel %vm2101_vm3, %v2082_v10, 0  ;;  %v2088_v26 = vpack.c.bf16 %v2056_v41, %v2056_v41 }
 0x253   :  { %v1983_v58 = vmul.f32 %v4281_v28, %v4923_v36  ;;  %4073 = vmatmul.mubr.msk.bf16.vlgmr.msra.gmra.mrb[88].mxu1 %vm2097_vm4, %v2014_v30  ;;  %v2051_v36 = vld [vmem:[%s5409_s2 + $0x48] sm:$0xf] }
 0x254   :  { %4083 = vmatpush3.bf16.msra.mxu1 %v2793_v22  ;;  %4084 = vmatprep.mubr.msk.bf16.mxu1 %vm4315_vm1, %v4314_v0  ;;  %v2016_v44 = vpack.c.bf16 %v1984_v59, %v1984_v59  ;;  %v2083_v45 = vpack.c.bf16 %v2051_v36, %v2051_v36  ;;  %v2057_v22 = vld [vmem:[%s5409_s2 + $0x60] sm:$0xf] }
 0x255   :  { %v2015_v60 = vpack.c.bf16 %v1983_v58, %v1983_v58  ;;  %4094 = vmatprep.subr.bf16.mxu1 %v4314_v0  ;;  %v2089_v12 = vpack.c.bf16 %v2057_v22, %v2057_v22  ;;  %v2058_v58 = vld [vmem:[%s5409_s2 + $0x64] sm:$0xf] }
 0x256   :  { %v1900_v7 = vpop.xlane.xlu1 %1899  ;;  %v2931_v37 = vsel %vm2101_vm3, %v2083_v45, 0  ;;  %v2060_v45 = vld [vmem:[%s5409_s2 + $0x6c] sm:$0xf] }
 0x257   :  { %4286 = vrcp.f32 %v1900_v7  ;;  %v1897_v25 = vpop.xlane.xlu0 %1896  ;;  %v2090_v7 = vpack.c.bf16 %v2058_v58, %v2058_v58 }
 0x258   :  { %4079 = vmatmul.mubr.msk.bf16.vlgmr.msra.gmra.mrb[92].mxu0 %vm2097_vm4, %v2015_v60  ;;  %4288 = vrcp.f32 %v1897_v25 }
 0x259   :  { %v4283_v27 = vpop.eup %4282  ;;  %4089 = vmatpush3.bf16.msra.mxu0 %v2839_v46  ;;  %4090 = vmatprep.mubr.msk.bf16.mxu0 %vm4315_vm1, %v4314_v0  ;;  %v3207_v46 = vsel %vm2101_vm3, %v2089_v12, 0 }
 0x25a   :  { %v4285_v62 = vpop.eup %4284  ;;  %4100 = vmatprep.subr.bf16.mxu0 %v4314_v0  ;;  %v1986_v23 = vmul.f32 %v4283_v27, %v4931_v43  ;;  %v2977_v43 = vsel %vm2101_vm3, %v2084_v53, 0  ;;  %v2059_v27 = vld [vmem:[%s5409_s2 + $0x68] sm:$0xf]  ;;  %v2092_v53 = vpack.c.bf16 %v2060_v45, %v2060_v45 }
 0x25b   :  { %v1985_v40 = vmul.f32 %v4285_v62, %v4933_v47  ;;  %4085 = vmatmul.mubr.msk.bf16.vlgmr.msra.gmra.mrb[92].mxu1 %vm2097_vm4, %v2016_v44  ;;  %v2053_v47 = vld [vmem:[%s5409_s2 + $0x50] sm:$0xf] }
 0x25c   :  { %4095 = vmatpush3.bf16.msra.mxu1 %v2885_v51  ;;  %4096 = vmatprep.mubr.msk.bf16.mxu1 %vm4315_vm1, %v4314_v0  ;;  %v2018_v6 = vpack.c.bf16 %v1986_v23, %v1986_v23  ;;  %v2085_v31 = vpack.c.bf16 %v2053_v47, %v2053_v47  ;;  %v2091_v51 = vpack.c.bf16 %v2059_v27, %v2059_v27 }
 0x25d   :  { %v2017_v13 = vpack.c.bf16 %v1985_v40, %v1985_v40  ;;  %4106 = vmatprep.subr.bf16.mxu1 %v4314_v0 }
 0x25e   :  { %v1906_v18 = vpop.xlane.xlu1 %1905  ;;  %v3023_v15 = vsel %vm2101_vm3, %v2085_v31, 0 }
 0x25f   :  { %4290 = vrcp.f32 %v1906_v18  ;;  %v1903_v56 = vpop.xlane.xlu0 %1902 }
 0x260   :  { %4091 = vmatmul.mubr.msk.bf16.vlgmr.msra.gmra.mrb[96].mxu0 %vm2097_vm4, %v2017_v13  ;;  %4292 = vrcp.f32 %v1903_v56  ;;  %v3299_v13 = vsel %vm2101_vm3, %v2091_v51, 0 }
 0x261   :  { %v4287_v63 = vpop.eup %4286  ;;  %4101 = vmatpush3.bf16.msra.mxu0 %v2931_v37  ;;  %4102 = vmatprep.mubr.msk.bf16.mxu0 %vm4315_vm1, %v4314_v0  ;;  %v2061_v37 = vld [vmem:[%s5409_s2 + $0x70] sm:$0xf] }
 0x262   :  { %v4289_v1 = vpop.eup %4288  ;;  %4112 = vmatprep.subr.bf16.mxu0 %v4314_v0  ;;  %v1988_v32 = vmul.f32 %v4287_v63, %v4941_v4  ;;  %v3069_v4 = vsel %vm2101_vm3, %v2086_v5, 0  ;;  %v3345_v63 = vsel %vm2101_vm3, %v2092_v53, 0 }
 0x263   :  { %v1987_v50 = vmul.f32 %v4289_v1, %v4943_v48  ;;  %4097 = vmatmul.mubr.msk.bf16.vlgmr.msra.gmra.mrb[96].mxu1 %vm2097_vm4, %v2018_v6  ;;  %v2055_v48 = vld [vmem:[%s5409_s2 + $0x58] sm:$0xf]  ;;  %v2093_v6 = vpack.c.bf16 %v2061_v37, %v2061_v37  ;;  %v2062_v1 = vld [vmem:[%s5409_s2 + $0x74] sm:$0xf] }
 0x264   :  { %4107 = vmatpush3.bf16.msra.mxu1 %v2977_v43  ;;  %4108 = vmatprep.mubr.msk.bf16.mxu1 %vm4315_vm1, %v4314_v0  ;;  %v2020_v35 = vpack.c.bf16 %v1988_v32, %v1988_v32  ;;  %v2087_v55 = vpack.c.bf16 %v2055_v48, %v2055_v48  ;;  %v2094_v32 = vpack.c.bf16 %v2062_v1, %v2062_v1 }
 0x265   :  { %v2019_v54 = vpack.c.bf16 %v1987_v50, %v1987_v50  ;;  %4118 = vmatprep.subr.bf16.mxu1 %v4314_v0  ;;  %v3391_v50 = vsel %vm2101_vm3, %v2093_v6, 0 }
 0x266   :  { %v1912_v42 = vpop.xlane.xlu1 %1911  ;;  %v3115_v30 = vsel %vm2101_vm3, %v2087_v55, 0 }
 0x267   :  { %4294 = vrcp.f32 %v1912_v42  ;;  %v1909_v17 = vpop.xlane.xlu0 %1908 }
 0x268   :  { %4103 = vmatmul.mubr.msk.bf16.vlgmr.msra.gmra.mrb[100].mxu0 %vm2097_vm4, %v2019_v54  ;;  %4296 = vrcp.f32 %v1909_v17  ;;  %v3437_v17 = vsel %vm2101_vm3, %v2094_v32, 0 }
 0x269   :  { %v4291_v34 = vpop.eup %4290  ;;  %4113 = vmatpush3.bf16.msra.mxu0 %v3023_v15  ;;  %4114 = vmatprep.mubr.msk.bf16.mxu0 %vm4315_vm1, %v4314_v0 }
 0x26a   :  { %v4293_v11 = vpop.eup %4292  ;;  %4124 = vmatprep.subr.bf16.mxu0 %v4314_v0  ;;  %v1990_v52 = vmul.f32 %v4291_v34, %v4951_v19  ;;  %v3161_v19 = vsel %vm2101_vm3, %v2088_v26, 0 }
 0x26b   :  { %v1989_v61 = vmul.f32 %v4293_v11, %v4953_v21  ;;  %4109 = vmatmul.mubr.msk.bf16.vlgmr.msra.gmra.mrb[100].mxu1 %vm2097_vm4, %v2020_v35 }
 0x26c   :  { %4119 = vmatpush3.bf16.msra.mxu1 %v3069_v4  ;;  %4120 = vmatprep.mubr.msk.bf16.mxu1 %vm4315_vm1, %v4314_v0  ;;  %v2022_v28 = vpack.c.bf16 %v1990_v52, %v1990_v52 }
 0x26d   :  { %v2021_v20 = vpack.c.bf16 %v1989_v61, %v1989_v61  ;;  %4130 = vmatprep.subr.bf16.mxu1 %v4314_v0 }
 0x270   :  { %4115 = vmatmul.mubr.msk.bf16.vlgmr.msra.gmra.mrb[104].mxu0 %vm2097_vm4, %v2021_v20 }
 0x271   :  { %v4295_v21 = vpop.eup %4294  ;;  %4125 = vmatpush3.bf16.msra.mxu0 %v3115_v30  ;;  %4126 = vmatprep.mubr.msk.bf16.mxu0 %vm4315_vm1, %v4314_v0 }
 0x272   :  { %v4297_v57 = vpop.eup %4296  ;;  %4136 = vmatprep.subr.bf16.mxu0 %v4314_v0  ;;  %v1992_v60 = vmul.f32 %v4295_v21, %v4959_v3 }
 0x273   :  { %v1991_v59 = vmul.f32 %v4297_v57, %v4961_v2  ;;  %4121 = vmatmul.mubr.msk.bf16.vlgmr.msra.gmra.mrb[104].mxu1 %vm2097_vm4, %v2022_v28  ;;  %v3253_v2 = vsel %vm2101_vm3, %v2090_v7, 0 }
 0x274   :  { %4131 = vmatpush3.bf16.msra.mxu1 %v3161_v19  ;;  %4132 = vmatprep.mubr.msk.bf16.mxu1 %vm4315_vm1, %v4314_v0  ;;  %v2024_v25 = vpack.c.bf16 %v1992_v60, %v1992_v60 }
 0x275   :  { %v2023_v10 = vpack.c.bf16 %v1991_v59, %v1991_v59  ;;  %4142 = vmatprep.subr.bf16.mxu1 %v4314_v0 }
 0x278   :  { %4127 = vmatmul.mubr.msk.bf16.vlgmr.msra.gmra.mrb[108].mxu0 %vm2097_vm4, %v2023_v10 }
 0x279   :  { %4137 = vmatpush3.bf16.msra.mxu0 %v3207_v46  ;;  %4138 = vmatprep.mubr.msk.bf16.mxu0 %vm4315_vm1, %v4314_v0 }
 0x27a   :  { %4148 = vmatprep.subr.bf16.mxu0 %v4314_v0 }
 0x27b   :  { %4133 = vmatmul.mubr.msk.bf16.vlgmr.msra.gmra.mrb[108].mxu1 %vm2097_vm4, %v2024_v25 }
 0x27c   :  { %4143 = vmatpush3.bf16.msra.mxu1 %v3253_v2  ;;  %4144 = vmatprep.mubr.msk.bf16.mxu1 %vm4315_vm1, %v4314_v0 }
 0x27d   :  { %4154 = vmatprep.subr.bf16.mxu1 %v4314_v0 }
 0x2b0   :  { %v1915_v3 = vpop.xlane.xlu0 %1914 }
 0x2b1   :  { %4298 = vrcp.f32 %v1915_v3 }
 0x2b4   :  { %v1918_v36 = vpop.xlane.xlu1 %1917 }
 0x2b5   :  { %4300 = vrcp.f32 %v1918_v36 }
 0x2b8   :  { %v1921_v44 = vpop.xlane.xlu0 %1920 }
 0x2b9   :  { %4302 = vrcp.f32 %v1921_v44 }
 0x2bb   :  { %v4299_v62 = vpop.eup %4298 }
 0x2bc   :  { %v1993_v9 = vmul.f32 %v4299_v62, %v4988_v14  ;;  %v1924_v40 = vpop.xlane.xlu1 %1923 }
 0x2bd   :  { %4304 = vrcp.f32 %v1924_v40 }
 0x2be   :  { %v2025_v23 = vpack.c.bf16 %v1993_v9, %v1993_v9 }
 0x2bf   :  { %v4301_v18 = vpop.eup %4300 }
 0x2c0   :  { %v1994_v56 = vmul.f32 %v4301_v18, %v5001_v38  ;;  %4139 = vmatmul.mubr.msk.bf16.vlgmr.msra.gmra.mrb[112].mxu0 %vm2097_vm4, %v2025_v23 }
 0x2c1   :  { %v1927_v47 = vpop.xlane.xlu0 %1926  ;;  %4149 = vmatpush3.bf16.msra.mxu0 %v3299_v13  ;;  %4150 = vmatprep.mubr.msk.bf16.mxu0 %vm4315_vm1, %v4314_v0 }
 0x2c2   :  { %4306 = vrcp.f32 %v1927_v47  ;;  %v2026_v14 = vpack.c.bf16 %v1994_v56, %v1994_v56  ;;  %4160 = vmatprep.subr.bf16.mxu0 %v4314_v0 }
 0x2c3   :  { %v4303_v43 = vpop.eup %4302 }
 0x2c4   :  { %v1995_v38 = vmul.f32 %v4303_v43, %v5015_v24  ;;  %4145 = vmatmul.mubr.msk.bf16.vlgmr.msra.gmra.mrb[112].mxu1 %vm2097_vm4, %v2026_v14  ;;  %v1930_v31 = vpop.xlane.xlu1 %1929  ;;  %v2063_v24 = vld [vmem:[%s5409_s2 + $0x78] sm:$0xf] }
 0x2c5   :  { %4308 = vrcp.f32 %v1930_v31  ;;  %4155 = vmatpush3.bf16.msra.mxu1 %v3345_v63  ;;  %4156 = vmatprep.mubr.msk.bf16.mxu1 %vm4315_vm1, %v4314_v0  ;;  %v2095_v48 = vpack.c.bf16 %v2063_v24, %v2063_v24 }
 0x2c6   :  { %v2027_v39 = vpack.c.bf16 %v1995_v38, %v1995_v38  ;;  %4166 = vmatprep.subr.bf16.mxu1 %v4314_v0 }
 0x2c7   :  { %v4305_v54 = vpop.eup %4304  ;;  %v3483_v61 = vsel %vm2101_vm3, %v2095_v48, 0 }
 0x2c8   :  { %v1996_v5 = vmul.f32 %v4305_v54, %v5028_v8  ;;  %4151 = vmatmul.mubr.msk.bf16.vlgmr.msra.gmra.mrb[116].mxu0 %vm2097_vm4, %v2027_v39  ;;  %v2064_v8 = vld [vmem:[%s5409_s2 + $0x7c] sm:$0xf] }
 0x2c9   :  { %v1933_v42 = vpop.xlane.xlu0 %1932  ;;  %4161 = vmatpush3.bf16.msra.mxu0 %v3391_v50  ;;  %4162 = vmatprep.mubr.msk.bf16.mxu0 %vm4315_vm1, %v4314_v0  ;;  %v2096_v11 = vpack.c.bf16 %v2064_v8, %v2064_v8 }
 0x2ca   :  { %4310 = vrcp.f32 %v1933_v42  ;;  %v2028_v15 = vpack.c.bf16 %v1996_v5, %v1996_v5  ;;  %4172 = vmatprep.subr.bf16.mxu0 %v4314_v0 }
 0x2cc   :  { %v4307_v34 = vpop.eup %4306  ;;  %4157 = vmatmul.mubr.msk.bf16.vlgmr.msra.gmra.mrb[116].mxu1 %vm2097_vm4, %v2028_v15  ;;  %v1936_v35 = vpop.xlane.xlu1 %1935 }
 0x2cd   :  { %v1997_v4 = vmul.f32 %v4307_v34, %v5044_v49  ;;  %4312 = vrcp.f32 %v1936_v35  ;;  %4167 = vmatpush3.bf16.msra.mxu1 %v3437_v17  ;;  %4168 = vmatprep.mubr.msk.bf16.mxu1 %vm4315_vm1, %v4314_v0  ;;  %v3529_v49 = vsel %vm2101_vm3, %v2096_v11, 0 }
 0x2ce   :  { %4178 = vmatprep.subr.bf16.mxu1 %v4314_v0 }
 0x2cf   :  { %v4309_v55 = vpop.eup %4308  ;;  %v2029_v41 = vpack.c.bf16 %v1997_v4, %v1997_v4 }
 0x2d0   :  { %v1998_v52 = vmul.f32 %v4309_v55, %v5053_v16 }
 0x2d1   :  { %4163 = vmatmul.mubr.msk.bf16.vlgmr.msra.gmra.mrb[120].mxu0 %vm2097_vm4, %v2029_v41 }
 0x2d2   :  { %v2030_v20 = vpack.c.bf16 %v1998_v52, %v1998_v52  ;;  %4173 = vmatpush3.bf16.msra.mxu0 %v3483_v61  ;;  %4174 = vmatprep.mubr.msk.bf16.mxu0 %vm4315_vm1, %v4314_v0 }
 0x2d4   :  { %v4311_v26 = vpop.eup %4310  ;;  %4169 = vmatmul.mubr.msk.bf16.vlgmr.msra.gmra.mrb[120].mxu1 %vm2097_vm4, %v2030_v20 }
 0x2d5   :  { %v1999_v30 = vmul.f32 %v4311_v26, %v5069_v29  ;;  %4179 = vmatpush3.bf16.msra.mxu1 %v3529_v49  ;;  %4180 = vmatprep.mubr.msk.bf16.mxu1 %vm4315_vm1, %v4314_v0 }
 0x2d7   :  { %v4313_v22 = vpop.eup %4312  ;;  %v2031_v16 = vpack.c.bf16 %v1999_v30, %v1999_v30 }
 0x2d8   :  { %v2000_v21 = vmul.f32 %v4313_v22, %v5079_v33 }
 0x2d9   :  { %4175 = vmatmul.mubr.msk.bf16.vlgmr.msra.gmra.mrb[124].mxu0 %vm2097_vm4, %v2031_v16 }
 0x2da   :  { %v2032_v28 = vpack.c.bf16 %v2000_v21, %v2000_v21 }
 0x2dc   :  { %4181 = vmatmul.mubr.msk.bf16.vlgmr.msra.gmra.mrb[124].mxu1 %vm2097_vm4, %v2032_v28 }
 0x2f1   :  { %v2139_v19 = vpop.f32.mrb[64].mxu0 }
 0x2f2   :  { %3572 = vst.msk [vmem:[%s5410_s3] sm:$0xf] %vm3571_vm5, %v2139_v19  ;;  %v3996_v29 = vpop.f32.mrb[65].mxu0 }
 0x2f3   :  { %v2142_v57 = vpop.f32.mrb[66].mxu0 }
 0x2f4   :  { %v3997_v12 = vpop.f32.mrb[67].mxu0 }
 0x2f5   :  { %v2185_v0 = vpop.f32.mrb[64].mxu1 }
 0x2f6   :  { %3573 = vst.msk [vmem:[%s5410_s3 + $0x4] sm:$0xf] %vm3571_vm5, %v2185_v0  ;;  %v4002_v33 = vpop.f32.mrb[65].mxu1 }
 0x2f7   :  { %v2188_v58 = vpop.f32.mrb[66].mxu1 }
 0x2f8   :  { %v4003_v59 = vpop.f32.mrb[67].mxu1 }
 0x2fa   :  { %v2231_v60 = vpop.f32.mrb[68].mxu0 }
 0x2fb   :  { %3574 = vst.msk [vmem:[%s5410_s3 + $0x8] sm:$0xf] %vm3571_vm5, %v2231_v60  ;;  %v4008_v10 = vpop.f32.mrb[69].mxu0 }
 0x2fc   :  { %v2234_v7 = vpop.f32.mrb[70].mxu0 }
 0x2fd   :  { %v4009_v46 = vpop.f32.mrb[71].mxu0 }
 0x2fe   :  { %v2277_v25 = vpop.f32.mrb[68].mxu1 }
 0x2ff   :  { %3575 = vst.msk [vmem:[%s5410_s3 + $0xc] sm:$0xf] %vm3571_vm5, %v2277_v25  ;;  %v4014_v2 = vpop.f32.mrb[69].mxu1 }
 0x300   :  { %v2280_v3 = vpop.f32.mrb[70].mxu1 }
 0x301   :  { %v4015_v36 = vpop.f32.mrb[71].mxu1 }
 0x302   :  { %v2323_v27 = vpop.f32.mrb[72].mxu0 }
 0x303   :  { %3576 = vst.msk [vmem:[%s5410_s3 + $0x10] sm:$0xf] %vm3571_vm5, %v2323_v27  ;;  %v4020_v44 = vpop.f32.mrb[73].mxu0 }
 0x304   :  { %v2326_v51 = vpop.f32.mrb[74].mxu0 }
 0x305   :  { %v4021_v62 = vpop.f32.mrb[75].mxu0 }
 0x306   :  { %v2369_v45 = vpop.f32.mrb[72].mxu1 }
 0x307   :  { %3577 = vst.msk [vmem:[%s5410_s3 + $0x14] sm:$0xf] %vm3571_vm5, %v2369_v45  ;;  %v4026_v9 = vpop.f32.mrb[73].mxu1 }
 0x308   :  { %v2372_v40 = vpop.f32.mrb[74].mxu1 }
 0x309   :  { %v4027_v23 = vpop.f32.mrb[75].mxu1 }
 0x30b   :  { %v2415_v13 = vpop.f32.mrb[76].mxu0 }
 0x30c   :  { %3578 = vst.msk [vmem:[%s5410_s3 + $0x18] sm:$0xf] %vm3571_vm5, %v2415_v13  ;;  %v4032_v53 = vpop.f32.mrb[77].mxu0 }
 0x30d   :  { %v2418_v18 = vpop.f32.mrb[78].mxu0 }
 0x30e   :  { %v4033_v37 = vpop.f32.mrb[79].mxu0  ;;  %v2461_v56 = vpop.f32.mrb[76].mxu1 }
 0x30f   :  { %3579 = vst.msk [vmem:[%s5410_s3 + $0x1c] sm:$0xf] %vm3571_vm5, %v2461_v56  ;;  %v4038_v47 = vpop.f32.mrb[77].mxu1 }
 0x310   :  { %v2464_v14 = vpop.f32.mrb[78].mxu1 }
 0x311   :  { %v4039_v63 = vpop.f32.mrb[79].mxu1 }
 0x313   :  { %v2507_v6 = vpop.f32.mrb[80].mxu0 }
 0x314   :  { %3580 = vst.msk [vmem:[%s5410_s3 + $0x20] sm:$0xf] %vm3571_vm5, %v2507_v6  ;;  %v4044_v43 = vpop.f32.mrb[81].mxu0 }
 0x315   :  { %v2510_v1 = vpop.f32.mrb[82].mxu0 }
 0x316   :  { %v4045_v38 = vpop.f32.mrb[83].mxu0  ;;  %v2553_v31 = vpop.f32.mrb[80].mxu1 }
 0x317   :  { %3581 = vst.msk [vmem:[%s5410_s3 + $0x24] sm:$0xf] %vm3571_vm5, %v2553_v31  ;;  %v4050_v39 = vpop.f32.mrb[81].mxu1 }
 0x318   :  { %v2556_v50 = vpop.f32.mrb[82].mxu1 }
 0x319   :  { %v4051_v32 = vpop.f32.mrb[83].mxu1 }
 0x31b   :  { %v2599_v54 = vpop.f32.mrb[84].mxu0 }
 0x31c   :  { %3582 = vst.msk [vmem:[%s5410_s3 + $0x28] sm:$0xf] %vm3571_vm5, %v2599_v54  ;;  %v4056_v5 = vpop.f32.mrb[85].mxu0 }
 0x31d   :  { %v2602_v24 = vpop.f32.mrb[86].mxu0 }
 0x31e   :  { %v4057_v42 = vpop.f32.mrb[87].mxu0  ;;  %v2645_v15 = vpop.f32.mrb[84].mxu1 }
 0x31f   :  { %3583 = vst.msk [vmem:[%s5410_s3 + $0x2c] sm:$0xf] %vm3571_vm5, %v2645_v15  ;;  %v4062_v17 = vpop.f32.mrb[85].mxu1 }
 0x320   :  { %v2648_v48 = vpop.f32.mrb[86].mxu1 }
 0x321   :  { %v4063_v8 = vpop.f32.mrb[87].mxu1 }
 0x323   :  { %v2691_v34 = vpop.f32.mrb[88].mxu0 }
 0x324   :  { %3584 = vst.msk [vmem:[%s5410_s3 + $0x30] sm:$0xf] %vm3571_vm5, %v2691_v34  ;;  %v4068_v35 = vpop.f32.mrb[89].mxu0 }
 0x325   :  { %v2694_v4 = vpop.f32.mrb[90].mxu0 }
 0x326   :  { %v4069_v11 = vpop.f32.mrb[91].mxu0  ;;  %v2737_v55 = vpop.f32.mrb[88].mxu1 }
 0x327   :  { %3585 = vst.msk [vmem:[%s5410_s3 + $0x34] sm:$0xf] %vm3571_vm5, %v2737_v55  ;;  %v4074_v41 = vpop.f32.mrb[89].mxu1 }
 0x328   :  { %v2740_v61 = vpop.f32.mrb[90].mxu1 }
 0x329   :  { %v4075_v52 = vpop.f32.mrb[91].mxu1 }
 0x32b   :  { %v2783_v20 = vpop.f32.mrb[92].mxu0 }
 0x32c   :  { %3586 = vst.msk [vmem:[%s5410_s3 + $0x38] sm:$0xf] %vm3571_vm5, %v2783_v20  ;;  %v4080_v49 = vpop.f32.mrb[93].mxu0 }
 0x32d   :  { %v2786_v26 = vpop.f32.mrb[94].mxu0 }
 0x32e   :  { %v4081_v30 = vpop.f32.mrb[95].mxu0  ;;  %v2829_v22 = vpop.f32.mrb[92].mxu1 }
 0x32f   :  { %3587 = vst.msk [vmem:[%s5410_s3 + $0x3c] sm:$0xf] %vm3571_vm5, %v2829_v22  ;;  %v4086_v16 = vpop.f32.mrb[93].mxu1 }
 0x330   :  { %v2832_v21 = vpop.f32.mrb[94].mxu1 }
 0x331   :  { %v4087_v28 = vpop.f32.mrb[95].mxu1 }
 0x333   :  { %v2875_v19 = vpop.f32.mrb[96].mxu0 }
 0x334   :  { %3588 = vst.msk [vmem:[%s5410_s3 + $0x40] sm:$0xf] %vm3571_vm5, %v2875_v19  ;;  %v4092_v29 = vpop.f32.mrb[97].mxu0 }
 0x335   :  { %v2878_v57 = vpop.f32.mrb[98].mxu0 }
 0x336   :  { %v4093_v12 = vpop.f32.mrb[99].mxu0  ;;  %v2921_v0 = vpop.f32.mrb[96].mxu1 }
 0x337   :  { %3589 = vst.msk [vmem:[%s5410_s3 + $0x44] sm:$0xf] %vm3571_vm5, %v2921_v0  ;;  %v4098_v33 = vpop.f32.mrb[97].mxu1 }
 0x338   :  { %v2924_v58 = vpop.f32.mrb[98].mxu1 }
 0x339   :  { %v4099_v59 = vpop.f32.mrb[99].mxu1 }
 0x33b   :  { %v2967_v60 = vpop.f32.mrb[100].mxu0 }
 0x33c   :  { %3590 = vst.msk [vmem:[%s5410_s3 + $0x48] sm:$0xf] %vm3571_vm5, %v2967_v60  ;;  %v4104_v10 = vpop.f32.mrb[101].mxu0 }
 0x33d   :  { %v2970_v7 = vpop.f32.mrb[102].mxu0 }
 0x33e   :  { %v4105_v46 = vpop.f32.mrb[103].mxu0  ;;  %v3013_v25 = vpop.f32.mrb[100].mxu1 }
 0x33f   :  { %3591 = vst.msk [vmem:[%s5410_s3 + $0x4c] sm:$0xf] %vm3571_vm5, %v3013_v25  ;;  %v4110_v2 = vpop.f32.mrb[101].mxu1 }
 0x340   :  { %v3016_v3 = vpop.f32.mrb[102].mxu1 }
 0x341   :  { %v4111_v36 = vpop.f32.mrb[103].mxu1 }
 0x343   :  { %v3059_v27 = vpop.f32.mrb[104].mxu0 }
 0x344   :  { %3592 = vst.msk [vmem:[%s5410_s3 + $0x50] sm:$0xf] %vm3571_vm5, %v3059_v27  ;;  %v4116_v44 = vpop.f32.mrb[105].mxu0 }
 0x345   :  { %v3062_v51 = vpop.f32.mrb[106].mxu0 }
 0x346   :  { %v4117_v62 = vpop.f32.mrb[107].mxu0  ;;  %v3105_v45 = vpop.f32.mrb[104].mxu1 }
 0x347   :  { %3593 = vst.msk [vmem:[%s5410_s3 + $0x54] sm:$0xf] %vm3571_vm5, %v3105_v45  ;;  %v4122_v9 = vpop.f32.mrb[105].mxu1 }
 0x348   :  { %v3108_v40 = vpop.f32.mrb[106].mxu1 }
 0x349   :  { %v4123_v23 = vpop.f32.mrb[107].mxu1 }
 0x34b   :  { %v3151_v13 = vpop.f32.mrb[108].mxu0 }
 0x34c   :  { %3594 = vst.msk [vmem:[%s5410_s3 + $0x58] sm:$0xf] %vm3571_vm5, %v3151_v13  ;;  %v4128_v53 = vpop.f32.mrb[109].mxu0 }
 0x34d   :  { %v3154_v18 = vpop.f32.mrb[110].mxu0 }
 0x34e   :  { %v4129_v37 = vpop.f32.mrb[111].mxu0  ;;  %v3197_v56 = vpop.f32.mrb[108].mxu1 }
 0x34f   :  { %3595 = vst.msk [vmem:[%s5410_s3 + $0x5c] sm:$0xf] %vm3571_vm5, %v3197_v56  ;;  %v4134_v47 = vpop.f32.mrb[109].mxu1 }
 0x350   :  { %v3200_v14 = vpop.f32.mrb[110].mxu1 }
 0x351   :  { %v4135_v63 = vpop.f32.mrb[111].mxu1 }
 0x393   :  { %v3243_v6 = vpop.f32.mrb[112].mxu0 }
 0x394   :  { %3596 = vst.msk [vmem:[%s5410_s3 + $0x60] sm:$0xf] %vm3571_vm5, %v3243_v6  ;;  %v4140_v43 = vpop.f32.mrb[113].mxu0 }
 0x395   :  { %v3246_v1 = vpop.f32.mrb[114].mxu0 }
 0x396   :  { %v4141_v38 = vpop.f32.mrb[115].mxu0 }
 0x397   :  { %v3289_v31 = vpop.f32.mrb[112].mxu1 }
 0x398   :  { %3597 = vst.msk [vmem:[%s5410_s3 + $0x64] sm:$0xf] %vm3571_vm5, %v3289_v31  ;;  %v4146_v39 = vpop.f32.mrb[113].mxu1 }
 0x399   :  { %v3292_v50 = vpop.f32.mrb[114].mxu1 }
 0x39a   :  { %v4147_v32 = vpop.f32.mrb[115].mxu1 }
 0x39b   :  { %v3335_v54 = vpop.f32.mrb[116].mxu0 }
 0x39c   :  { %3598 = vst.msk [vmem:[%s5410_s3 + $0x68] sm:$0xf] %vm3571_vm5, %v3335_v54  ;;  %v4152_v5 = vpop.f32.mrb[117].mxu0 }
 0x39d   :  { %v3338_v24 = vpop.f32.mrb[118].mxu0 }
 0x39e   :  { %v4153_v42 = vpop.f32.mrb[119].mxu0 }
 0x39f   :  { %v3381_v15 = vpop.f32.mrb[116].mxu1 }
 0x3a0   :  { %3599 = vst.msk [vmem:[%s5410_s3 + $0x6c] sm:$0xf] %vm3571_vm5, %v3381_v15  ;;  %v4158_v17 = vpop.f32.mrb[117].mxu1 }
 0x3a1   :  { %v3384_v48 = vpop.f32.mrb[118].mxu1 }
 0x3a2   :  { %v4159_v8 = vpop.f32.mrb[119].mxu1 }
 0x3a4   :  { %v3427_v34 = vpop.f32.mrb[120].mxu0 }
 0x3a5   :  { %3600 = vst.msk [vmem:[%s5410_s3 + $0x70] sm:$0xf] %vm3571_vm5, %v3427_v34  ;;  %v4164_v35 = vpop.f32.mrb[121].mxu0 }
 0x3a6   :  { %v3430_v4 = vpop.f32.mrb[122].mxu0 }
 0x3a7   :  { %v4165_v11 = vpop.f32.mrb[123].mxu0  ;;  %v3473_v55 = vpop.f32.mrb[120].mxu1 }
 0x3a8   :  { %3601 = vst.msk [vmem:[%s5410_s3 + $0x74] sm:$0xf] %vm3571_vm5, %v3473_v55  ;;  %v4170_v41 = vpop.f32.mrb[121].mxu1 }
 0x3a9   :  { %v3476_v61 = vpop.f32.mrb[122].mxu1 }
 0x3aa   :  { %v4171_v52 = vpop.f32.mrb[123].mxu1 }
 0x3ac   :  { %v3519_v20 = vpop.f32.mrb[124].mxu0 }
 0x3ad   :  { %3602 = vst.msk [vmem:[%s5410_s3 + $0x78] sm:$0xf] %vm3571_vm5, %v3519_v20  ;;  %v4176_v49 = vpop.f32.mrb[125].mxu0 }
 0x3ae   :  { %v3522_v26 = vpop.f32.mrb[126].mxu0 }
 0x3af   :  { %v4177_v30 = vpop.f32.mrb[127].mxu0  ;;  %v3565_v22 = vpop.f32.mrb[124].mxu1 }
 0x3b0   :  { %3603 = vst.msk [vmem:[%s5410_s3 + $0x7c] sm:$0xf] %vm3571_vm5, %v3565_v22  ;;  %v4182_v16 = vpop.f32.mrb[125].mxu1 }
 0x3b1   :  { %v3568_v21 = vpop.f32.mrb[126].mxu1 }
 0x3b2   :  { %v4183_v28 = vpop.f32.mrb[127].mxu1 }

// kernel: cl_forward.40
= control target key start
LH: loop header
LB: loop body
LE: loop exit
PB: predicated region body
PF: predicated region fallthrough
CT: control target
= control target key end

     0   :  { %vm47_vm0 = vcmask 261120   ;;  %s214_s1 = inlined_call_operand.vmem [shape: bf16[32,32], index: 1, kind: input, shape index: {}]   ;;  %s215_s0 = inlined_call_operand.vmem [shape: f32[32,32], index: 0, kind: input, shape index: {}]   ;;  %s216_s2 = inlined_call_operand.vmem [shape: f32[1,32], index: 2, kind: input, shape index: {}]   ;;  %s217_s3 = inlined_call_operand.vmem [shape: f32[32,32], index: 3, kind: input, shape index: {}]   ;;  %s218_s4 = inlined_call_operand.vmem [shape: f32[32,32], index: 4, kind: output, shape index: {}]  }
   0x1   :  { %v136_v0 = vld [vmem:[%s214_s1] sm:$0xff]   ;;  %v137_v1 = vld [vmem:[%s214_s1 + $0x8] sm:$0xff]   ;;  %v20_v5 = vld [vmem:[%s215_s0 + $0x10] sm:$0xff] }
   0x2   :  { %128 = vmatprep.subr.bf16.mxu0 %v136_v0  ;;  %v18_v2 = vld [vmem:[%s215_s0] sm:$0xff]  ;;  %v19_v3 = vld [vmem:[%s215_s0 + $0x8] sm:$0xff]  ;;  %v21_v6 = vld [vmem:[%s215_s0 + $0x18] sm:$0xff] }
   0x3   :  { %129 = vmatpush3.bf16.msra.mxu0 %v136_v0  ;;  %v27_v4 = vpack.c.bf16 %v19_v3, %v18_v2  ;;  %v28_v7 = vpack.c.bf16 %v21_v6, %v20_v5  ;;  %v119_v8 = vld [vmem:[%s216_s2] ss:$0 sm:$0xff]  ;;  %v105_v10 = vld [vmem:[%s217_s3 + $0x10] sm:$0xff]  ;;  %v106_v16 = vld [vmem:[%s217_s3 + $0x18] sm:$0xff] }
   0x4   :  { %130 = vmatprep.subr.bf16.mxu0 %v137_v1  ;;  %v103_v13 = vld [vmem:[%s217_s3] sm:$0xff]  ;;  %v104_v20 = vld [vmem:[%s217_s3 + $0x8] sm:$0xff] }
   0x5   :  { %132 = vmatprep.mubr.msk.bf16.mxu0 %vm47_vm0, %v27_v4 }
   0x7   :  { %131 = vmatpush3.bf16.msra.mxu0 %v137_v1 }
   0xa   :  { %133 = vmatmul.mubr.msk.bf16.vlgmr.msra.gmra.mrb[0].mxu0 %vm47_vm0, %v28_v7 }
  0xdd   :  { %v134_v9 = vpop.f32.mrb[0].mxu0 }
  0xde   :  { %v97_v11 = vadd.f32 %v134_v9, %v119_v8  ;;  %v88_v12 = vpop.f32.mrb[1].mxu0 }
  0xdf   :  { %v89_v14 = vadd.f32 %v119_v8, %v88_v12  ;;  %v135_v15 = vpop.f32.mrb[2].mxu0 }
  0xe0   :  { %v109_v17 = vadd.f32 %v105_v10, %v97_v11  ;;  %v100_v18 = vadd.f32 %v135_v15, %v119_v8  ;;  %v91_v19 = vpop.f32.mrb[3].mxu0 }
  0xe1   :  { %v107_v21 = vadd.f32 %v103_v13, %v89_v14  ;;  %v92_v22 = vadd.f32 %v119_v8, %v91_v19 }
  0xe2   :  { %113 = vst.msk [vmem:[%s218_s4 + $0x10] sm:$0xff] %vm47_vm0, %v109_v17  ;;  %v110_v23 = vadd.f32 %v106_v16, %v100_v18 }
  0xe3   :  { %111 = vst.msk [vmem:[%s218_s4] sm:$0xff] %vm47_vm0, %v107_v21  ;;  %v108_v24 = vadd.f32 %v104_v20, %v92_v22 }
  0xe4   :  { %114 = vst.msk [vmem:[%s218_s4 + $0x18] sm:$0xff] %vm47_vm0, %v110_v23 }
  0xe5   :  { %112 = vst.msk [vmem:[%s218_s4 + $0x8] sm:$0xff] %vm47_vm0, %v108_v24 }

// kernel: cl_forward.46
= control target key start
LH: loop header
LB: loop body
LE: loop exit
PB: predicated region body
PF: predicated region fallthrough
CT: control target
= control target key end

     0   :  { %vm44_vm0 = vcmask 261120   ;;  %vm100_vm1 = vcmask 785408   ;;  %s181_s1 = inlined_call_operand.vmem [shape: bf16[32,96], index: 1, kind: input, shape index: {}]   ;;  %s182_s0 = inlined_call_operand.vmem [shape: f32[32,32], index: 0, kind: input, shape index: {}]   ;;  %s183_s2 = inlined_call_operand.vmem [shape: f32[1,96], index: 2, kind: input, shape index: {}]   ;;  %s184_s3 = inlined_call_operand.vmem [shape: f32[32,96], index: 3, kind: output, shape index: {}]  }
   0x1   :  { %v126_v0 = vld [vmem:[%s181_s1] sm:$0xff]   ;;  %v127_v1 = vld [vmem:[%s181_s1 + $0x8] sm:$0xff]   ;;  %v17_v5 = vld [vmem:[%s182_s0 + $0x10] sm:$0xff] }
   0x2   :  { %118 = vmatprep.subr.bf16.mxu0 %v126_v0  ;;  %v15_v2 = vld [vmem:[%s182_s0] sm:$0xff]  ;;  %v16_v3 = vld [vmem:[%s182_s0 + $0x8] sm:$0xff]  ;;  %v18_v6 = vld [vmem:[%s182_s0 + $0x18] sm:$0xff] }
   0x3   :  { %119 = vmatpush3.bf16.msra.mxu0 %v126_v0  ;;  %v24_v4 = vpack.c.bf16 %v16_v3, %v15_v2  ;;  %v25_v7 = vpack.c.bf16 %v18_v6, %v17_v5  ;;  %v109_v8 = vld [vmem:[%s183_s2] ss:$0 sm:$0xff] }
   0x4   :  { %120 = vmatprep.subr.bf16.mxu0 %v127_v1 }
   0x5   :  { %122 = vmatprep.mubr.msk.bf16.mxu0 %vm44_vm0, %v24_v4 }
   0x7   :  { %121 = vmatpush3.bf16.msra.mxu0 %v127_v1 }
   0xa   :  { %123 = vmatmul.mubr.msk.bf16.vlgmr.msra.gmra.mrb[0].mxu0 %vm44_vm0, %v25_v7 }
  0xdd   :  { %v124_v9 = vpop.f32.mrb[0].mxu0 }
  0xde   :  { %v94_v10 = vadd.f32 %v124_v9, %v109_v8  ;;  %v85_v11 = vpop.f32.mrb[1].mxu0 }
  0xdf   :  { %v86_v12 = vadd.f32 %v109_v8, %v85_v11  ;;  %v125_v13 = vpop.f32.mrb[2].mxu0 }
  0xe0   :  { %103 = vst.msk [vmem:[%s184_s3 + $0x10] sm:$0xff] %vm100_vm1, %v94_v10  ;;  %v97_v14 = vadd.f32 %v125_v13, %v109_v8  ;;  %v88_v15 = vpop.f32.mrb[3].mxu0 }
  0xe1   :  { %101 = vst.msk [vmem:[%s184_s3] sm:$0xff] %vm100_vm1, %v86_v12  ;;  %v89_v16 = vadd.f32 %v109_v8, %v88_v15 }
  0xe2   :  { %104 = vst.msk [vmem:[%s184_s3 + $0x18] sm:$0xff] %vm100_vm1, %v97_v14 }
  0xe3   :  { %102 = vst.msk [vmem:[%s184_s3 + $0x8] sm:$0xff] %vm100_vm1, %v89_v16 }

// kernel: cl_forward.41
= control target key start
LH: loop header
LB: loop body
LE: loop exit
PB: predicated region body
PF: predicated region fallthrough
CT: control target
= control target key end

     0   :  { %vm33_vm0 = vcmask 261120   ;;  %vm225_vm1 = vcmask 523264   ;;  %s490_s0 = inlined_call_operand.vmem [shape: f32[32,32], index: 0, kind: input, shape index: {}]   ;;  %s491_s3 = inlined_call_operand.vmem [shape: bf16[32,64], index: 3, kind: input, shape index: {}]   ;;  %s492_s5 = inlined_call_operand.vmem [shape: bf16[64,32], index: 5, kind: input, shape index: {}]   ;;  %s493_s1 = inlined_call_operand.vmem [shape: f32[1,32], index: 1, kind: input, shape index: {}]   ;;  %s494_s2 = inlined_call_operand.vmem [shape: f32[1,32], index: 2, kind: input, shape index: {}]   ;;  %s495_s4 = inlined_call_operand.vmem [shape: f32[1,64], index: 4, kind: input, shape index: {}]   ;;  %s496_s6 = inlined_call_operand.vmem [shape: f32[1,32], index: 6, kind: input, shape index: {}]   ;;  %s497_s7 = inlined_call_operand.vmem [shape: f32[32,32], index: 7, kind: output, shape index: {}]  }
   0x1   :  { %v405_v0 = vld [vmem:[%s490_s0] sm:$0xff]  ;;  %v410_v1 = vld [vmem:[%s490_s0 + $0x10] sm:$0xff]  ;;  %v415_v2 = vld [vmem:[%s490_s0 + $0x8] sm:$0xff] }
   0x2   :  { %v34_v3 = vsel %vm33_vm0, %v405_v0, 0.0  ;;  %v40_v4 = vsel %vm33_vm0, %v410_v1, 0.0  ;;  %v424_v5 = vld [vmem:[%s490_s0 + $0x18] sm:$0xff]  ;;  %v37_v6 = vsel %vm33_vm0, %v415_v2, 0.0  ;;  %v348_v28 = vld [vmem:[%s491_s3] sm:$0xff]   ;;  %v349_v29 = vld [vmem:[%s491_s3 + $0x8] sm:$0xff]  }
   0x3   :  { %35 = vadd.xlane.f32.xlu0 %v34_v3  ;;  %41 = vadd.xlane.f32.xlu1 %v40_v4  ;;  %v43_v7 = vsel %vm33_vm0, %v424_v5, 0.0  ;;  %v350_v30 = vld [vmem:[%s492_s5] sm:$0xff]   ;;  %v351_v31 = vld [vmem:[%s492_s5 + $0x8] sm:$0xff]   ;;  %v352_v3 = vld [vmem:[%s492_s5 + $0x10] sm:$0xff]  }
   0x4   :  { %328 = vmatprep.subr.bf16.mxu0 %v348_v28  ;;  %336 = vmatprep.subr.bf16.mxu1 %v350_v30  ;;  %v304_v46 = vld [vmem:[%s493_s1] ss:$0 sm:$0xff]  ;;  %v353_v4 = vld [vmem:[%s492_s5 + $0x18] sm:$0xff]  }
   0x5   :  { %329 = vmatpush3.bf16.msra.mxu0 %v348_v28  ;;  %337 = vmatpush3.bf16.msra.mxu1 %v350_v30  ;;  %v305_v52 = vld [vmem:[%s494_s2] ss:$0 sm:$0xff] }
   0x6   :  { %330 = vmatprep.subr.bf16.mxu0 %v349_v29  ;;  %338 = vmatprep.subr.bf16.mxu1 %v351_v31 }
   0x7   :  { %38 = vadd.xlane.f32.xlu0 %v37_v6  ;;  %44 = vadd.xlane.f32.xlu1 %v43_v7  ;;  %v306_v6 = vld [vmem:[%s495_s4] ss:$0 sm:$0xff] }
   0x9   :  { %331 = vmatpush3.bf16.msra.mxu0 %v349_v29  ;;  %339 = vmatpush3.bf16.msra.mxu1 %v351_v31 }
   0xa   :  { %340 = vmatprep.subr.bf16.mxu1 %v352_v3 }
   0xd   :  { %341 = vmatpush3.bf16.msra.mxu1 %v352_v3 }
   0xe   :  { %342 = vmatprep.subr.bf16.mxu1 %v353_v4 }
  0x11   :  { %343 = vmatpush3.bf16.msra.mxu1 %v353_v4 }
  0x90   :  { %v36_v8 = vpop.xlane.xlu0 %35  ;;  %v42_v9 = vpop.xlane.xlu1 %41 }
  0x91   :  { %v47_v10 = vmul.f32 0.03125, %v36_v8  ;;  %v49_v11 = vmul.f32 0.03125, %v42_v9 }
  0x93   :  { %v51_v12 = vsub.f32 %v405_v0, %v47_v10  ;;  %v53_v13 = vsub.f32 %v410_v1, %v49_v11 }
  0x94   :  { %v39_v14 = vpop.xlane.xlu0 %38  ;;  %v45_v15 = vpop.xlane.xlu1 %44 }
  0x95   :  { %v48_v16 = vmul.f32 0.03125, %v39_v14  ;;  %v50_v17 = vmul.f32 0.03125, %v45_v15  ;;  %v55_v18 = vmul.f32 %v51_v12, %v51_v12  ;;  %v57_v19 = vmul.f32 %v53_v13, %v53_v13 }
  0x97   :  { %v52_v20 = vsub.f32 %v415_v2, %v48_v16  ;;  %v54_v21 = vsub.f32 %v424_v5, %v50_v17  ;;  %v59_v22 = vsel %vm33_vm0, %v55_v18, 0.0  ;;  %v65_v23 = vsel %vm33_vm0, %v57_v19, 0.0 }
  0x98   :  { %60 = vadd.xlane.f32.xlu0 %v59_v22  ;;  %v317_v22 = vld [vmem:[%s496_s6] ss:$0 sm:$0xff] }
  0x99   :  { %v56_v24 = vmul.f32 %v52_v20, %v52_v20  ;;  %v58_v25 = vmul.f32 %v54_v21, %v54_v21 }
  0x9b   :  { %v62_v26 = vsel %vm33_vm0, %v56_v24, 0.0  ;;  %v68_v27 = vsel %vm33_vm0, %v58_v25, 0.0 }
  0x9c   :  { %66 = vadd.xlane.f32.xlu0 %v65_v23  ;;  %63 = vadd.xlane.f32.xlu1 %v62_v26 }
  0xa0   :  { %69 = vadd.xlane.f32.xlu1 %v68_v27 }
 0x125   :  { %v61_v32 = vpop.xlane.xlu0 %60 }
 0x126   :  { %v71_v33 = vmul.f32 0.03125, %v61_v32 }
 0x128   :  { %v75_v34 = vadd.f32 1e-05, %v71_v33 }
 0x129   :  { %v64_v35 = vpop.xlane.xlu1 %63  ;;  %v67_v36 = vpop.xlane.xlu0 %66 }
 0x12a   :  { %354 = vrsqrt.f32 %v75_v34  ;;  %v72_v37 = vmul.f32 0.03125, %v64_v35  ;;  %v73_v38 = vmul.f32 0.03125, %v67_v36 }
 0x12c   :  { %v76_v39 = vadd.f32 1e-05, %v72_v37  ;;  %v77_v40 = vadd.f32 1e-05, %v73_v38 }
 0x12d   :  { %v70_v41 = vpop.xlane.xlu1 %69 }
 0x12e   :  { %356 = vrsqrt.f32 %v76_v39  ;;  %v74_v42 = vmul.f32 0.03125, %v70_v41 }
 0x12f   :  { %358 = vrsqrt.f32 %v77_v40 }
 0x130   :  { %v78_v43 = vadd.f32 1e-05, %v74_v42 }
 0x132   :  { %360 = vrsqrt.f32 %v78_v43 }
 0x134   :  { %v355_v44 = vpop.eup %354 }
 0x135   :  { %v83_v45 = vmul.f32 %v355_v44, %v51_v12 }
 0x137   :  { %v93_v50 = vmul.f32 %v304_v46, %v83_v45 }
 0x138   :  { %v357_v47 = vpop.eup %356 }
 0x139   :  { %v359_v48 = vpop.eup %358  ;;  %v84_v49 = vmul.f32 %v357_v47, %v52_v20  ;;  %v103_v56 = vadd.f32 %v305_v52, %v93_v50 }
 0x13a   :  { %v85_v51 = vmul.f32 %v359_v48, %v53_v13 }
 0x13b   :  { %v94_v53 = vmul.f32 %v304_v46, %v84_v49 }
 0x13c   :  { %v361_v54 = vpop.eup %360  ;;  %v95_v58 = vmul.f32 %v304_v46, %v85_v51 }
 0x13d   :  { %v86_v55 = vmul.f32 %v361_v54, %v54_v21  ;;  %v104_v57 = vadd.f32 %v305_v52, %v94_v53 }
 0x13e   :  { %v105_v61 = vadd.f32 %v305_v52, %v95_v58 }
 0x13f   :  { %v107_v59 = vpack.c.bf16 %v104_v57, %v103_v56  ;;  %v96_v60 = vmul.f32 %v304_v46, %v86_v55 }
 0x141   :  { %332 = vmatprep.mubr.msk.bf16.mxu0 %vm33_vm0, %v107_v59  ;;  %v106_v62 = vadd.f32 %v305_v52, %v96_v60 }
 0x143   :  { %v108_v63 = vpack.c.bf16 %v106_v62, %v105_v61 }
 0x145   :  { %333 = vmatmul.mubr.msk.bf16.vlgmr.msra.gmra.mrb[0].mxu0 %vm33_vm0, %v108_v63 }
 0x218   :  { %v334_v7 = vpop.f32.mrb[0].mxu0 }
 0x219   :  { %v181_v8 = vadd.f32 %v334_v7, %v306_v6  ;;  %v172_v9 = vpop.f32.mrb[1].mxu0 }
 0x21a   :  { %v173_v10 = vadd.f32 %v306_v6, %v172_v9  ;;  %v335_v11 = vpop.f32.mrb[2].mxu0 }
 0x21b   :  { %v184_v12 = vadd.f32 %v335_v11, %v306_v6  ;;  %v175_v13 = vpop.f32.mrb[3].mxu0  ;;  %v189_v15 = vmax.f32 %v181_v8, 0.0 }
 0x21c   :  { %v176_v14 = vadd.f32 %v306_v6, %v175_v13  ;;  %v187_v17 = vmax.f32 %v173_v10, 0.0 }
 0x21d   :  { %v190_v16 = vmax.f32 %v184_v12, 0.0 }
 0x21e   :  { %v188_v18 = vmax.f32 %v176_v14, 0.0 }
 0x21f   :  { %v192_v19 = vpack.c.bf16 %v190_v16, %v189_v15 }
 0x220   :  { %v191_v20 = vpack.c.bf16 %v188_v18, %v187_v17 }
 0x222   :  { %344 = vmatprep.mubr.msk.bf16.mxu1 %vm225_vm1, %v191_v20 }
 0x223   :  { %345 = vmatmul.mubr.msk.bf16.vlgmr.msra.gmra.mrb[0].mxu1 %vm225_vm1, %v192_v19 }
 0x2f6   :  { %v346_v21 = vpop.f32.mrb[0].mxu1 }
 0x2f7   :  { %v283_v23 = vadd.f32 %v346_v21, %v410_v1  ;;  %v266_v24 = vpop.f32.mrb[1].mxu1 }
 0x2f8   :  { %v281_v25 = vadd.f32 %v266_v24, %v405_v0  ;;  %v347_v26 = vpop.f32.mrb[2].mxu1 }
 0x2f9   :  { %v294_v27 = vadd.f32 %v317_v22, %v283_v23  ;;  %v284_v28 = vadd.f32 %v347_v26, %v424_v5  ;;  %v269_v29 = vpop.f32.mrb[3].mxu1 }
 0x2fa   :  { %v292_v30 = vadd.f32 %v317_v22, %v281_v25  ;;  %v282_v31 = vadd.f32 %v269_v29, %v415_v2 }
 0x2fb   :  { %298 = vst.msk [vmem:[%s497_s7 + $0x10] sm:$0xff] %vm33_vm0, %v294_v27  ;;  %v295_v32 = vadd.f32 %v317_v22, %v284_v28 }
 0x2fc   :  { %296 = vst.msk [vmem:[%s497_s7] sm:$0xff] %vm33_vm0, %v292_v30  ;;  %v293_v0 = vadd.f32 %v317_v22, %v282_v31 }
 0x2fd   :  { %299 = vst.msk [vmem:[%s497_s7 + $0x18] sm:$0xff] %vm33_vm0, %v295_v32 }
 0x2fe   :  { %297 = vst.msk [vmem:[%s497_s7 + $0x8] sm:$0xff] %vm33_vm0, %v293_v0 }

// kernel: cl_forward.48
= control target key start
LH: loop header
LB: loop body
LE: loop exit
PB: predicated region body
PF: predicated region fallthrough
CT: control target
= control target key end

     0   :  { %vm53_vm0 = vcmask 261120   ;;  %s329_s1 = inlined_call_operand.vmem [shape: bf16[32,32], index: 1, kind: input, shape index: {}]   ;;  %s330_s0 = inlined_call_operand.vmem [shape: f32[32,32], index: 0, kind: input, shape index: {}]   ;;  %s331_s2 = inlined_call_operand.vmem [shape: f32[1,32], index: 2, kind: input, shape index: {}]   ;;  %s332_s3 = inlined_call_operand.vmem [shape: f32[32,32], index: 3, kind: input, shape index: {}]   ;;  %s333_s4 = inlined_call_operand.vmem [shape: f32[1,32], index: 4, kind: input, shape index: {}]   ;;  %s334_s5 = inlined_call_operand.vmem [shape: f32[1,32], index: 5, kind: input, shape index: {}]   ;;  %s335_s6 = inlined_call_operand.vmem [shape: f32[32,32], index: 6, kind: output, shape index: {}]  }
   0x1   :  { %v219_v0 = vld [vmem:[%s329_s1] sm:$0xff]   ;;  %v220_v1 = vld [vmem:[%s329_s1 + $0x8] sm:$0xff]   ;;  %v26_v5 = vld [vmem:[%s330_s0 + $0x10] sm:$0xff] }
   0x2   :  { %211 = vmatprep.subr.bf16.mxu0 %v219_v0  ;;  %v24_v2 = vld [vmem:[%s330_s0] sm:$0xff]  ;;  %v25_v3 = vld [vmem:[%s330_s0 + $0x8] sm:$0xff]  ;;  %v27_v6 = vld [vmem:[%s330_s0 + $0x18] sm:$0xff] }
   0x3   :  { %212 = vmatpush3.bf16.msra.mxu0 %v219_v0  ;;  %v33_v4 = vpack.c.bf16 %v25_v3, %v24_v2  ;;  %v34_v7 = vpack.c.bf16 %v27_v6, %v26_v5  ;;  %v200_v8 = vld [vmem:[%s331_s2] ss:$0 sm:$0xff]  ;;  %v111_v10 = vld [vmem:[%s332_s3 + $0x10] sm:$0xff]  ;;  %v112_v16 = vld [vmem:[%s332_s3 + $0x18] sm:$0xff] }
   0x4   :  { %213 = vmatprep.subr.bf16.mxu0 %v220_v1  ;;  %v109_v13 = vld [vmem:[%s332_s3] sm:$0xff]  ;;  %v110_v20 = vld [vmem:[%s332_s3 + $0x8] sm:$0xff] }
   0x5   :  { %215 = vmatprep.mubr.msk.bf16.mxu0 %vm53_vm0, %v33_v4  ;;  %v205_v62 = vld [vmem:[%s333_s4] ss:$0 sm:$0xff] }
   0x6   :  { %v206_v0 = vld [vmem:[%s334_s5] ss:$0 sm:$0xff] }
   0x7   :  { %214 = vmatpush3.bf16.msra.mxu0 %v220_v1 }
   0xa   :  { %216 = vmatmul.mubr.msk.bf16.vlgmr.msra.gmra.mrb[0].mxu0 %vm53_vm0, %v34_v7 }
  0xdd   :  { %v217_v9 = vpop.f32.mrb[0].mxu0 }
  0xde   :  { %v103_v11 = vadd.f32 %v217_v9, %v200_v8  ;;  %v94_v12 = vpop.f32.mrb[1].mxu0 }
  0xdf   :  { %v95_v14 = vadd.f32 %v200_v8, %v94_v12  ;;  %v218_v15 = vpop.f32.mrb[2].mxu0 }
  0xe0   :  { %v106_v17 = vadd.f32 %v218_v15, %v200_v8  ;;  %v97_v18 = vpop.f32.mrb[3].mxu0  ;;  %v115_v19 = vadd.f32 %v111_v10, %v103_v11 }
  0xe1   :  { %v98_v21 = vadd.f32 %v200_v8, %v97_v18  ;;  %v113_v22 = vadd.f32 %v109_v13, %v95_v14 }
  0xe2   :  { %v125_v23 = vsel %vm53_vm0, %v115_v19, 0.0  ;;  %v116_v24 = vadd.f32 %v112_v16, %v106_v17 }
  0xe3   :  { %126 = vadd.xlane.f32.xlu1 %v125_v23  ;;  %v119_v25 = vsel %vm53_vm0, %v113_v22, 0.0  ;;  %v114_v26 = vadd.f32 %v110_v20, %v98_v21 }
  0xe4   :  { %120 = vadd.xlane.f32.xlu0 %v119_v25  ;;  %v128_v27 = vsel %vm53_vm0, %v116_v24, 0.0 }
  0xe5   :  { %v122_v28 = vsel %vm53_vm0, %v114_v26, 0.0 }
  0xe7   :  { %129 = vadd.xlane.f32.xlu1 %v128_v27 }
  0xe8   :  { %123 = vadd.xlane.f32.xlu0 %v122_v28 }
 0x170   :  { %v127_v29 = vpop.xlane.xlu1 %126 }
 0x171   :  { %v134_v30 = vmul.f32 0.03125, %v127_v29  ;;  %v121_v31 = vpop.xlane.xlu0 %120 }
 0x172   :  { %v132_v32 = vmul.f32 0.03125, %v121_v31 }
 0x173   :  { %v138_v33 = vsub.f32 %v115_v19, %v134_v30 }
 0x174   :  { %v136_v34 = vsub.f32 %v113_v22, %v132_v32  ;;  %v130_v35 = vpop.xlane.xlu1 %129 }
 0x175   :  { %v135_v36 = vmul.f32 0.03125, %v130_v35  ;;  %v124_v37 = vpop.xlane.xlu0 %123  ;;  %v142_v43 = vmul.f32 %v138_v33, %v138_v33 }
 0x176   :  { %v133_v38 = vmul.f32 0.03125, %v124_v37  ;;  %v140_v39 = vmul.f32 %v136_v34, %v136_v34 }
 0x177   :  { %v139_v40 = vsub.f32 %v116_v24, %v135_v36  ;;  %v150_v45 = vsel %vm53_vm0, %v142_v43, 0.0 }
 0x178   :  { %v137_v41 = vsub.f32 %v114_v26, %v133_v38  ;;  %v144_v42 = vsel %vm53_vm0, %v140_v39, 0.0 }
 0x179   :  { %145 = vadd.xlane.f32.xlu0 %v144_v42  ;;  %v143_v47 = vmul.f32 %v139_v40, %v139_v40 }
 0x17a   :  { %v141_v44 = vmul.f32 %v137_v41, %v137_v41 }
 0x17b   :  { %v153_v48 = vsel %vm53_vm0, %v143_v47, 0.0 }
 0x17c   :  { %v147_v46 = vsel %vm53_vm0, %v141_v44, 0.0 }
 0x17d   :  { %151 = vadd.xlane.f32.xlu0 %v150_v45  ;;  %148 = vadd.xlane.f32.xlu1 %v147_v46 }
 0x181   :  { %154 = vadd.xlane.f32.xlu1 %v153_v48 }
 0x206   :  { %v146_v49 = vpop.xlane.xlu0 %145 }
 0x207   :  { %v156_v50 = vmul.f32 0.03125, %v146_v49 }
 0x209   :  { %v160_v51 = vadd.f32 1e-05, %v156_v50 }
 0x20a   :  { %v149_v52 = vpop.xlane.xlu1 %148  ;;  %v152_v53 = vpop.xlane.xlu0 %151 }
 0x20b   :  { %221 = vrsqrt.f32 %v160_v51  ;;  %v157_v54 = vmul.f32 0.03125, %v149_v52  ;;  %v158_v55 = vmul.f32 0.03125, %v152_v53 }
 0x20d   :  { %v161_v56 = vadd.f32 1e-05, %v157_v54  ;;  %v162_v57 = vadd.f32 1e-05, %v158_v55 }
 0x20e   :  { %v155_v58 = vpop.xlane.xlu1 %154 }
 0x20f   :  { %223 = vrsqrt.f32 %v161_v56  ;;  %v159_v59 = vmul.f32 0.03125, %v155_v58 }
 0x210   :  { %225 = vrsqrt.f32 %v162_v57 }
 0x211   :  { %v163_v60 = vadd.f32 1e-05, %v159_v59 }
 0x213   :  { %227 = vrsqrt.f32 %v163_v60 }
 0x215   :  { %v222_v61 = vpop.eup %221 }
 0x216   :  { %v168_v63 = vmul.f32 %v222_v61, %v136_v34 }
 0x218   :  { %v178_v1 = vmul.f32 %v205_v62, %v168_v63 }
 0x219   :  { %v224_v2 = vpop.eup %223 }
 0x21a   :  { %v226_v3 = vpop.eup %225  ;;  %v188_v4 = vadd.f32 %v206_v0, %v178_v1  ;;  %v169_v5 = vmul.f32 %v224_v2, %v137_v41 }
 0x21b   :  { %v170_v6 = vmul.f32 %v226_v3, %v138_v33 }
 0x21c   :  { %192 = vst.msk [vmem:[%s335_s6] sm:$0xff] %vm53_vm0, %v188_v4  ;;  %v179_v7 = vmul.f32 %v205_v62, %v169_v5 }
 0x21d   :  { %v228_v8 = vpop.eup %227  ;;  %v180_v9 = vmul.f32 %v205_v62, %v170_v6 }
 0x21e   :  { %v189_v10 = vadd.f32 %v206_v0, %v179_v7  ;;  %v171_v11 = vmul.f32 %v228_v8, %v139_v40 }
 0x21f   :  { %v190_v12 = vadd.f32 %v206_v0, %v180_v9 }
 0x220   :  { %193 = vst.msk [vmem:[%s335_s6 + $0x8] sm:$0xff] %vm53_vm0, %v189_v10  ;;  %v181_v13 = vmul.f32 %v205_v62, %v171_v11 }
 0x221   :  { %194 = vst.msk [vmem:[%s335_s6 + $0x10] sm:$0xff] %vm53_vm0, %v190_v12 }
 0x222   :  { %v191_v14 = vadd.f32 %v206_v0, %v181_v13 }
 0x224   :  { %195 = vst.msk [vmem:[%s335_s6 + $0x18] sm:$0xff] %vm53_vm0, %v191_v14 }

// kernel: cl_forward.49
= control target key start
LH: loop header
LB: loop body
LE: loop exit
PB: predicated region body
PF: predicated region fallthrough
CT: control target
= control target key end

     0   :  { %vm56_vm0 = vcmask 261120   ;;  %vm150_vm1 = vcmask 523264   ;;  %s470_s1 = inlined_call_operand.vmem [shape: bf16[32,64], index: 1, kind: input, shape index: {}]   ;;  %s471_s0 = inlined_call_operand.vmem [shape: f32[32,32], index: 0, kind: input, shape index: {}]   ;;  %s472_s3 = inlined_call_operand.vmem [shape: bf16[64,32], index: 3, kind: input, shape index: {}]   ;;  %s473_s2 = inlined_call_operand.vmem [shape: f32[1,64], index: 2, kind: input, shape index: {}]   ;;  %s474_s4 = inlined_call_operand.vmem [shape: f32[1,32], index: 4, kind: input, shape index: {}]   ;;  %s475_s5 = inlined_call_operand.vmem [shape: f32[1,32], index: 5, kind: input, shape index: {}]   ;;  %s476_s6 = inlined_call_operand.vmem [shape: f32[1,32], index: 6, kind: input, shape index: {}]   ;;  %s477_s7 = inlined_call_operand.vmem [shape: f32[32,32], index: 7, kind: output, shape index: {}]  }
   0x1   :  { %v348_v0 = vld [vmem:[%s470_s1] sm:$0xff]   ;;  %v349_v1 = vld [vmem:[%s470_s1 + $0x8] sm:$0xff]   ;;  %v29_v4 = vld [vmem:[%s471_s0 + $0x10] sm:$0xff] }
   0x2   :  { %328 = vmatprep.subr.bf16.mxu0 %v348_v0  ;;  %v27_v2 = vld [vmem:[%s471_s0] sm:$0xff]  ;;  %v28_v3 = vld [vmem:[%s471_s0 + $0x8] sm:$0xff]  ;;  %v30_v6 = vld [vmem:[%s471_s0 + $0x18] sm:$0xff] }
   0x3   :  { %329 = vmatpush3.bf16.msra.mxu0 %v348_v0  ;;  %v31_v5 = vpack.c.bf16 %v28_v3, %v27_v2  ;;  %v350_v7 = vld [vmem:[%s472_s3] sm:$0xff]   ;;  %v351_v8 = vld [vmem:[%s472_s3 + $0x8] sm:$0xff]   ;;  %v32_v9 = vpack.c.bf16 %v30_v6, %v29_v4  ;;  %v352_v10 = vld [vmem:[%s472_s3 + $0x10] sm:$0xff]  }
   0x4   :  { %330 = vmatprep.subr.bf16.mxu0 %v349_v1  ;;  %336 = vmatprep.subr.bf16.mxu1 %v350_v7  ;;  %v353_v11 = vld [vmem:[%s472_s3 + $0x18] sm:$0xff]   ;;  %v304_v12 = vld [vmem:[%s473_s2] ss:$0 sm:$0xff] }
   0x5   :  { %332 = vmatprep.mubr.msk.bf16.mxu0 %vm56_vm0, %v31_v5  ;;  %337 = vmatpush3.bf16.msra.mxu1 %v350_v7  ;;  %v315_v28 = vld [vmem:[%s474_s4] ss:$0 sm:$0xff] }
   0x6   :  { %338 = vmatprep.subr.bf16.mxu1 %v351_v8 }
   0x7   :  { %331 = vmatpush3.bf16.msra.mxu0 %v349_v1 }
   0x9   :  { %339 = vmatpush3.bf16.msra.mxu1 %v351_v8 }
   0xa   :  { %333 = vmatmul.mubr.msk.bf16.vlgmr.msra.gmra.mrb[0].mxu0 %vm56_vm0, %v32_v9  ;;  %340 = vmatprep.subr.bf16.mxu1 %v352_v10 }
   0xd   :  { %341 = vmatpush3.bf16.msra.mxu1 %v352_v10 }
   0xe   :  { %342 = vmatprep.subr.bf16.mxu1 %v353_v11 }
  0x11   :  { %343 = vmatpush3.bf16.msra.mxu1 %v353_v11 }
  0xdd   :  { %v334_v13 = vpop.f32.mrb[0].mxu0 }
  0xde   :  { %v106_v14 = vadd.f32 %v334_v13, %v304_v12  ;;  %v97_v15 = vpop.f32.mrb[1].mxu0  ;;  %v316_v13 = vld [vmem:[%s475_s5] ss:$0 sm:$0xff] }
  0xdf   :  { %v98_v16 = vadd.f32 %v304_v12, %v97_v15  ;;  %v335_v17 = vpop.f32.mrb[2].mxu0  ;;  %v317_v15 = vld [vmem:[%s476_s6] ss:$0 sm:$0xff] }
  0xe0   :  { %v109_v18 = vadd.f32 %v335_v17, %v304_v12  ;;  %v100_v19 = vpop.f32.mrb[3].mxu0  ;;  %v114_v21 = vmax.f32 %v106_v14, 0.0 }
  0xe1   :  { %v101_v20 = vadd.f32 %v304_v12, %v100_v19  ;;  %v112_v23 = vmax.f32 %v98_v16, 0.0 }
  0xe2   :  { %v115_v22 = vmax.f32 %v109_v18, 0.0 }
  0xe3   :  { %v113_v24 = vmax.f32 %v101_v20, 0.0 }
  0xe4   :  { %v117_v25 = vpack.c.bf16 %v115_v22, %v114_v21 }
  0xe5   :  { %v116_v26 = vpack.c.bf16 %v113_v24, %v112_v23 }
  0xe7   :  { %344 = vmatprep.mubr.msk.bf16.mxu1 %vm150_vm1, %v116_v26 }
  0xe8   :  { %345 = vmatmul.mubr.msk.bf16.vlgmr.msra.gmra.mrb[0].mxu1 %vm150_vm1, %v117_v25 }
 0x1bb   :  { %v346_v27 = vpop.f32.mrb[0].mxu1 }
 0x1bc   :  { %v208_v29 = vadd.f32 %v346_v27, %v29_v4  ;;  %v191_v30 = vpop.f32.mrb[1].mxu1 }
 0x1bd   :  { %v206_v31 = vadd.f32 %v191_v30, %v27_v2  ;;  %v347_v32 = vpop.f32.mrb[2].mxu1 }
 0x1be   :  { %v209_v33 = vadd.f32 %v347_v32, %v30_v6  ;;  %v194_v34 = vpop.f32.mrb[3].mxu1  ;;  %v219_v35 = vadd.f32 %v315_v28, %v208_v29 }
 0x1bf   :  { %v207_v36 = vadd.f32 %v194_v34, %v28_v3  ;;  %v217_v37 = vadd.f32 %v315_v28, %v206_v31 }
 0x1c0   :  { %v229_v38 = vsel %vm56_vm0, %v219_v35, 0.0  ;;  %v220_v39 = vadd.f32 %v315_v28, %v209_v33 }
 0x1c1   :  { %230 = vadd.xlane.f32.xlu1 %v229_v38  ;;  %v223_v40 = vsel %vm56_vm0, %v217_v37, 0.0  ;;  %v218_v41 = vadd.f32 %v315_v28, %v207_v36 }
 0x1c2   :  { %224 = vadd.xlane.f32.xlu0 %v223_v40  ;;  %v232_v42 = vsel %vm56_vm0, %v220_v39, 0.0 }
 0x1c3   :  { %v226_v43 = vsel %vm56_vm0, %v218_v41, 0.0 }
 0x1c5   :  { %233 = vadd.xlane.f32.xlu1 %v232_v42 }
 0x1c6   :  { %227 = vadd.xlane.f32.xlu0 %v226_v43 }
 0x24e   :  { %v231_v44 = vpop.xlane.xlu1 %230 }
 0x24f   :  { %v238_v45 = vmul.f32 0.03125, %v231_v44  ;;  %v225_v46 = vpop.xlane.xlu0 %224 }
 0x250   :  { %v236_v47 = vmul.f32 0.03125, %v225_v46 }
 0x251   :  { %v242_v48 = vsub.f32 %v219_v35, %v238_v45 }
 0x252   :  { %v240_v49 = vsub.f32 %v217_v37, %v236_v47  ;;  %v234_v50 = vpop.xlane.xlu1 %233 }
 0x253   :  { %v239_v51 = vmul.f32 0.03125, %v234_v50  ;;  %v228_v52 = vpop.xlane.xlu0 %227  ;;  %v246_v58 = vmul.f32 %v242_v48, %v242_v48 }
 0x254   :  { %v237_v53 = vmul.f32 0.03125, %v228_v52  ;;  %v244_v54 = vmul.f32 %v240_v49, %v240_v49 }
 0x255   :  { %v243_v55 = vsub.f32 %v220_v39, %v239_v51  ;;  %v254_v60 = vsel %vm56_vm0, %v246_v58, 0.0 }
 0x256   :  { %v241_v56 = vsub.f32 %v218_v41, %v237_v53  ;;  %v248_v57 = vsel %vm56_vm0, %v244_v54, 0.0 }
 0x257   :  { %249 = vadd.xlane.f32.xlu0 %v248_v57  ;;  %v247_v62 = vmul.f32 %v243_v55, %v243_v55 }
 0x258   :  { %v245_v59 = vmul.f32 %v241_v56, %v241_v56 }
 0x259   :  { %v257_v63 = vsel %vm56_vm0, %v247_v62, 0.0 }
 0x25a   :  { %v251_v61 = vsel %vm56_vm0, %v245_v59, 0.0 }
 0x25b   :  { %255 = vadd.xlane.f32.xlu0 %v254_v60  ;;  %252 = vadd.xlane.f32.xlu1 %v251_v61 }
 0x25f   :  { %258 = vadd.xlane.f32.xlu1 %v257_v63 }
 0x2e4   :  { %v250_v0 = vpop.xlane.xlu0 %249 }
 0x2e5   :  { %v260_v1 = vmul.f32 0.03125, %v250_v0 }
 0x2e7   :  { %v264_v2 = vadd.f32 1e-05, %v260_v1 }
 0x2e8   :  { %v253_v3 = vpop.xlane.xlu1 %252  ;;  %v256_v4 = vpop.xlane.xlu0 %255 }
 0x2e9   :  { %354 = vrsqrt.f32 %v264_v2  ;;  %v261_v5 = vmul.f32 0.03125, %v253_v3  ;;  %v262_v6 = vmul.f32 0.03125, %v256_v4 }
 0x2eb   :  { %v265_v7 = vadd.f32 1e-05, %v261_v5  ;;  %v266_v8 = vadd.f32 1e-05, %v262_v6 }
 0x2ec   :  { %v259_v9 = vpop.xlane.xlu1 %258 }
 0x2ed   :  { %356 = vrsqrt.f32 %v265_v7  ;;  %v263_v10 = vmul.f32 0.03125, %v259_v9 }
 0x2ee   :  { %358 = vrsqrt.f32 %v266_v8 }
 0x2ef   :  { %v267_v11 = vadd.f32 1e-05, %v263_v10 }
 0x2f1   :  { %360 = vrsqrt.f32 %v267_v11 }
 0x2f3   :  { %v355_v12 = vpop.eup %354 }
 0x2f4   :  { %v272_v14 = vmul.f32 %v355_v12, %v240_v49 }
 0x2f6   :  { %v282_v16 = vmul.f32 %v316_v13, %v272_v14 }
 0x2f7   :  { %v357_v17 = vpop.eup %356 }
 0x2f8   :  { %v359_v18 = vpop.eup %358  ;;  %v292_v19 = vadd.f32 %v317_v15, %v282_v16  ;;  %v273_v20 = vmul.f32 %v357_v17, %v241_v56 }
 0x2f9   :  { %v274_v21 = vmul.f32 %v359_v18, %v242_v48 }
 0x2fa   :  { %296 = vst.msk [vmem:[%s477_s7] sm:$0xff] %vm56_vm0, %v292_v19  ;;  %v283_v22 = vmul.f32 %v316_v13, %v273_v20 }
 0x2fb   :  { %v361_v23 = vpop.eup %360  ;;  %v284_v24 = vmul.f32 %v316_v13, %v274_v21 }
 0x2fc   :  { %v293_v25 = vadd.f32 %v317_v15, %v283_v22  ;;  %v275_v26 = vmul.f32 %v361_v23, %v243_v55 }
 0x2fd   :  { %v294_v27 = vadd.f32 %v317_v15, %v284_v24 }
 0x2fe   :  { %297 = vst.msk [vmem:[%s477_s7 + $0x8] sm:$0xff] %vm56_vm0, %v293_v25  ;;  %v285_v28 = vmul.f32 %v316_v13, %v275_v26 }
 0x2ff   :  { %298 = vst.msk [vmem:[%s477_s7 + $0x10] sm:$0xff] %vm56_vm0, %v294_v27 }
 0x300   :  { %v295_v29 = vadd.f32 %v317_v15, %v285_v28 }
 0x302   :  { %299 = vst.msk [vmem:[%s477_s7 + $0x18] sm:$0xff] %vm56_vm0, %v295_v29 }

</bundles_post_ra>
